<compile_context>
chip_gen: v5e
topology: v5e:2x2
jax: 0.10.0
libtpu: 0.0.40
codegen_flags: <defaults>
</compile_context>

<pallas_src>
import functools

import numpy as np

import jax
import jax.numpy as jnp
from jax.experimental import pallas as pl
from jax.experimental.pallas import tpu as pltpu

DROPOUT_P = 0.2          # unused (inference mode)
NUM_CLASSES = 1
BN_EPS = 1e-5


# ---------------------------------------------------------------------------
# Host-side packing: turn torch-layout parameters into structured 2-D matmul
# operands for the "(n,h) rows x (w,c) lanes" layout.  Runs once at setup.
# ---------------------------------------------------------------------------

def _np(a):
    return np.asarray(a, dtype=np.float32)


def _bias_row(b, w):
    # lane (w_idx*Cout + co) -> b[co]
    return jnp.asarray(np.tile(_np(b), w)[None, :])


def _bn_rows(scale, shift, w):
    # row 0 = per-lane scale, row 1 = per-lane shift
    return jnp.asarray(np.stack([np.tile(_np(scale), w), np.tile(_np(shift), w)]))


def _band_conv_matrices(k, w):
    """k: (3, 3, cin, cout) HWIO conv weight -> (3, w*cin, w*cout) banded matrices,
    one per vertical tap dy in (-1, 0, +1); the horizontal tap dx is folded into the
    band so zero-padding along w is automatic."""
    k = _np(k)
    cin, cout = k.shape[2], k.shape[3]
    a = np.zeros((3, w * cin, w * cout), np.float32)
    for i_dy in range(3):
        for w_out in range(w):
            for dx in (-1, 0, 1):
                w_in = w_out + dx
                if 0 <= w_in < w:
                    a[i_dy,
                      w_in * cin:(w_in + 1) * cin,
                      w_out * cout:(w_out + 1) * cout] = k[i_dy, dx + 1]
    return jnp.asarray(a)


def _row_shift_matrices(n, h):
    """(2, NH, NH) 0/1 matrices: index 0 shifts rows by dy=-1, index 1 by dy=+1,
    zeroing rows that would cross an image boundary (== zero padding in h)."""
    nh = n * h
    d = np.zeros((2, nh, nh), np.float32)
    for r in range(nh):
        if r % h >= 1:
            d[0, r, r - 1] = 1.0
        if r % h <= h - 2:
            d[1, r, r + 1] = 1.0
    return jnp.asarray(d)


def _pool_matrices(n, h, w, c):
    """MaxPool2d(2,2) as gathers: lane selectors (even/odd w) and row selectors
    (even/odd h); the max itself is elementwise in the kernel."""
    sel = np.zeros((2, w * c, (w // 2) * c), np.float32)
    for w2 in range(w // 2):
        for cc in range(c):
            sel[0, (2 * w2) * c + cc, w2 * c + cc] = 1.0
            sel[1, (2 * w2 + 1) * c + cc, w2 * c + cc] = 1.0
    prow = np.zeros((2, n * (h // 2), n * h), np.float32)
    for nn in range(n):
        for h2 in range(h // 2):
            prow[0, nn * (h // 2) + h2, nn * h + 2 * h2] = 1.0
            prow[1, nn * (h // 2) + h2, nn * h + 2 * h2 + 1] = 1.0
    return jnp.asarray(sel), jnp.asarray(prow)


def _upconv_matrices(wt, b, n, h, w):
    """ConvTranspose2d(k=2, s=2).  wt: (cin, cout, 2, 2) torch layout.
    Returns lane-scatter weight matrices B (one per ky, kx folded into lanes),
    row-scatter matrices U (one per ky) and the tiled bias row."""
    wt = _np(wt)
    cin, cout = wt.shape[0], wt.shape[1]
    bmat = np.zeros((2, w * cin, 2 * w * cout), np.float32)
    for ky in range(2):
        for ww in range(w):
            for kx in range(2):
                bmat[ky,
                     ww * cin:(ww + 1) * cin,
                     (2 * ww + kx) * cout:(2 * ww + kx + 1) * cout] = wt[:, :, ky, kx]
    nh = n * h
    umat = np.zeros((2, 2 * nh, nh), np.float32)
    for ky in range(2):
        for r in range(nh):
            umat[ky, 2 * r + ky, r] = 1.0     # out row (n, 2h+ky) <- in row (n, h)
    bias = np.tile(_np(b), 2 * w)[None, :]
    return jnp.asarray(bmat), jnp.asarray(umat), jnp.asarray(bias)


def _final_matrices(kf, bf, w):
    """1x1 conv as a block-diagonal matrix.  kf: (1, 1, cmid, cout)."""
    kf = _np(kf)
    cmid, cout = kf.shape[2], kf.shape[3]
    f = np.zeros((w * cmid, w * cout), np.float32)
    for ww in range(w):
        f[ww * cmid:(ww + 1) * cmid, ww * cout:(ww + 1) * cout] = kf[0, 0]
    bias = np.tile(_np(bf), w)[None, :]
    return jnp.asarray(f), jnp.asarray(bias)


def pack_down_step(p, n, h, w):
    (s1, t1), (s2, t2) = p["bn1"], p["bn2"]
    k1, b1 = p["conv1"]
    k2, b2 = p["conv2"]
    cout = int(k2.shape[3])
    sel, prow = _pool_matrices(n, h, w, cout)
    return {
        "bn1": _bn_rows(s1, t1, w),
        "A1": _band_conv_matrices(k1, w),
        "b1": _bias_row(b1, w),
        "bn2": _bn_rows(s2, t2, w),
        "A2": _band_conv_matrices(k2, w),
        "b2": _bias_row(b2, w),
        "D": _row_shift_matrices(n, h),
        "Sel": sel,
        "P": prow,
    }


def pack_up_step(p, n, h, w, split=None):
    (s1, t1), (s2, t2) = p["bn1"], p["bn2"]
    k1, b1 = p["conv1"]
    k2, b2 = p["conv2"]
    ops = {
        "b1": _bias_row(b1, w),
        "bn2": _bn_rows(s2, t2, w),
        "A2": _band_conv_matrices(k2, w),
        "b2": _bias_row(b2, w),
        "D": _row_shift_matrices(n, h),
    }
    if split is None:
        ops["bn1a"] = _bn_rows(s1, t1, w)
        ops["A1a"] = _band_conv_matrices(k1, w)
    else:
        ca = int(split)    # channels of the first (upsampled) half of the torch concat
        ops["bn1a"] = _bn_rows(s1[:ca], t1[:ca], w)
        ops["bn1b"] = _bn_rows(s1[ca:], t1[ca:], w)
        ops["A1a"] = _band_conv_matrices(k1[:, :, :ca, :], w)
        ops["A1b"] = _band_conv_matrices(k1[:, :, ca:, :], w)
    if p["mode"] == "final":
        kf, bf = p["final"]
        ops["F"], ops["bf"] = _final_matrices(kf, bf, w)
    else:
        wt, bu = p["upconv"]
        ops["B"], ops["U"], ops["bu"] = _upconv_matrices(wt, bu, n, h, w)
    return ops


def pack_unet(params, nbr_layers, n, h, w):
    ops = {"down1": pack_down_step(params["down1"], n, h, w),
           "down2": pack_down_step(params["down2"], n, h // 2, w // 2)}
    if nbr_layers == 2:
        ops["center"] = pack_up_step(params["center"], n, h // 4, w // 4)
        c_first = int(params["center"]["upconv"][0].shape[1])
        ops["up2"] = pack_up_step(params["up2"], n, h // 2, w // 2, split=c_first)
    elif nbr_layers == 3:
        ops["down3"] = pack_down_step(params["down3"], n, h // 4, w // 4)
        ops["center"] = pack_up_step(params["center"], n, h // 8, w // 8)
        c3 = int(params["center"]["upconv"][0].shape[1])
        ops["up3"] = pack_up_step(params["up3"], n, h // 4, w // 4, split=c3)
        c2 = int(params["up3"]["upconv"][0].shape[1])
        ops["up2"] = pack_up_step(params["up2"], n, h // 2, w // 2, split=c2)
    else:
        raise ValueError("UNet accepts 2 or 3 layers.")
    c1 = int(params["up2"]["upconv"][0].shape[1])
    ops["up1"] = pack_up_step(params["up1"], n, h, w, split=c1)
    return ops


# ---------------------------------------------------------------------------
# In-kernel building blocks (values + matmuls only; everything stays in VMEM)
# ---------------------------------------------------------------------------

def _affine(x, bn_ref):
    # inference-mode BatchNorm2d: y = x * scale + shift (per-lane row vectors)
    return x * bn_ref[0:1, :] + bn_ref[1:2, :]


def _conv3x3_relu(x_parts, a_refs, b_ref, d_ref):
    """3x3 'same' conv + bias + ReLU in (NH, W*C) layout.  x_parts/a_refs are the
    channel-split halves of the conv input (len 1 or 2) and their banded weights."""
    taps = []
    for i_dy in range(3):                    # dy = -1, 0, +1
        acc = None
        for x, a_ref in zip(x_parts, a_refs):
            p = jnp.dot(x, a_ref[i_dy], preferred_element_type=jnp.float32)
            acc = p if acc is None else acc + p
        taps.append(acc)
    y = taps[1]
    y = y + jnp.dot(d_ref[0], taps[0], preferred_element_type=jnp.float32)
    y = y + jnp.dot(d_ref[1], taps[2], preferred_element_type=jnp.float32)
    return jnp.maximum(y + b_ref[...], 0.0)


def _maxpool2x2(z, sel_ref, p_ref):
    ze = jnp.dot(z, sel_ref[0], preferred_element_type=jnp.float32)
    zo = jnp.dot(z, sel_ref[1], preferred_element_type=jnp.float32)
    zh = jnp.maximum(ze, zo)                                   # max over w pairs
    pe = jnp.dot(p_ref[0], zh, preferred_element_type=jnp.float32)
    po = jnp.dot(p_ref[1], zh, preferred_element_type=jnp.float32)
    return jnp.maximum(pe, po)                                 # max over h pairs


def _conv_transpose2x2(x, b_ref, u_ref, bias_ref):
    y0 = jnp.dot(x, b_ref[0], preferred_element_type=jnp.float32)
    y1 = jnp.dot(x, b_ref[1], preferred_element_type=jnp.float32)
    y = (jnp.dot(u_ref[0], y0, preferred_element_type=jnp.float32)
         + jnp.dot(u_ref[1], y1, preferred_element_type=jnp.float32))
    return y + bias_ref[...]


def _down_step(ops, x):
    x = _affine(x, ops["bn1"])
    x = _conv3x3_relu([x], [ops["A1"]], ops["b1"], ops["D"])
    x = _affine(x, ops["bn2"])
    x = _conv3x3_relu([x], [ops["A2"]], ops["b2"], ops["D"])
    bridge = x
    # TODO(synk): nn.Dropout(p=0.2) is stochastic in training mode; identity at inference.
    pooled = _maxpool2x2(x, ops["Sel"], ops["P"])
    return pooled, bridge


def _up_step(ops, x_parts):
    bn_keys = ["bn1a", "bn1b"][: len(x_parts)]
    a_keys = ["A1a", "A1b"][: len(x_parts)]
    parts = [_affine(xp, ops[k]) for xp, k in zip(x_parts, bn_keys)]
    x = _conv3x3_relu(parts, [ops[k] for k in a_keys], ops["b1"], ops["D"])
    x = _affine(x, ops["bn2"])
    x = _conv3x3_relu([x], [ops["A2"]], ops["b2"], ops["D"])
    if "F" in ops:                                  # final 1x1 conv + fused sigmoid
        y = jnp.dot(x, ops["F"][...], preferred_element_type=jnp.float32) + ops["bf"][...]
        return 1.0 / (1.0 + jnp.exp(-y))
    return _conv_transpose2x2(x, ops["B"], ops["U"], ops["bu"])


def _unet_kernel(*refs, treedef, nbr_layers):
    x_ref = refs[0]
    out_ref = refs[-1]
    ops = jax.tree_util.tree_unflatten(treedef, refs[1:-1])

    x = x_ref[...]
    d1, bridge1 = _down_step(ops["down1"], x)
    d2, bridge2 = _down_step(ops["down2"], d1)
    if nbr_layers == 2:
        center = _up_step(ops["center"], [d2])
        up2 = _up_step(ops["up2"], [center, bridge2])   # skip concat via K-split matmuls
    else:
        d3, bridge3 = _down_step(ops["down3"], d2)
        center = _up_step(ops["center"], [d3])
        up3 = _up_step(ops["up3"], [center, bridge3])
        up2 = _up_step(ops["up2"], [up3, bridge2])
    out = _up_step(ops["up1"], [up2, bridge1])
    out_ref[...] = out.astype(out_ref.dtype)


def unet_apply(op_leaves, op_treedef, nbr_layers, x_nhwc):
    n, h, w, c0 = x_nhwc.shape
    x2d = x_nhwc.reshape(n * h, w * c0)    # pure reshape: rows=(n,h), lanes=(w,c)
    kernel = functools.partial(_unet_kernel, treedef=op_treedef, nbr_layers=nbr_layers)
    out2d = pl.pallas_call(
        kernel,
        out_shape=jax.ShapeDtypeStruct((n * h, w * NUM_CLASSES), jnp.float32),
        # No grid: the whole network (activations <= (32,128) f32, structured weights
        # ~3 MiB) is VMEM-resident -> one launch, one HBM read of x, one write of out.
        # On v7x the 2nd TensorCore is idle at this size; if batch/resolution grows,
        # add a leading 'parallel' batch grid axis to shard across cores.
        compiler_params=pltpu.CompilerParams(vmem_limit_bytes=32 * 1024 * 1024),
    )(x2d, *op_leaves)
    return out2d.reshape(n, h, w, NUM_CLASSES)


# ---------------------------------------------------------------------------
# Deterministic parameter initialization (shapes match the torch module)
# ---------------------------------------------------------------------------

def _bn_params(c):
    gamma = jnp.ones((c,), jnp.float32)
    beta = jnp.zeros((c,), jnp.float32)
    running_mean = jnp.zeros((c,), jnp.float32)
    running_var = jnp.ones((c,), jnp.float32)
    scale = gamma / jnp.sqrt(running_var + BN_EPS)
    shift = beta - running_mean * scale
    return scale, shift


def _conv_params(key, kh, kw, cin, cout):
    wk, bk = jax.random.split(key)
    w = jax.random.normal(wk, (kh, kw, cin, cout), jnp.float32) / jnp.sqrt(kh * kw * cin)
    b = 0.01 * jax.random.normal(bk, (cout,), jnp.float32)
    return w, b


def _convT_params(key, cin, cout):
    wk, bk = jax.random.split(key)
    w = jax.random.normal(wk, (cin, cout, 2, 2), jnp.float32) / jnp.sqrt(4.0 * cin)
    b = 0.01 * jax.random.normal(bk, (cout,), jnp.float32)
    return w, b


def init_down_step(key, cin, cout):
    k1, k2 = jax.random.split(key)
    return {"bn1": _bn_params(cin), "conv1": _conv_params(k1, 3, 3, cin, cout),
            "bn2": _bn_params(cout), "conv2": _conv_params(k2, 3, 3, cout, cout)}


def init_up_step(key, cin, mid, cout, mode="transpose"):
    k1, k2, k3 = jax.random.split(key, 3)
    p = {"bn1": _bn_params(cin), "conv1": _conv_params(k1, 3, 3, cin, mid),
         "bn2": _bn_params(mid), "conv2": _conv_params(k2, 3, 3, mid, mid),
         "mode": mode}
    if mode == "transpose":
        p["upconv"] = _convT_params(k3, mid, cout)
    else:
        p["final"] = _conv_params(k3, 1, 1, mid, NUM_CLASSES)
    return p


def init_unet(key, nbr_layers, cs):
    L0, L1, L2 = cs["CHANNELS_L0"], cs["CHANNELS_L1"], cs["CHANNELS_L2"]
    L3, L4 = cs["CHANNELS_L3"], cs["CHANNELS_L4"]
    ks = jax.random.split(key, 7)
    params = {"down1": init_down_step(ks[0], L0, L1),
              "down2": init_down_step(ks[1], L1, L2)}
    if nbr_layers == 2:
        params["center"] = init_up_step(ks[2], L2, L3, L2)
    elif nbr_layers == 3:
        params["down3"] = init_down_step(ks[5], L2, L3)
        params["center"] = init_up_step(ks[2], L3, L4, L3)
        params["up3"] = init_up_step(ks[6], L4, L3, L2)
    else:
        raise ValueError("UNet accepts 2 or 3 layers.")
    params["up2"] = init_up_step(ks[3], L3, L2, L1)
    params["up1"] = init_up_step(ks[4], L2, L1, L0, mode="final")
    return params


# ---------------------------------------------------------------------------

if __name__ == "__main__":
    key = jax.random.PRNGKey(0)
    pkey, xkey = jax.random.split(key)

    nbr_layers = 2
    channels_sizes = {"CHANNELS_L0": 4, "CHANNELS_L1": 8, "CHANNELS_L2": 16,
                      "CHANNELS_L3": 32, "CHANNELS_L4": 64}
    params = init_unet(pkey, nbr_layers, channels_sizes)

    # torch input would be NCHW (2, 4, 16, 16); our kernel layout is NHWC.
    N, H, W = 2, 16, 16
    x = jax.random.normal(xkey, (N, H, W, channels_sizes["CHANNELS_L0"]), jnp.float32)

    ops_tree = pack_unet(params, nbr_layers, N, H, W)
    leaves, treedef = jax.tree_util.tree_flatten(ops_tree)

    fwd = jax.jit(lambda lv, v: unet_apply(lv, treedef, nbr_layers, v))
    out = jax.block_until_ready(fwd(leaves, x))

    assert out.shape == (N, H, W, NUM_CLASSES), out.shape
    assert bool(jnp.all(jnp.isfinite(out)))
    assert bool(jnp.all((out >= 0.0) & (out <= 1.0)))
    print("KERNEL_OK")
</pallas_src>

<mosaic_0001>
module attributes {stable_mosaic.version = 11 : i64} {
  func.func @_unet_kernel(%arg0: memref<32x64xf32, #tpu.memory_space<vmem>>, %arg1: memref<3x64x128xf32, #tpu.memory_space<vmem>>, %arg2: memref<3x128x128xf32, #tpu.memory_space<vmem>>, %arg3: memref<2x128x128xf32, #tpu.memory_space<vmem>>, %arg4: memref<2x8x8xf32, #tpu.memory_space<vmem>>, %arg5: memref<2x16x8xf32, #tpu.memory_space<vmem>>, %arg6: memref<1x128xf32, #tpu.memory_space<vmem>>, %arg7: memref<1x128xf32, #tpu.memory_space<vmem>>, %arg8: memref<2x64xf32, #tpu.memory_space<vmem>>, %arg9: memref<2x128xf32, #tpu.memory_space<vmem>>, %arg10: memref<1x128xf32, #tpu.memory_space<vmem>>, %arg11: memref<3x64x128xf32, #tpu.memory_space<vmem>>, %arg12: memref<3x128x128xf32, #tpu.memory_space<vmem>>, %arg13: memref<2x32x32xf32, #tpu.memory_space<vmem>>, %arg14: memref<2x16x32xf32, #tpu.memory_space<vmem>>, %arg15: memref<2x128x64xf32, #tpu.memory_space<vmem>>, %arg16: memref<1x128xf32, #tpu.memory_space<vmem>>, %arg17: memref<1x128xf32, #tpu.memory_space<vmem>>, %arg18: memref<2x64xf32, #tpu.memory_space<vmem>>, %arg19: memref<2x128xf32, #tpu.memory_space<vmem>>, %arg20: memref<3x64x128xf32, #tpu.memory_space<vmem>>, %arg21: memref<3x128x128xf32, #tpu.memory_space<vmem>>, %arg22: memref<2x16x16xf32, #tpu.memory_space<vmem>>, %arg23: memref<2x8x16xf32, #tpu.memory_space<vmem>>, %arg24: memref<2x128x64xf32, #tpu.memory_space<vmem>>, %arg25: memref<1x128xf32, #tpu.memory_space<vmem>>, %arg26: memref<1x128xf32, #tpu.memory_space<vmem>>, %arg27: memref<2x64xf32, #tpu.memory_space<vmem>>, %arg28: memref<2x128xf32, #tpu.memory_space<vmem>>, %arg29: memref<3x128x128xf32, #tpu.memory_space<vmem>>, %arg30: memref<3x128x128xf32, #tpu.memory_space<vmem>>, %arg31: memref<3x128x128xf32, #tpu.memory_space<vmem>>, %arg32: memref<2x32x32xf32, #tpu.memory_space<vmem>>, %arg33: memref<128x16xf32, #tpu.memory_space<vmem>>, %arg34: memref<1x128xf32, #tpu.memory_space<vmem>>, %arg35: memref<1x128xf32, #tpu.memory_space<vmem>>, %arg36: memref<1x16xf32, #tpu.memory_space<vmem>>, %arg37: memref<2x128xf32, #tpu.memory_space<vmem>>, %arg38: memref<2x128xf32, #tpu.memory_space<vmem>>, %arg39: memref<2x128xf32, #tpu.memory_space<vmem>>, %arg40: memref<3x128x128xf32, #tpu.memory_space<vmem>>, %arg41: memref<3x128x128xf32, #tpu.memory_space<vmem>>, %arg42: memref<3x128x128xf32, #tpu.memory_space<vmem>>, %arg43: memref<2x128x128xf32, #tpu.memory_space<vmem>>, %arg44: memref<2x16x16xf32, #tpu.memory_space<vmem>>, %arg45: memref<2x32x16xf32, #tpu.memory_space<vmem>>, %arg46: memref<1x128xf32, #tpu.memory_space<vmem>>, %arg47: memref<1x128xf32, #tpu.memory_space<vmem>>, %arg48: memref<2x128xf32, #tpu.memory_space<vmem>>, %arg49: memref<2x128xf32, #tpu.memory_space<vmem>>, %arg50: memref<2x128xf32, #tpu.memory_space<vmem>>, %arg51: memref<1x128xf32, #tpu.memory_space<vmem>>, %arg52: memref<32x16xf32, #tpu.memory_space<vmem>>) attributes {dimension_semantics = [], scalar_prefetch = 0 : i64, scratch_operands = 0 : i64, tpu.core_type = #tpu.core_type<tc>} {
    %c0 = arith.constant 0 : index
    %c0_0 = arith.constant 0 : index
    %0 = vector.load %arg0[%c0, %c0_0] : memref<32x64xf32, #tpu.memory_space<vmem>>, vector<32x64xf32>
    %c0_1 = arith.constant 0 : index
    %c0_2 = arith.constant 0 : index
    %1 = vector.load %arg18[%c0_1, %c0_2] : memref<2x64xf32, #tpu.memory_space<vmem>>, vector<1x64xf32>
    %2 = vector.broadcast %1 : vector<1x64xf32> to vector<32x64xf32>
    %3 = arith.mulf %0, %2 : vector<32x64xf32>
    %c1 = arith.constant 1 : index
    %c0_3 = arith.constant 0 : index
    %4 = vector.load %arg18[%c1, %c0_3] : memref<2x64xf32, #tpu.memory_space<vmem>>, vector<1x64xf32>
    %5 = vector.broadcast %4 : vector<1x64xf32> to vector<32x64xf32>
    %6 = arith.addf %3, %5 : vector<32x64xf32>
    %c0_4 = arith.constant 0 : index
    %c0_5 = arith.constant 0 : index
    %c0_6 = arith.constant 0 : index
    %7 = vector.load %arg11[%c0_4, %c0_5, %c0_6] : memref<3x64x128xf32, #tpu.memory_space<vmem>>, vector<1x64x128xf32>
    %8 = vector.shape_cast %7 : vector<1x64x128xf32> to vector<64x128xf32>
    %cst = arith.constant dense<0.000000e+00> : vector<32x128xf32>
    %9 = tpu.matmul %6, %8, %cst {dimension_numbers = #tpu.dot_dimension_numbers<[1], [0], [0], [1], [0, 0, 1, 1], [], []>} : vector<32x64xf32>, vector<64x128xf32>, vector<32x128xf32> -> vector<32x128xf32>
    %c1_7 = arith.constant 1 : index
    %c0_8 = arith.constant 0 : index
    %c0_9 = arith.constant 0 : index
    %10 = vector.load %arg11[%c1_7, %c0_8, %c0_9] : memref<3x64x128xf32, #tpu.memory_space<vmem>>, vector<1x64x128xf32>
    %11 = vector.shape_cast %10 : vector<1x64x128xf32> to vector<64x128xf32>
    %cst_10 = arith.constant dense<0.000000e+00> : vector<32x128xf32>
    %12 = tpu.matmul %6, %11, %cst_10 {dimension_numbers = #tpu.dot_dimension_numbers<[1], [0], [0], [1], [0, 0, 1, 1], [], []>} : vector<32x64xf32>, vector<64x128xf32>, vector<32x128xf32> -> vector<32x128xf32>
    %c2 = arith.constant 2 : index
    %c0_11 = arith.constant 0 : index
    %c0_12 = arith.constant 0 : index
    %13 = vector.load %arg11[%c2, %c0_11, %c0_12] : memref<3x64x128xf32, #tpu.memory_space<vmem>>, vector<1x64x128xf32>
    %14 = vector.shape_cast %13 : vector<1x64x128xf32> to vector<64x128xf32>
    %cst_13 = arith.constant dense<0.000000e+00> : vector<32x128xf32>
    %15 = tpu.matmul %6, %14, %cst_13 {dimension_numbers = #tpu.dot_dimension_numbers<[1], [0], [0], [1], [0, 0, 1, 1], [], []>} : vector<32x64xf32>, vector<64x128xf32>, vector<32x128xf32> -> vector<32x128xf32>
    %c0_14 = arith.constant 0 : index
    %c0_15 = arith.constant 0 : index
    %c0_16 = arith.constant 0 : index
    %16 = vector.load %arg13[%c0_14, %c0_15, %c0_16] : memref<2x32x32xf32, #tpu.memory_space<vmem>>, vector<1x32x32xf32>
    %17 = vector.shape_cast %16 : vector<1x32x32xf32> to vector<32x32xf32>
    %cst_17 = arith.constant dense<0.000000e+00> : vector<32x128xf32>
    %18 = tpu.matmul %17, %9, %cst_17 {dimension_numbers = #tpu.dot_dimension_numbers<[1], [0], [0], [1], [0, 0, 1, 1], [], []>} : vector<32x32xf32>, vector<32x128xf32>, vector<32x128xf32> -> vector<32x128xf32>
    %19 = arith.addf %12, %18 : vector<32x128xf32>
    %c1_18 = arith.constant 1 : index
    %c0_19 = arith.constant 0 : index
    %c0_20 = arith.constant 0 : index
    %20 = vector.load %arg13[%c1_18, %c0_19, %c0_20] : memref<2x32x32xf32, #tpu.memory_space<vmem>>, vector<1x32x32xf32>
    %21 = vector.shape_cast %20 : vector<1x32x32xf32> to vector<32x32xf32>
    %cst_21 = arith.constant dense<0.000000e+00> : vector<32x128xf32>
    %22 = tpu.matmul %21, %15, %cst_21 {dimension_numbers = #tpu.dot_dimension_numbers<[1], [0], [0], [1], [0, 0, 1, 1], [], []>} : vector<32x32xf32>, vector<32x128xf32>, vector<32x128xf32> -> vector<32x128xf32>
    %23 = arith.addf %19, %22 : vector<32x128xf32>
    %c0_22 = arith.constant 0 : index
    %c0_23 = arith.constant 0 : index
    %24 = vector.load %arg16[%c0_22, %c0_23] : memref<1x128xf32, #tpu.memory_space<vmem>>, vector<1x128xf32>
    %25 = vector.broadcast %24 : vector<1x128xf32> to vector<32x128xf32>
    %26 = arith.addf %23, %25 : vector<32x128xf32>
    %cst_24 = arith.constant 0.000000e+00 : f32
    %27 = vector.broadcast %cst_24 : f32 to vector<32x128xf32>
    %28 = arith.maximumf %26, %27 : vector<32x128xf32>
    %c0_25 = arith.constant 0 : index
    %c0_26 = arith.constant 0 : index
    %29 = vector.load %arg19[%c0_25, %c0_26] : memref<2x128xf32, #tpu.memory_space<vmem>>, vector<1x128xf32>
    %30 = vector.broadcast %29 : vector<1x128xf32> to vector<32x128xf32>
    %31 = arith.mulf %28, %30 : vector<32x128xf32>
    %c1_27 = arith.constant 1 : index
    %c0_28 = arith.constant 0 : index
    %32 = vector.load %arg19[%c1_27, %c0_28] : memref<2x128xf32, #tpu.memory_space<vmem>>, vector<1x128xf32>
    %33 = vector.broadcast %32 : vector<1x128xf32> to vector<32x128xf32>
    %34 = arith.addf %31, %33 : vector<32x128xf32>
    %c0_29 = arith.constant 0 : index
    %c0_30 = arith.constant 0 : index
    %c0_31 = arith.constant 0 : index
    %35 = vector.load %arg12[%c0_29, %c0_30, %c0_31] : memref<3x128x128xf32, #tpu.memory_space<vmem>>, vector<1x128x128xf32>
    %36 = vector.shape_cast %35 : vector<1x128x128xf32> to vector<128x128xf32>
    %cst_32 = arith.constant dense<0.000000e+00> : vector<32x128xf32>
    %37 = tpu.matmul %34, %36, %cst_32 {dimension_numbers = #tpu.dot_dimension_numbers<[1], [0], [0], [1], [0, 0, 1, 1], [], []>} : vector<32x128xf32>, vector<128x128xf32>, vector<32x128xf32> -> vector<32x128xf32>
    %c1_33 = arith.constant 1 : index
    %c0_34 = arith.constant 0 : index
    %c0_35 = arith.constant 0 : index
    %38 = vector.load %arg12[%c1_33, %c0_34, %c0_35] : memref<3x128x128xf32, #tpu.memory_space<vmem>>, vector<1x128x128xf32>
    %39 = vector.shape_cast %38 : vector<1x128x128xf32> to vector<128x128xf32>
    %cst_36 = arith.constant dense<0.000000e+00> : vector<32x128xf32>
    %40 = tpu.matmul %34, %39, %cst_36 {dimension_numbers = #tpu.dot_dimension_numbers<[1], [0], [0], [1], [0, 0, 1, 1], [], []>} : vector<32x128xf32>, vector<128x128xf32>, vector<32x128xf32> -> vector<32x128xf32>
    %c2_37 = arith.constant 2 : index
    %c0_38 = arith.constant 0 : index
    %c0_39 = arith.constant 0 : index
    %41 = vector.load %arg12[%c2_37, %c0_38, %c0_39] : memref<3x128x128xf32, #tpu.memory_space<vmem>>, vector<1x128x128xf32>
    %42 = vector.shape_cast %41 : vector<1x128x128xf32> to vector<128x128xf32>
    %cst_40 = arith.constant dense<0.000000e+00> : vector<32x128xf32>
    %43 = tpu.matmul %34, %42, %cst_40 {dimension_numbers = #tpu.dot_dimension_numbers<[1], [0], [0], [1], [0, 0, 1, 1], [], []>} : vector<32x128xf32>, vector<128x128xf32>, vector<32x128xf32> -> vector<32x128xf32>
    %c0_41 = arith.constant 0 : index
    %c0_42 = arith.constant 0 : index
    %c0_43 = arith.constant 0 : index
    %44 = vector.load %arg13[%c0_41, %c0_42, %c0_43] : memref<2x32x32xf32, #tpu.memory_space<vmem>>, vector<1x32x32xf32>
    %45 = vector.shape_cast %44 : vector<1x32x32xf32> to vector<32x32xf32>
    %cst_44 = arith.constant dense<0.000000e+00> : vector<32x128xf32>
    %46 = tpu.matmul %45, %37, %cst_44 {dimension_numbers = #tpu.dot_dimension_numbers<[1], [0], [0], [1], [0, 0, 1, 1], [], []>} : vector<32x32xf32>, vector<32x128xf32>, vector<32x128xf32> -> vector<32x128xf32>
    %47 = arith.addf %40, %46 : vector<32x128xf32>
    %c1_45 = arith.constant 1 : index
    %c0_46 = arith.constant 0 : index
    %c0_47 = arith.constant 0 : index
    %48 = vector.load %arg13[%c1_45, %c0_46, %c0_47] : memref<2x32x32xf32, #tpu.memory_space<vmem>>, vector<1x32x32xf32>
    %49 = vector.shape_cast %48 : vector<1x32x32xf32> to vector<32x32xf32>
    %cst_48 = arith.constant dense<0.000000e+00> : vector<32x128xf32>
    %50 = tpu.matmul %49, %43, %cst_48 {dimension_numbers = #tpu.dot_dimension_numbers<[1], [0], [0], [1], [0, 0, 1, 1], [], []>} : vector<32x32xf32>, vector<32x128xf32>, vector<32x128xf32> -> vector<32x128xf32>
    %51 = arith.addf %47, %50 : vector<32x128xf32>
    %c0_49 = arith.constant 0 : index
    %c0_50 = arith.constant 0 : index
    %52 = vector.load %arg17[%c0_49, %c0_50] : memref<1x128xf32, #tpu.memory_space<vmem>>, vector<1x128xf32>
    %53 = vector.broadcast %52 : vector<1x128xf32> to vector<32x128xf32>
    %54 = arith.addf %51, %53 : vector<32x128xf32>
    %cst_51 = arith.constant 0.000000e+00 : f32
    %55 = vector.broadcast %cst_51 : f32 to vector<32x128xf32>
    %56 = arith.maximumf %54, %55 : vector<32x128xf32>
    %c0_52 = arith.constant 0 : index
    %c0_53 = arith.constant 0 : index
    %c0_54 = arith.constant 0 : index
    %57 = vector.load %arg15[%c0_52, %c0_53, %c0_54] : memref<2x128x64xf32, #tpu.memory_space<vmem>>, vector<1x128x64xf32>
    %58 = vector.shape_cast %57 : vector<1x128x64xf32> to vector<128x64xf32>
    %cst_55 = arith.constant dense<0.000000e+00> : vector<32x64xf32>
    %59 = tpu.matmul %56, %58, %cst_55 {dimension_numbers = #tpu.dot_dimension_numbers<[1], [0], [0], [1], [0, 0, 1, 1], [], []>} : vector<32x128xf32>, vector<128x64xf32>, vector<32x64xf32> -> vector<32x64xf32>
    %c1_56 = arith.constant 1 : index
    %c0_57 = arith.constant 0 : index
    %c0_58 = arith.constant 0 : index
    %60 = vector.load %arg15[%c1_56, %c0_57, %c0_58] : memref<2x128x64xf32, #tpu.memory_space<vmem>>, vector<1x128x64xf32>
    %61 = vector.shape_cast %60 : vector<1x128x64xf32> to vector<128x64xf32>
    %cst_59 = arith.constant dense<0.000000e+00> : vector<32x64xf32>
    %62 = tpu.matmul %56, %61, %cst_59 {dimension_numbers = #tpu.dot_dimension_numbers<[1], [0], [0], [1], [0, 0, 1, 1], [], []>} : vector<32x128xf32>, vector<128x64xf32>, vector<32x64xf32> -> vector<32x64xf32>
    %63 = arith.maximumf %59, %62 : vector<32x64xf32>
    %c0_60 = arith.constant 0 : index
    %c0_61 = arith.constant 0 : index
    %c0_62 = arith.constant 0 : index
    %64 = vector.load %arg14[%c0_60, %c0_61, %c0_62] : memref<2x16x32xf32, #tpu.memory_space<vmem>>, vector<1x16x32xf32>
    %65 = vector.shape_cast %64 : vector<1x16x32xf32> to vector<16x32xf32>
    %cst_63 = arith.constant dense<0.000000e+00> : vector<16x64xf32>
    %66 = tpu.matmul %65, %63, %cst_63 {dimension_numbers = #tpu.dot_dimension_numbers<[1], [0], [0], [1], [0, 0, 1, 1], [], []>} : vector<16x32xf32>, vector<32x64xf32>, vector<16x64xf32> -> vector<16x64xf32>
    %c1_64 = arith.constant 1 : index
    %c0_65 = arith.constant 0 : index
    %c0_66 = arith.constant 0 : index
    %67 = vector.load %arg14[%c1_64, %c0_65, %c0_66] : memref<2x16x32xf32, #tpu.memory_space<vmem>>, vector<1x16x32xf32>
    %68 = vector.shape_cast %67 : vector<1x16x32xf32> to vector<16x32xf32>
    %cst_67 = arith.constant dense<0.000000e+00> : vector<16x64xf32>
    %69 = tpu.matmul %68, %63, %cst_67 {dimension_numbers = #tpu.dot_dimension_numbers<[1], [0], [0], [1], [0, 0, 1, 1], [], []>} : vector<16x32xf32>, vector<32x64xf32>, vector<16x64xf32> -> vector<16x64xf32>
    %70 = arith.maximumf %66, %69 : vector<16x64xf32>
    %c0_68 = arith.constant 0 : index
    %c0_69 = arith.constant 0 : index
    %71 = vector.load %arg27[%c0_68, %c0_69] : memref<2x64xf32, #tpu.memory_space<vmem>>, vector<1x64xf32>
    %72 = vector.broadcast %71 : vector<1x64xf32> to vector<16x64xf32>
    %73 = arith.mulf %70, %72 : vector<16x64xf32>
    %c1_70 = arith.constant 1 : index
    %c0_71 = arith.constant 0 : index
    %74 = vector.load %arg27[%c1_70, %c0_71] : memref<2x64xf32, #tpu.memory_space<vmem>>, vector<1x64xf32>
    %75 = vector.broadcast %74 : vector<1x64xf32> to vector<16x64xf32>
    %76 = arith.addf %73, %75 : vector<16x64xf32>
    %c0_72 = arith.constant 0 : index
    %c0_73 = arith.constant 0 : index
    %c0_74 = arith.constant 0 : index
    %77 = vector.load %arg20[%c0_72, %c0_73, %c0_74] : memref<3x64x128xf32, #tpu.memory_space<vmem>>, vector<1x64x128xf32>
    %78 = vector.shape_cast %77 : vector<1x64x128xf32> to vector<64x128xf32>
    %cst_75 = arith.constant dense<0.000000e+00> : vector<16x128xf32>
    %79 = tpu.matmul %76, %78, %cst_75 {dimension_numbers = #tpu.dot_dimension_numbers<[1], [0], [0], [1], [0, 0, 1, 1], [], []>} : vector<16x64xf32>, vector<64x128xf32>, vector<16x128xf32> -> vector<16x128xf32>
    %c1_76 = arith.constant 1 : index
    %c0_77 = arith.constant 0 : index
    %c0_78 = arith.constant 0 : index
    %80 = vector.load %arg20[%c1_76, %c0_77, %c0_78] : memref<3x64x128xf32, #tpu.memory_space<vmem>>, vector<1x64x128xf32>
    %81 = vector.shape_cast %80 : vector<1x64x128xf32> to vector<64x128xf32>
    %cst_79 = arith.constant dense<0.000000e+00> : vector<16x128xf32>
    %82 = tpu.matmul %76, %81, %cst_79 {dimension_numbers = #tpu.dot_dimension_numbers<[1], [0], [0], [1], [0, 0, 1, 1], [], []>} : vector<16x64xf32>, vector<64x128xf32>, vector<16x128xf32> -> vector<16x128xf32>
    %c2_80 = arith.constant 2 : index
    %c0_81 = arith.constant 0 : index
    %c0_82 = arith.constant 0 : index
    %83 = vector.load %arg20[%c2_80, %c0_81, %c0_82] : memref<3x64x128xf32, #tpu.memory_space<vmem>>, vector<1x64x128xf32>
    %84 = vector.shape_cast %83 : vector<1x64x128xf32> to vector<64x128xf32>
    %cst_83 = arith.constant dense<0.000000e+00> : vector<16x128xf32>
    %85 = tpu.matmul %76, %84, %cst_83 {dimension_numbers = #tpu.dot_dimension_numbers<[1], [0], [0], [1], [0, 0, 1, 1], [], []>} : vector<16x64xf32>, vector<64x128xf32>, vector<16x128xf32> -> vector<16x128xf32>
    %c0_84 = arith.constant 0 : index
    %c0_85 = arith.constant 0 : index
    %c0_86 = arith.constant 0 : index
    %86 = vector.load %arg22[%c0_84, %c0_85, %c0_86] : memref<2x16x16xf32, #tpu.memory_space<vmem>>, vector<1x16x16xf32>
    %87 = vector.shape_cast %86 : vector<1x16x16xf32> to vector<16x16xf32>
    %cst_87 = arith.constant dense<0.000000e+00> : vector<16x128xf32>
    %88 = tpu.matmul %87, %79, %cst_87 {dimension_numbers = #tpu.dot_dimension_numbers<[1], [0], [0], [1], [0, 0, 1, 1], [], []>} : vector<16x16xf32>, vector<16x128xf32>, vector<16x128xf32> -> vector<16x128xf32>
    %89 = arith.addf %82, %88 : vector<16x128xf32>
    %c1_88 = arith.constant 1 : index
    %c0_89 = arith.constant 0 : index
    %c0_90 = arith.constant 0 : index
    %90 = vector.load %arg22[%c1_88, %c0_89, %c0_90] : memref<2x16x16xf32, #tpu.memory_space<vmem>>, vector<1x16x16xf32>
    %91 = vector.shape_cast %90 : vector<1x16x16xf32> to vector<16x16xf32>
    %cst_91 = arith.constant dense<0.000000e+00> : vector<16x128xf32>
    %92 = tpu.matmul %91, %85, %cst_91 {dimension_numbers = #tpu.dot_dimension_numbers<[1], [0], [0], [1], [0, 0, 1, 1], [], []>} : vector<16x16xf32>, vector<16x128xf32>, vector<16x128xf32> -> vector<16x128xf32>
    %93 = arith.addf %89, %92 : vector<16x128xf32>
    %c0_92 = arith.constant 0 : index
    %c0_93 = arith.constant 0 : index
    %94 = vector.load %arg25[%c0_92, %c0_93] : memref<1x128xf32, #tpu.memory_space<vmem>>, vector<1x128xf32>
    %95 = vector.broadcast %94 : vector<1x128xf32> to vector<16x128xf32>
    %96 = arith.addf %93, %95 : vector<16x128xf32>
    %cst_94 = arith.constant 0.000000e+00 : f32
    %97 = vector.broadcast %cst_94 : f32 to vector<16x128xf32>
    %98 = arith.maximumf %96, %97 : vector<16x128xf32>
    %c0_95 = arith.constant 0 : index
    %c0_96 = arith.constant 0 : index
    %99 = vector.load %arg28[%c0_95, %c0_96] : memref<2x128xf32, #tpu.memory_space<vmem>>, vector<1x128xf32>
    %100 = vector.broadcast %99 : vector<1x128xf32> to vector<16x128xf32>
    %101 = arith.mulf %98, %100 : vector<16x128xf32>
    %c1_97 = arith.constant 1 : index
    %c0_98 = arith.constant 0 : index
    %102 = vector.load %arg28[%c1_97, %c0_98] : memref<2x128xf32, #tpu.memory_space<vmem>>, vector<1x128xf32>
    %103 = vector.broadcast %102 : vector<1x128xf32> to vector<16x128xf32>
    %104 = arith.addf %101, %103 : vector<16x128xf32>
    %c0_99 = arith.constant 0 : index
    %c0_100 = arith.constant 0 : index
    %c0_101 = arith.constant 0 : index
    %105 = vector.load %arg21[%c0_99, %c0_100, %c0_101] : memref<3x128x128xf32, #tpu.memory_space<vmem>>, vector<1x128x128xf32>
    %106 = vector.shape_cast %105 : vector<1x128x128xf32> to vector<128x128xf32>
    %cst_102 = arith.constant dense<0.000000e+00> : vector<16x128xf32>
    %107 = tpu.matmul %104, %106, %cst_102 {dimension_numbers = #tpu.dot_dimension_numbers<[1], [0], [0], [1], [0, 0, 1, 1], [], []>} : vector<16x128xf32>, vector<128x128xf32>, vector<16x128xf32> -> vector<16x128xf32>
    %c1_103 = arith.constant 1 : index
    %c0_104 = arith.constant 0 : index
    %c0_105 = arith.constant 0 : index
    %108 = vector.load %arg21[%c1_103, %c0_104, %c0_105] : memref<3x128x128xf32, #tpu.memory_space<vmem>>, vector<1x128x128xf32>
    %109 = vector.shape_cast %108 : vector<1x128x128xf32> to vector<128x128xf32>
    %cst_106 = arith.constant dense<0.000000e+00> : vector<16x128xf32>
    %110 = tpu.matmul %104, %109, %cst_106 {dimension_numbers = #tpu.dot_dimension_numbers<[1], [0], [0], [1], [0, 0, 1, 1], [], []>} : vector<16x128xf32>, vector<128x128xf32>, vector<16x128xf32> -> vector<16x128xf32>
    %c2_107 = arith.constant 2 : index
    %c0_108 = arith.constant 0 : index
    %c0_109 = arith.constant 0 : index
    %111 = vector.load %arg21[%c2_107, %c0_108, %c0_109] : memref<3x128x128xf32, #tpu.memory_space<vmem>>, vector<1x128x128xf32>
    %112 = vector.shape_cast %111 : vector<1x128x128xf32> to vector<128x128xf32>
    %cst_110 = arith.constant dense<0.000000e+00> : vector<16x128xf32>
    %113 = tpu.matmul %104, %112, %cst_110 {dimension_numbers = #tpu.dot_dimension_numbers<[1], [0], [0], [1], [0, 0, 1, 1], [], []>} : vector<16x128xf32>, vector<128x128xf32>, vector<16x128xf32> -> vector<16x128xf32>
    %c0_111 = arith.constant 0 : index
    %c0_112 = arith.constant 0 : index
    %c0_113 = arith.constant 0 : index
    %114 = vector.load %arg22[%c0_111, %c0_112, %c0_113] : memref<2x16x16xf32, #tpu.memory_space<vmem>>, vector<1x16x16xf32>
    %115 = vector.shape_cast %114 : vector<1x16x16xf32> to vector<16x16xf32>
    %cst_114 = arith.constant dense<0.000000e+00> : vector<16x128xf32>
    %116 = tpu.matmul %115, %107, %cst_114 {dimension_numbers = #tpu.dot_dimension_numbers<[1], [0], [0], [1], [0, 0, 1, 1], [], []>} : vector<16x16xf32>, vector<16x128xf32>, vector<16x128xf32> -> vector<16x128xf32>
    %117 = arith.addf %110, %116 : vector<16x128xf32>
    %c1_115 = arith.constant 1 : index
    %c0_116 = arith.constant 0 : index
    %c0_117 = arith.constant 0 : index
    %118 = vector.load %arg22[%c1_115, %c0_116, %c0_117] : memref<2x16x16xf32, #tpu.memory_space<vmem>>, vector<1x16x16xf32>
    %119 = vector.shape_cast %118 : vector<1x16x16xf32> to vector<16x16xf32>
    %cst_118 = arith.constant dense<0.000000e+00> : vector<16x128xf32>
    %120 = tpu.matmul %119, %113, %cst_118 {dimension_numbers = #tpu.dot_dimension_numbers<[1], [0], [0], [1], [0, 0, 1, 1], [], []>} : vector<16x16xf32>, vector<16x128xf32>, vector<16x128xf32> -> vector<16x128xf32>
    %121 = arith.addf %117, %120 : vector<16x128xf32>
    %c0_119 = arith.constant 0 : index
    %c0_120 = arith.constant 0 : index
    %122 = vector.load %arg26[%c0_119, %c0_120] : memref<1x128xf32, #tpu.memory_space<vmem>>, vector<1x128xf32>
    %123 = vector.broadcast %122 : vector<1x128xf32> to vector<16x128xf32>
    %124 = arith.addf %121, %123 : vector<16x128xf32>
    %cst_121 = arith.constant 0.000000e+00 : f32
    %125 = vector.broadcast %cst_121 : f32 to vector<16x128xf32>
    %126 = arith.maximumf %124, %125 : vector<16x128xf32>
    %c0_122 = arith.constant 0 : index
    %c0_123 = arith.constant 0 : index
    %c0_124 = arith.constant 0 : index
    %127 = vector.load %arg24[%c0_122, %c0_123, %c0_124] : memref<2x128x64xf32, #tpu.memory_space<vmem>>, vector<1x128x64xf32>
    %128 = vector.shape_cast %127 : vector<1x128x64xf32> to vector<128x64xf32>
    %cst_125 = arith.constant dense<0.000000e+00> : vector<16x64xf32>
    %129 = tpu.matmul %126, %128, %cst_125 {dimension_numbers = #tpu.dot_dimension_numbers<[1], [0], [0], [1], [0, 0, 1, 1], [], []>} : vector<16x128xf32>, vector<128x64xf32>, vector<16x64xf32> -> vector<16x64xf32>
    %c1_126 = arith.constant 1 : index
    %c0_127 = arith.constant 0 : index
    %c0_128 = arith.constant 0 : index
    %130 = vector.load %arg24[%c1_126, %c0_127, %c0_128] : memref<2x128x64xf32, #tpu.memory_space<vmem>>, vector<1x128x64xf32>
    %131 = vector.shape_cast %130 : vector<1x128x64xf32> to vector<128x64xf32>
    %cst_129 = arith.constant dense<0.000000e+00> : vector<16x64xf32>
    %132 = tpu.matmul %126, %131, %cst_129 {dimension_numbers = #tpu.dot_dimension_numbers<[1], [0], [0], [1], [0, 0, 1, 1], [], []>} : vector<16x128xf32>, vector<128x64xf32>, vector<16x64xf32> -> vector<16x64xf32>
    %133 = arith.maximumf %129, %132 : vector<16x64xf32>
    %c0_130 = arith.constant 0 : index
    %c0_131 = arith.constant 0 : index
    %c0_132 = arith.constant 0 : index
    %134 = vector.load %arg23[%c0_130, %c0_131, %c0_132] : memref<2x8x16xf32, #tpu.memory_space<vmem>>, vector<1x8x16xf32>
    %135 = vector.shape_cast %134 : vector<1x8x16xf32> to vector<8x16xf32>
    %cst_133 = arith.constant dense<0.000000e+00> : vector<8x64xf32>
    %136 = tpu.matmul %135, %133, %cst_133 {dimension_numbers = #tpu.dot_dimension_numbers<[1], [0], [0], [1], [0, 0, 1, 1], [], []>} : vector<8x16xf32>, vector<16x64xf32>, vector<8x64xf32> -> vector<8x64xf32>
    %c1_134 = arith.constant 1 : index
    %c0_135 = arith.constant 0 : index
    %c0_136 = arith.constant 0 : index
    %137 = vector.load %arg23[%c1_134, %c0_135, %c0_136] : memref<2x8x16xf32, #tpu.memory_space<vmem>>, vector<1x8x16xf32>
    %138 = vector.shape_cast %137 : vector<1x8x16xf32> to vector<8x16xf32>
    %cst_137 = arith.constant dense<0.000000e+00> : vector<8x64xf32>
    %139 = tpu.matmul %138, %133, %cst_137 {dimension_numbers = #tpu.dot_dimension_numbers<[1], [0], [0], [1], [0, 0, 1, 1], [], []>} : vector<8x16xf32>, vector<16x64xf32>, vector<8x64xf32> -> vector<8x64xf32>
    %140 = arith.maximumf %136, %139 : vector<8x64xf32>
    %c0_138 = arith.constant 0 : index
    %c0_139 = arith.constant 0 : index
    %141 = vector.load %arg8[%c0_138, %c0_139] : memref<2x64xf32, #tpu.memory_space<vmem>>, vector<1x64xf32>
    %142 = vector.broadcast %141 : vector<1x64xf32> to vector<8x64xf32>
    %143 = arith.mulf %140, %142 : vector<8x64xf32>
    %c1_140 = arith.constant 1 : index
    %c0_141 = arith.constant 0 : index
    %144 = vector.load %arg8[%c1_140, %c0_141] : memref<2x64xf32, #tpu.memory_space<vmem>>, vector<1x64xf32>
    %145 = vector.broadcast %144 : vector<1x64xf32> to vector<8x64xf32>
    %146 = arith.addf %143, %145 : vector<8x64xf32>
    %c0_142 = arith.constant 0 : index
    %c0_143 = arith.constant 0 : index
    %c0_144 = arith.constant 0 : index
    %147 = vector.load %arg1[%c0_142, %c0_143, %c0_144] : memref<3x64x128xf32, #tpu.memory_space<vmem>>, vector<1x64x128xf32>
    %148 = vector.shape_cast %147 : vector<1x64x128xf32> to vector<64x128xf32>
    %cst_145 = arith.constant dense<0.000000e+00> : vector<8x128xf32>
    %149 = tpu.matmul %146, %148, %cst_145 {dimension_numbers = #tpu.dot_dimension_numbers<[1], [0], [0], [1], [0, 0, 1, 1], [], []>} : vector<8x64xf32>, vector<64x128xf32>, vector<8x128xf32> -> vector<8x128xf32>
    %c1_146 = arith.constant 1 : index
    %c0_147 = arith.constant 0 : index
    %c0_148 = arith.constant 0 : index
    %150 = vector.load %arg1[%c1_146, %c0_147, %c0_148] : memref<3x64x128xf32, #tpu.memory_space<vmem>>, vector<1x64x128xf32>
    %151 = vector.shape_cast %150 : vector<1x64x128xf32> to vector<64x128xf32>
    %cst_149 = arith.constant dense<0.000000e+00> : vector<8x128xf32>
    %152 = tpu.matmul %146, %151, %cst_149 {dimension_numbers = #tpu.dot_dimension_numbers<[1], [0], [0], [1], [0, 0, 1, 1], [], []>} : vector<8x64xf32>, vector<64x128xf32>, vector<8x128xf32> -> vector<8x128xf32>
    %c2_150 = arith.constant 2 : index
    %c0_151 = arith.constant 0 : index
    %c0_152 = arith.constant 0 : index
    %153 = vector.load %arg1[%c2_150, %c0_151, %c0_152] : memref<3x64x128xf32, #tpu.memory_space<vmem>>, vector<1x64x128xf32>
    %154 = vector.shape_cast %153 : vector<1x64x128xf32> to vector<64x128xf32>
    %cst_153 = arith.constant dense<0.000000e+00> : vector<8x128xf32>
    %155 = tpu.matmul %146, %154, %cst_153 {dimension_numbers = #tpu.dot_dimension_numbers<[1], [0], [0], [1], [0, 0, 1, 1], [], []>} : vector<8x64xf32>, vector<64x128xf32>, vector<8x128xf32> -> vector<8x128xf32>
    %c0_154 = arith.constant 0 : index
    %c0_155 = arith.constant 0 : index
    %c0_156 = arith.constant 0 : index
    %156 = vector.load %arg4[%c0_154, %c0_155, %c0_156] : memref<2x8x8xf32, #tpu.memory_space<vmem>>, vector<1x8x8xf32>
    %157 = vector.shape_cast %156 : vector<1x8x8xf32> to vector<8x8xf32>
    %cst_157 = arith.constant dense<0.000000e+00> : vector<8x128xf32>
    %158 = tpu.matmul %157, %149, %cst_157 {dimension_numbers = #tpu.dot_dimension_numbers<[1], [0], [0], [1], [0, 0, 1, 1], [], []>} : vector<8x8xf32>, vector<8x128xf32>, vector<8x128xf32> -> vector<8x128xf32>
    %159 = arith.addf %152, %158 : vector<8x128xf32>
    %c1_158 = arith.constant 1 : index
    %c0_159 = arith.constant 0 : index
    %c0_160 = arith.constant 0 : index
    %160 = vector.load %arg4[%c1_158, %c0_159, %c0_160] : memref<2x8x8xf32, #tpu.memory_space<vmem>>, vector<1x8x8xf32>
    %161 = vector.shape_cast %160 : vector<1x8x8xf32> to vector<8x8xf32>
    %cst_161 = arith.constant dense<0.000000e+00> : vector<8x128xf32>
    %162 = tpu.matmul %161, %155, %cst_161 {dimension_numbers = #tpu.dot_dimension_numbers<[1], [0], [0], [1], [0, 0, 1, 1], [], []>} : vector<8x8xf32>, vector<8x128xf32>, vector<8x128xf32> -> vector<8x128xf32>
    %163 = arith.addf %159, %162 : vector<8x128xf32>
    %c0_162 = arith.constant 0 : index
    %c0_163 = arith.constant 0 : index
    %164 = vector.load %arg6[%c0_162, %c0_163] : memref<1x128xf32, #tpu.memory_space<vmem>>, vector<1x128xf32>
    %165 = vector.broadcast %164 : vector<1x128xf32> to vector<8x128xf32>
    %166 = arith.addf %163, %165 : vector<8x128xf32>
    %cst_164 = arith.constant 0.000000e+00 : f32
    %167 = vector.broadcast %cst_164 : f32 to vector<8x128xf32>
    %168 = arith.maximumf %166, %167 : vector<8x128xf32>
    %c0_165 = arith.constant 0 : index
    %c0_166 = arith.constant 0 : index
    %169 = vector.load %arg9[%c0_165, %c0_166] : memref<2x128xf32, #tpu.memory_space<vmem>>, vector<1x128xf32>
    %170 = vector.broadcast %169 : vector<1x128xf32> to vector<8x128xf32>
    %171 = arith.mulf %168, %170 : vector<8x128xf32>
    %c1_167 = arith.constant 1 : index
    %c0_168 = arith.constant 0 : index
    %172 = vector.load %arg9[%c1_167, %c0_168] : memref<2x128xf32, #tpu.memory_space<vmem>>, vector<1x128xf32>
    %173 = vector.broadcast %172 : vector<1x128xf32> to vector<8x128xf32>
    %174 = arith.addf %171, %173 : vector<8x128xf32>
    %c0_169 = arith.constant 0 : index
    %c0_170 = arith.constant 0 : index
    %c0_171 = arith.constant 0 : index
    %175 = vector.load %arg2[%c0_169, %c0_170, %c0_171] : memref<3x128x128xf32, #tpu.memory_space<vmem>>, vector<1x128x128xf32>
    %176 = vector.shape_cast %175 : vector<1x128x128xf32> to vector<128x128xf32>
    %cst_172 = arith.constant dense<0.000000e+00> : vector<8x128xf32>
    %177 = tpu.matmul %174, %176, %cst_172 {dimension_numbers = #tpu.dot_dimension_numbers<[1], [0], [0], [1], [0, 0, 1, 1], [], []>} : vector<8x128xf32>, vector<128x128xf32>, vector<8x128xf32> -> vector<8x128xf32>
    %c1_173 = arith.constant 1 : index
    %c0_174 = arith.constant 0 : index
    %c0_175 = arith.constant 0 : index
    %178 = vector.load %arg2[%c1_173, %c0_174, %c0_175] : memref<3x128x128xf32, #tpu.memory_space<vmem>>, vector<1x128x128xf32>
    %179 = vector.shape_cast %178 : vector<1x128x128xf32> to vector<128x128xf32>
    %cst_176 = arith.constant dense<0.000000e+00> : vector<8x128xf32>
    %180 = tpu.matmul %174, %179, %cst_176 {dimension_numbers = #tpu.dot_dimension_numbers<[1], [0], [0], [1], [0, 0, 1, 1], [], []>} : vector<8x128xf32>, vector<128x128xf32>, vector<8x128xf32> -> vector<8x128xf32>
    %c2_177 = arith.constant 2 : index
    %c0_178 = arith.constant 0 : index
    %c0_179 = arith.constant 0 : index
    %181 = vector.load %arg2[%c2_177, %c0_178, %c0_179] : memref<3x128x128xf32, #tpu.memory_space<vmem>>, vector<1x128x128xf32>
    %182 = vector.shape_cast %181 : vector<1x128x128xf32> to vector<128x128xf32>
    %cst_180 = arith.constant dense<0.000000e+00> : vector<8x128xf32>
    %183 = tpu.matmul %174, %182, %cst_180 {dimension_numbers = #tpu.dot_dimension_numbers<[1], [0], [0], [1], [0, 0, 1, 1], [], []>} : vector<8x128xf32>, vector<128x128xf32>, vector<8x128xf32> -> vector<8x128xf32>
    %c0_181 = arith.constant 0 : index
    %c0_182 = arith.constant 0 : index
    %c0_183 = arith.constant 0 : index
    %184 = vector.load %arg4[%c0_181, %c0_182, %c0_183] : memref<2x8x8xf32, #tpu.memory_space<vmem>>, vector<1x8x8xf32>
    %185 = vector.shape_cast %184 : vector<1x8x8xf32> to vector<8x8xf32>
    %cst_184 = arith.constant dense<0.000000e+00> : vector<8x128xf32>
    %186 = tpu.matmul %185, %177, %cst_184 {dimension_numbers = #tpu.dot_dimension_numbers<[1], [0], [0], [1], [0, 0, 1, 1], [], []>} : vector<8x8xf32>, vector<8x128xf32>, vector<8x128xf32> -> vector<8x128xf32>
    %187 = arith.addf %180, %186 : vector<8x128xf32>
    %c1_185 = arith.constant 1 : index
    %c0_186 = arith.constant 0 : index
    %c0_187 = arith.constant 0 : index
    %188 = vector.load %arg4[%c1_185, %c0_186, %c0_187] : memref<2x8x8xf32, #tpu.memory_space<vmem>>, vector<1x8x8xf32>
    %189 = vector.shape_cast %188 : vector<1x8x8xf32> to vector<8x8xf32>
    %cst_188 = arith.constant dense<0.000000e+00> : vector<8x128xf32>
    %190 = tpu.matmul %189, %183, %cst_188 {dimension_numbers = #tpu.dot_dimension_numbers<[1], [0], [0], [1], [0, 0, 1, 1], [], []>} : vector<8x8xf32>, vector<8x128xf32>, vector<8x128xf32> -> vector<8x128xf32>
    %191 = arith.addf %187, %190 : vector<8x128xf32>
    %c0_189 = arith.constant 0 : index
    %c0_190 = arith.constant 0 : index
    %192 = vector.load %arg7[%c0_189, %c0_190] : memref<1x128xf32, #tpu.memory_space<vmem>>, vector<1x128xf32>
    %193 = vector.broadcast %192 : vector<1x128xf32> to vector<8x128xf32>
    %194 = arith.addf %191, %193 : vector<8x128xf32>
    %cst_191 = arith.constant 0.000000e+00 : f32
    %195 = vector.broadcast %cst_191 : f32 to vector<8x128xf32>
    %196 = arith.maximumf %194, %195 : vector<8x128xf32>
    %c0_192 = arith.constant 0 : index
    %c0_193 = arith.constant 0 : index
    %c0_194 = arith.constant 0 : index
    %197 = vector.load %arg3[%c0_192, %c0_193, %c0_194] : memref<2x128x128xf32, #tpu.memory_space<vmem>>, vector<1x128x128xf32>
    %198 = vector.shape_cast %197 : vector<1x128x128xf32> to vector<128x128xf32>
    %cst_195 = arith.constant dense<0.000000e+00> : vector<8x128xf32>
    %199 = tpu.matmul %196, %198, %cst_195 {dimension_numbers = #tpu.dot_dimension_numbers<[1], [0], [0], [1], [0, 0, 1, 1], [], []>} : vector<8x128xf32>, vector<128x128xf32>, vector<8x128xf32> -> vector<8x128xf32>
    %c1_196 = arith.constant 1 : index
    %c0_197 = arith.constant 0 : index
    %c0_198 = arith.constant 0 : index
    %200 = vector.load %arg3[%c1_196, %c0_197, %c0_198] : memref<2x128x128xf32, #tpu.memory_space<vmem>>, vector<1x128x128xf32>
    %201 = vector.shape_cast %200 : vector<1x128x128xf32> to vector<128x128xf32>
    %cst_199 = arith.constant dense<0.000000e+00> : vector<8x128xf32>
    %202 = tpu.matmul %196, %201, %cst_199 {dimension_numbers = #tpu.dot_dimension_numbers<[1], [0], [0], [1], [0, 0, 1, 1], [], []>} : vector<8x128xf32>, vector<128x128xf32>, vector<8x128xf32> -> vector<8x128xf32>
    %c0_200 = arith.constant 0 : index
    %c0_201 = arith.constant 0 : index
    %c0_202 = arith.constant 0 : index
    %203 = vector.load %arg5[%c0_200, %c0_201, %c0_202] : memref<2x16x8xf32, #tpu.memory_space<vmem>>, vector<1x16x8xf32>
    %204 = vector.shape_cast %203 : vector<1x16x8xf32> to vector<16x8xf32>
    %cst_203 = arith.constant dense<0.000000e+00> : vector<16x128xf32>
    %205 = tpu.matmul %204, %199, %cst_203 {dimension_numbers = #tpu.dot_dimension_numbers<[1], [0], [0], [1], [0, 0, 1, 1], [], []>} : vector<16x8xf32>, vector<8x128xf32>, vector<16x128xf32> -> vector<16x128xf32>
    %c1_204 = arith.constant 1 : index
    %c0_205 = arith.constant 0 : index
    %c0_206 = arith.constant 0 : index
    %206 = vector.load %arg5[%c1_204, %c0_205, %c0_206] : memref<2x16x8xf32, #tpu.memory_space<vmem>>, vector<1x16x8xf32>
    %207 = vector.shape_cast %206 : vector<1x16x8xf32> to vector<16x8xf32>
    %cst_207 = arith.constant dense<0.000000e+00> : vector<16x128xf32>
    %208 = tpu.matmul %207, %202, %cst_207 {dimension_numbers = #tpu.dot_dimension_numbers<[1], [0], [0], [1], [0, 0, 1, 1], [], []>} : vector<16x8xf32>, vector<8x128xf32>, vector<16x128xf32> -> vector<16x128xf32>
    %209 = arith.addf %205, %208 : vector<16x128xf32>
    %c0_208 = arith.constant 0 : index
    %c0_209 = arith.constant 0 : index
    %210 = vector.load %arg10[%c0_208, %c0_209] : memref<1x128xf32, #tpu.memory_space<vmem>>, vector<1x128xf32>
    %211 = vector.broadcast %210 : vector<1x128xf32> to vector<16x128xf32>
    %212 = arith.addf %209, %211 : vector<16x128xf32>
    %c0_210 = arith.constant 0 : index
    %c0_211 = arith.constant 0 : index
    %213 = vector.load %arg48[%c0_210, %c0_211] : memref<2x128xf32, #tpu.memory_space<vmem>>, vector<1x128xf32>
    %214 = vector.broadcast %213 : vector<1x128xf32> to vector<16x128xf32>
    %215 = arith.mulf %212, %214 : vector<16x128xf32>
    %c1_212 = arith.constant 1 : index
    %c0_213 = arith.constant 0 : index
    %216 = vector.load %arg48[%c1_212, %c0_213] : memref<2x128xf32, #tpu.memory_space<vmem>>, vector<1x128xf32>
    %217 = vector.broadcast %216 : vector<1x128xf32> to vector<16x128xf32>
    %218 = arith.addf %215, %217 : vector<16x128xf32>
    %c0_214 = arith.constant 0 : index
    %c0_215 = arith.constant 0 : index
    %219 = vector.load %arg49[%c0_214, %c0_215] : memref<2x128xf32, #tpu.memory_space<vmem>>, vector<1x128xf32>
    %220 = vector.broadcast %219 : vector<1x128xf32> to vector<16x128xf32>
    %221 = arith.mulf %126, %220 : vector<16x128xf32>
    %c1_216 = arith.constant 1 : index
    %c0_217 = arith.constant 0 : index
    %222 = vector.load %arg49[%c1_216, %c0_217] : memref<2x128xf32, #tpu.memory_space<vmem>>, vector<1x128xf32>
    %223 = vector.broadcast %222 : vector<1x128xf32> to vector<16x128xf32>
    %224 = arith.addf %221, %223 : vector<16x128xf32>
    %c0_218 = arith.constant 0 : index
    %c0_219 = arith.constant 0 : index
    %c0_220 = arith.constant 0 : index
    %225 = vector.load %arg40[%c0_218, %c0_219, %c0_220] : memref<3x128x128xf32, #tpu.memory_space<vmem>>, vector<1x128x128xf32>
    %226 = vector.shape_cast %225 : vector<1x128x128xf32> to vector<128x128xf32>
    %cst_221 = arith.constant dense<0.000000e+00> : vector<16x128xf32>
    %227 = tpu.matmul %218, %226, %cst_221 {dimension_numbers = #tpu.dot_dimension_numbers<[1], [0], [0], [1], [0, 0, 1, 1], [], []>} : vector<16x128xf32>, vector<128x128xf32>, vector<16x128xf32> -> vector<16x128xf32>
    %c0_222 = arith.constant 0 : index
    %c0_223 = arith.constant 0 : index
    %c0_224 = arith.constant 0 : index
    %228 = vector.load %arg41[%c0_222, %c0_223, %c0_224] : memref<3x128x128xf32, #tpu.memory_space<vmem>>, vector<1x128x128xf32>
    %229 = vector.shape_cast %228 : vector<1x128x128xf32> to vector<128x128xf32>
    %cst_225 = arith.constant dense<0.000000e+00> : vector<16x128xf32>
    %230 = tpu.matmul %224, %229, %cst_225 {dimension_numbers = #tpu.dot_dimension_numbers<[1], [0], [0], [1], [0, 0, 1, 1], [], []>} : vector<16x128xf32>, vector<128x128xf32>, vector<16x128xf32> -> vector<16x128xf32>
    %231 = arith.addf %227, %230 : vector<16x128xf32>
    %c1_226 = arith.constant 1 : index
    %c0_227 = arith.constant 0 : index
    %c0_228 = arith.constant 0 : index
    %232 = vector.load %arg40[%c1_226, %c0_227, %c0_228] : memref<3x128x128xf32, #tpu.memory_space<vmem>>, vector<1x128x128xf32>
    %233 = vector.shape_cast %232 : vector<1x128x128xf32> to vector<128x128xf32>
    %cst_229 = arith.constant dense<0.000000e+00> : vector<16x128xf32>
    %234 = tpu.matmul %218, %233, %cst_229 {dimension_numbers = #tpu.dot_dimension_numbers<[1], [0], [0], [1], [0, 0, 1, 1], [], []>} : vector<16x128xf32>, vector<128x128xf32>, vector<16x128xf32> -> vector<16x128xf32>
    %c1_230 = arith.constant 1 : index
    %c0_231 = arith.constant 0 : index
    %c0_232 = arith.constant 0 : index
    %235 = vector.load %arg41[%c1_230, %c0_231, %c0_232] : memref<3x128x128xf32, #tpu.memory_space<vmem>>, vector<1x128x128xf32>
    %236 = vector.shape_cast %235 : vector<1x128x128xf32> to vector<128x128xf32>
    %cst_233 = arith.constant dense<0.000000e+00> : vector<16x128xf32>
    %237 = tpu.matmul %224, %236, %cst_233 {dimension_numbers = #tpu.dot_dimension_numbers<[1], [0], [0], [1], [0, 0, 1, 1], [], []>} : vector<16x128xf32>, vector<128x128xf32>, vector<16x128xf32> -> vector<16x128xf32>
    %238 = arith.addf %234, %237 : vector<16x128xf32>
    %c2_234 = arith.constant 2 : index
    %c0_235 = arith.constant 0 : index
    %c0_236 = arith.constant 0 : index
    %239 = vector.load %arg40[%c2_234, %c0_235, %c0_236] : memref<3x128x128xf32, #tpu.memory_space<vmem>>, vector<1x128x128xf32>
    %240 = vector.shape_cast %239 : vector<1x128x128xf32> to vector<128x128xf32>
    %cst_237 = arith.constant dense<0.000000e+00> : vector<16x128xf32>
    %241 = tpu.matmul %218, %240, %cst_237 {dimension_numbers = #tpu.dot_dimension_numbers<[1], [0], [0], [1], [0, 0, 1, 1], [], []>} : vector<16x128xf32>, vector<128x128xf32>, vector<16x128xf32> -> vector<16x128xf32>
    %c2_238 = arith.constant 2 : index
    %c0_239 = arith.constant 0 : index
    %c0_240 = arith.constant 0 : index
    %242 = vector.load %arg41[%c2_238, %c0_239, %c0_240] : memref<3x128x128xf32, #tpu.memory_space<vmem>>, vector<1x128x128xf32>
    %243 = vector.shape_cast %242 : vector<1x128x128xf32> to vector<128x128xf32>
    %cst_241 = arith.constant dense<0.000000e+00> : vector<16x128xf32>
    %244 = tpu.matmul %224, %243, %cst_241 {dimension_numbers = #tpu.dot_dimension_numbers<[1], [0], [0], [1], [0, 0, 1, 1], [], []>} : vector<16x128xf32>, vector<128x128xf32>, vector<16x128xf32> -> vector<16x128xf32>
    %245 = arith.addf %241, %244 : vector<16x128xf32>
    %c0_242 = arith.constant 0 : index
    %c0_243 = arith.constant 0 : index
    %c0_244 = arith.constant 0 : index
    %246 = vector.load %arg44[%c0_242, %c0_243, %c0_244] : memref<2x16x16xf32, #tpu.memory_space<vmem>>, vector<1x16x16xf32>
    %247 = vector.shape_cast %246 : vector<1x16x16xf32> to vector<16x16xf32>
    %cst_245 = arith.constant dense<0.000000e+00> : vector<16x128xf32>
    %248 = tpu.matmul %247, %231, %cst_245 {dimension_numbers = #tpu.dot_dimension_numbers<[1], [0], [0], [1], [0, 0, 1, 1], [], []>} : vector<16x16xf32>, vector<16x128xf32>, vector<16x128xf32> -> vector<16x128xf32>
    %249 = arith.addf %238, %248 : vector<16x128xf32>
    %c1_246 = arith.constant 1 : index
    %c0_247 = arith.constant 0 : index
    %c0_248 = arith.constant 0 : index
    %250 = vector.load %arg44[%c1_246, %c0_247, %c0_248] : memref<2x16x16xf32, #tpu.memory_space<vmem>>, vector<1x16x16xf32>
    %251 = vector.shape_cast %250 : vector<1x16x16xf32> to vector<16x16xf32>
    %cst_249 = arith.constant dense<0.000000e+00> : vector<16x128xf32>
    %252 = tpu.matmul %251, %245, %cst_249 {dimension_numbers = #tpu.dot_dimension_numbers<[1], [0], [0], [1], [0, 0, 1, 1], [], []>} : vector<16x16xf32>, vector<16x128xf32>, vector<16x128xf32> -> vector<16x128xf32>
    %253 = arith.addf %249, %252 : vector<16x128xf32>
    %c0_250 = arith.constant 0 : index
    %c0_251 = arith.constant 0 : index
    %254 = vector.load %arg46[%c0_250, %c0_251] : memref<1x128xf32, #tpu.memory_space<vmem>>, vector<1x128xf32>
    %255 = vector.broadcast %254 : vector<1x128xf32> to vector<16x128xf32>
    %256 = arith.addf %253, %255 : vector<16x128xf32>
    %cst_252 = arith.constant 0.000000e+00 : f32
    %257 = vector.broadcast %cst_252 : f32 to vector<16x128xf32>
    %258 = arith.maximumf %256, %257 : vector<16x128xf32>
    %c0_253 = arith.constant 0 : index
    %c0_254 = arith.constant 0 : index
    %259 = vector.load %arg50[%c0_253, %c0_254] : memref<2x128xf32, #tpu.memory_space<vmem>>, vector<1x128xf32>
    %260 = vector.broadcast %259 : vector<1x128xf32> to vector<16x128xf32>
    %261 = arith.mulf %258, %260 : vector<16x128xf32>
    %c1_255 = arith.constant 1 : index
    %c0_256 = arith.constant 0 : index
    %262 = vector.load %arg50[%c1_255, %c0_256] : memref<2x128xf32, #tpu.memory_space<vmem>>, vector<1x128xf32>
    %263 = vector.broadcast %262 : vector<1x128xf32> to vector<16x128xf32>
    %264 = arith.addf %261, %263 : vector<16x128xf32>
    %c0_257 = arith.constant 0 : index
    %c0_258 = arith.constant 0 : index
    %c0_259 = arith.constant 0 : index
    %265 = vector.load %arg42[%c0_257, %c0_258, %c0_259] : memref<3x128x128xf32, #tpu.memory_space<vmem>>, vector<1x128x128xf32>
    %266 = vector.shape_cast %265 : vector<1x128x128xf32> to vector<128x128xf32>
    %cst_260 = arith.constant dense<0.000000e+00> : vector<16x128xf32>
    %267 = tpu.matmul %264, %266, %cst_260 {dimension_numbers = #tpu.dot_dimension_numbers<[1], [0], [0], [1], [0, 0, 1, 1], [], []>} : vector<16x128xf32>, vector<128x128xf32>, vector<16x128xf32> -> vector<16x128xf32>
    %c1_261 = arith.constant 1 : index
    %c0_262 = arith.constant 0 : index
    %c0_263 = arith.constant 0 : index
    %268 = vector.load %arg42[%c1_261, %c0_262, %c0_263] : memref<3x128x128xf32, #tpu.memory_space<vmem>>, vector<1x128x128xf32>
    %269 = vector.shape_cast %268 : vector<1x128x128xf32> to vector<128x128xf32>
    %cst_264 = arith.constant dense<0.000000e+00> : vector<16x128xf32>
    %270 = tpu.matmul %264, %269, %cst_264 {dimension_numbers = #tpu.dot_dimension_numbers<[1], [0], [0], [1], [0, 0, 1, 1], [], []>} : vector<16x128xf32>, vector<128x128xf32>, vector<16x128xf32> -> vector<16x128xf32>
    %c2_265 = arith.constant 2 : index
    %c0_266 = arith.constant 0 : index
    %c0_267 = arith.constant 0 : index
    %271 = vector.load %arg42[%c2_265, %c0_266, %c0_267] : memref<3x128x128xf32, #tpu.memory_space<vmem>>, vector<1x128x128xf32>
    %272 = vector.shape_cast %271 : vector<1x128x128xf32> to vector<128x128xf32>
    %cst_268 = arith.constant dense<0.000000e+00> : vector<16x128xf32>
    %273 = tpu.matmul %264, %272, %cst_268 {dimension_numbers = #tpu.dot_dimension_numbers<[1], [0], [0], [1], [0, 0, 1, 1], [], []>} : vector<16x128xf32>, vector<128x128xf32>, vector<16x128xf32> -> vector<16x128xf32>
    %c0_269 = arith.constant 0 : index
    %c0_270 = arith.constant 0 : index
    %c0_271 = arith.constant 0 : index
    %274 = vector.load %arg44[%c0_269, %c0_270, %c0_271] : memref<2x16x16xf32, #tpu.memory_space<vmem>>, vector<1x16x16xf32>
    %275 = vector.shape_cast %274 : vector<1x16x16xf32> to vector<16x16xf32>
    %cst_272 = arith.constant dense<0.000000e+00> : vector<16x128xf32>
    %276 = tpu.matmul %275, %267, %cst_272 {dimension_numbers = #tpu.dot_dimension_numbers<[1], [0], [0], [1], [0, 0, 1, 1], [], []>} : vector<16x16xf32>, vector<16x128xf32>, vector<16x128xf32> -> vector<16x128xf32>
    %277 = arith.addf %270, %276 : vector<16x128xf32>
    %c1_273 = arith.constant 1 : index
    %c0_274 = arith.constant 0 : index
    %c0_275 = arith.constant 0 : index
    %278 = vector.load %arg44[%c1_273, %c0_274, %c0_275] : memref<2x16x16xf32, #tpu.memory_space<vmem>>, vector<1x16x16xf32>
    %279 = vector.shape_cast %278 : vector<1x16x16xf32> to vector<16x16xf32>
    %cst_276 = arith.constant dense<0.000000e+00> : vector<16x128xf32>
    %280 = tpu.matmul %279, %273, %cst_276 {dimension_numbers = #tpu.dot_dimension_numbers<[1], [0], [0], [1], [0, 0, 1, 1], [], []>} : vector<16x16xf32>, vector<16x128xf32>, vector<16x128xf32> -> vector<16x128xf32>
    %281 = arith.addf %277, %280 : vector<16x128xf32>
    %c0_277 = arith.constant 0 : index
    %c0_278 = arith.constant 0 : index
    %282 = vector.load %arg47[%c0_277, %c0_278] : memref<1x128xf32, #tpu.memory_space<vmem>>, vector<1x128xf32>
    %283 = vector.broadcast %282 : vector<1x128xf32> to vector<16x128xf32>
    %284 = arith.addf %281, %283 : vector<16x128xf32>
    %cst_279 = arith.constant 0.000000e+00 : f32
    %285 = vector.broadcast %cst_279 : f32 to vector<16x128xf32>
    %286 = arith.maximumf %284, %285 : vector<16x128xf32>
    %c0_280 = arith.constant 0 : index
    %c0_281 = arith.constant 0 : index
    %c0_282 = arith.constant 0 : index
    %287 = vector.load %arg43[%c0_280, %c0_281, %c0_282] : memref<2x128x128xf32, #tpu.memory_space<vmem>>, vector<1x128x128xf32>
    %288 = vector.shape_cast %287 : vector<1x128x128xf32> to vector<128x128xf32>
    %cst_283 = arith.constant dense<0.000000e+00> : vector<16x128xf32>
    %289 = tpu.matmul %286, %288, %cst_283 {dimension_numbers = #tpu.dot_dimension_numbers<[1], [0], [0], [1], [0, 0, 1, 1], [], []>} : vector<16x128xf32>, vector<128x128xf32>, vector<16x128xf32> -> vector<16x128xf32>
    %c1_284 = arith.constant 1 : index
    %c0_285 = arith.constant 0 : index
    %c0_286 = arith.constant 0 : index
    %290 = vector.load %arg43[%c1_284, %c0_285, %c0_286] : memref<2x128x128xf32, #tpu.memory_space<vmem>>, vector<1x128x128xf32>
    %291 = vector.shape_cast %290 : vector<1x128x128xf32> to vector<128x128xf32>
    %cst_287 = arith.constant dense<0.000000e+00> : vector<16x128xf32>
    %292 = tpu.matmul %286, %291, %cst_287 {dimension_numbers = #tpu.dot_dimension_numbers<[1], [0], [0], [1], [0, 0, 1, 1], [], []>} : vector<16x128xf32>, vector<128x128xf32>, vector<16x128xf32> -> vector<16x128xf32>
    %c0_288 = arith.constant 0 : index
    %c0_289 = arith.constant 0 : index
    %c0_290 = arith.constant 0 : index
    %293 = vector.load %arg45[%c0_288, %c0_289, %c0_290] : memref<2x32x16xf32, #tpu.memory_space<vmem>>, vector<1x32x16xf32>
    %294 = vector.shape_cast %293 : vector<1x32x16xf32> to vector<32x16xf32>
    %cst_291 = arith.constant dense<0.000000e+00> : vector<32x128xf32>
    %295 = tpu.matmul %294, %289, %cst_291 {dimension_numbers = #tpu.dot_dimension_numbers<[1], [0], [0], [1], [0, 0, 1, 1], [], []>} : vector<32x16xf32>, vector<16x128xf32>, vector<32x128xf32> -> vector<32x128xf32>
    %c1_292 = arith.constant 1 : index
    %c0_293 = arith.constant 0 : index
    %c0_294 = arith.constant 0 : index
    %296 = vector.load %arg45[%c1_292, %c0_293, %c0_294] : memref<2x32x16xf32, #tpu.memory_space<vmem>>, vector<1x32x16xf32>
    %297 = vector.shape_cast %296 : vector<1x32x16xf32> to vector<32x16xf32>
    %cst_295 = arith.constant dense<0.000000e+00> : vector<32x128xf32>
    %298 = tpu.matmul %297, %292, %cst_295 {dimension_numbers = #tpu.dot_dimension_numbers<[1], [0], [0], [1], [0, 0, 1, 1], [], []>} : vector<32x16xf32>, vector<16x128xf32>, vector<32x128xf32> -> vector<32x128xf32>
    %299 = arith.addf %295, %298 : vector<32x128xf32>
    %c0_296 = arith.constant 0 : index
    %c0_297 = arith.constant 0 : index
    %300 = vector.load %arg51[%c0_296, %c0_297] : memref<1x128xf32, #tpu.memory_space<vmem>>, vector<1x128xf32>
    %301 = vector.broadcast %300 : vector<1x128xf32> to vector<32x128xf32>
    %302 = arith.addf %299, %301 : vector<32x128xf32>
    %c0_298 = arith.constant 0 : index
    %c0_299 = arith.constant 0 : index
    %303 = vector.load %arg37[%c0_298, %c0_299] : memref<2x128xf32, #tpu.memory_space<vmem>>, vector<1x128xf32>
    %304 = vector.broadcast %303 : vector<1x128xf32> to vector<32x128xf32>
    %305 = arith.mulf %302, %304 : vector<32x128xf32>
    %c1_300 = arith.constant 1 : index
    %c0_301 = arith.constant 0 : index
    %306 = vector.load %arg37[%c1_300, %c0_301] : memref<2x128xf32, #tpu.memory_space<vmem>>, vector<1x128xf32>
    %307 = vector.broadcast %306 : vector<1x128xf32> to vector<32x128xf32>
    %308 = arith.addf %305, %307 : vector<32x128xf32>
    %c0_302 = arith.constant 0 : index
    %c0_303 = arith.constant 0 : index
    %309 = vector.load %arg38[%c0_302, %c0_303] : memref<2x128xf32, #tpu.memory_space<vmem>>, vector<1x128xf32>
    %310 = vector.broadcast %309 : vector<1x128xf32> to vector<32x128xf32>
    %311 = arith.mulf %56, %310 : vector<32x128xf32>
    %c1_304 = arith.constant 1 : index
    %c0_305 = arith.constant 0 : index
    %312 = vector.load %arg38[%c1_304, %c0_305] : memref<2x128xf32, #tpu.memory_space<vmem>>, vector<1x128xf32>
    %313 = vector.broadcast %312 : vector<1x128xf32> to vector<32x128xf32>
    %314 = arith.addf %311, %313 : vector<32x128xf32>
    %c0_306 = arith.constant 0 : index
    %c0_307 = arith.constant 0 : index
    %c0_308 = arith.constant 0 : index
    %315 = vector.load %arg29[%c0_306, %c0_307, %c0_308] : memref<3x128x128xf32, #tpu.memory_space<vmem>>, vector<1x128x128xf32>
    %316 = vector.shape_cast %315 : vector<1x128x128xf32> to vector<128x128xf32>
    %cst_309 = arith.constant dense<0.000000e+00> : vector<32x128xf32>
    %317 = tpu.matmul %308, %316, %cst_309 {dimension_numbers = #tpu.dot_dimension_numbers<[1], [0], [0], [1], [0, 0, 1, 1], [], []>} : vector<32x128xf32>, vector<128x128xf32>, vector<32x128xf32> -> vector<32x128xf32>
    %c0_310 = arith.constant 0 : index
    %c0_311 = arith.constant 0 : index
    %c0_312 = arith.constant 0 : index
    %318 = vector.load %arg30[%c0_310, %c0_311, %c0_312] : memref<3x128x128xf32, #tpu.memory_space<vmem>>, vector<1x128x128xf32>
    %319 = vector.shape_cast %318 : vector<1x128x128xf32> to vector<128x128xf32>
    %cst_313 = arith.constant dense<0.000000e+00> : vector<32x128xf32>
    %320 = tpu.matmul %314, %319, %cst_313 {dimension_numbers = #tpu.dot_dimension_numbers<[1], [0], [0], [1], [0, 0, 1, 1], [], []>} : vector<32x128xf32>, vector<128x128xf32>, vector<32x128xf32> -> vector<32x128xf32>
    %321 = arith.addf %317, %320 : vector<32x128xf32>
    %c1_314 = arith.constant 1 : index
    %c0_315 = arith.constant 0 : index
    %c0_316 = arith.constant 0 : index
    %322 = vector.load %arg29[%c1_314, %c0_315, %c0_316] : memref<3x128x128xf32, #tpu.memory_space<vmem>>, vector<1x128x128xf32>
    %323 = vector.shape_cast %322 : vector<1x128x128xf32> to vector<128x128xf32>
    %cst_317 = arith.constant dense<0.000000e+00> : vector<32x128xf32>
    %324 = tpu.matmul %308, %323, %cst_317 {dimension_numbers = #tpu.dot_dimension_numbers<[1], [0], [0], [1], [0, 0, 1, 1], [], []>} : vector<32x128xf32>, vector<128x128xf32>, vector<32x128xf32> -> vector<32x128xf32>
    %c1_318 = arith.constant 1 : index
    %c0_319 = arith.constant 0 : index
    %c0_320 = arith.constant 0 : index
    %325 = vector.load %arg30[%c1_318, %c0_319, %c0_320] : memref<3x128x128xf32, #tpu.memory_space<vmem>>, vector<1x128x128xf32>
    %326 = vector.shape_cast %325 : vector<1x128x128xf32> to vector<128x128xf32>
    %cst_321 = arith.constant dense<0.000000e+00> : vector<32x128xf32>
    %327 = tpu.matmul %314, %326, %cst_321 {dimension_numbers = #tpu.dot_dimension_numbers<[1], [0], [0], [1], [0, 0, 1, 1], [], []>} : vector<32x128xf32>, vector<128x128xf32>, vector<32x128xf32> -> vector<32x128xf32>
    %328 = arith.addf %324, %327 : vector<32x128xf32>
    %c2_322 = arith.constant 2 : index
    %c0_323 = arith.constant 0 : index
    %c0_324 = arith.constant 0 : index
    %329 = vector.load %arg29[%c2_322, %c0_323, %c0_324] : memref<3x128x128xf32, #tpu.memory_space<vmem>>, vector<1x128x128xf32>
    %330 = vector.shape_cast %329 : vector<1x128x128xf32> to vector<128x128xf32>
    %cst_325 = arith.constant dense<0.000000e+00> : vector<32x128xf32>
    %331 = tpu.matmul %308, %330, %cst_325 {dimension_numbers = #tpu.dot_dimension_numbers<[1], [0], [0], [1], [0, 0, 1, 1], [], []>} : vector<32x128xf32>, vector<128x128xf32>, vector<32x128xf32> -> vector<32x128xf32>
    %c2_326 = arith.constant 2 : index
    %c0_327 = arith.constant 0 : index
    %c0_328 = arith.constant 0 : index
    %332 = vector.load %arg30[%c2_326, %c0_327, %c0_328] : memref<3x128x128xf32, #tpu.memory_space<vmem>>, vector<1x128x128xf32>
    %333 = vector.shape_cast %332 : vector<1x128x128xf32> to vector<128x128xf32>
    %cst_329 = arith.constant dense<0.000000e+00> : vector<32x128xf32>
    %334 = tpu.matmul %314, %333, %cst_329 {dimension_numbers = #tpu.dot_dimension_numbers<[1], [0], [0], [1], [0, 0, 1, 1], [], []>} : vector<32x128xf32>, vector<128x128xf32>, vector<32x128xf32> -> vector<32x128xf32>
    %335 = arith.addf %331, %334 : vector<32x128xf32>
    %c0_330 = arith.constant 0 : index
    %c0_331 = arith.constant 0 : index
    %c0_332 = arith.constant 0 : index
    %336 = vector.load %arg32[%c0_330, %c0_331, %c0_332] : memref<2x32x32xf32, #tpu.memory_space<vmem>>, vector<1x32x32xf32>
    %337 = vector.shape_cast %336 : vector<1x32x32xf32> to vector<32x32xf32>
    %cst_333 = arith.constant dense<0.000000e+00> : vector<32x128xf32>
    %338 = tpu.matmul %337, %321, %cst_333 {dimension_numbers = #tpu.dot_dimension_numbers<[1], [0], [0], [1], [0, 0, 1, 1], [], []>} : vector<32x32xf32>, vector<32x128xf32>, vector<32x128xf32> -> vector<32x128xf32>
    %339 = arith.addf %328, %338 : vector<32x128xf32>
    %c1_334 = arith.constant 1 : index
    %c0_335 = arith.constant 0 : index
    %c0_336 = arith.constant 0 : index
    %340 = vector.load %arg32[%c1_334, %c0_335, %c0_336] : memref<2x32x32xf32, #tpu.memory_space<vmem>>, vector<1x32x32xf32>
    %341 = vector.shape_cast %340 : vector<1x32x32xf32> to vector<32x32xf32>
    %cst_337 = arith.constant dense<0.000000e+00> : vector<32x128xf32>
    %342 = tpu.matmul %341, %335, %cst_337 {dimension_numbers = #tpu.dot_dimension_numbers<[1], [0], [0], [1], [0, 0, 1, 1], [], []>} : vector<32x32xf32>, vector<32x128xf32>, vector<32x128xf32> -> vector<32x128xf32>
    %343 = arith.addf %339, %342 : vector<32x128xf32>
    %c0_338 = arith.constant 0 : index
    %c0_339 = arith.constant 0 : index
    %344 = vector.load %arg34[%c0_338, %c0_339] : memref<1x128xf32, #tpu.memory_space<vmem>>, vector<1x128xf32>
    %345 = vector.broadcast %344 : vector<1x128xf32> to vector<32x128xf32>
    %346 = arith.addf %343, %345 : vector<32x128xf32>
    %cst_340 = arith.constant 0.000000e+00 : f32
    %347 = vector.broadcast %cst_340 : f32 to vector<32x128xf32>
    %348 = arith.maximumf %346, %347 : vector<32x128xf32>
    %c0_341 = arith.constant 0 : index
    %c0_342 = arith.constant 0 : index
    %349 = vector.load %arg39[%c0_341, %c0_342] : memref<2x128xf32, #tpu.memory_space<vmem>>, vector<1x128xf32>
    %350 = vector.broadcast %349 : vector<1x128xf32> to vector<32x128xf32>
    %351 = arith.mulf %348, %350 : vector<32x128xf32>
    %c1_343 = arith.constant 1 : index
    %c0_344 = arith.constant 0 : index
    %352 = vector.load %arg39[%c1_343, %c0_344] : memref<2x128xf32, #tpu.memory_space<vmem>>, vector<1x128xf32>
    %353 = vector.broadcast %352 : vector<1x128xf32> to vector<32x128xf32>
    %354 = arith.addf %351, %353 : vector<32x128xf32>
    %c0_345 = arith.constant 0 : index
    %c0_346 = arith.constant 0 : index
    %c0_347 = arith.constant 0 : index
    %355 = vector.load %arg31[%c0_345, %c0_346, %c0_347] : memref<3x128x128xf32, #tpu.memory_space<vmem>>, vector<1x128x128xf32>
    %356 = vector.shape_cast %355 : vector<1x128x128xf32> to vector<128x128xf32>
    %cst_348 = arith.constant dense<0.000000e+00> : vector<32x128xf32>
    %357 = tpu.matmul %354, %356, %cst_348 {dimension_numbers = #tpu.dot_dimension_numbers<[1], [0], [0], [1], [0, 0, 1, 1], [], []>} : vector<32x128xf32>, vector<128x128xf32>, vector<32x128xf32> -> vector<32x128xf32>
    %c1_349 = arith.constant 1 : index
    %c0_350 = arith.constant 0 : index
    %c0_351 = arith.constant 0 : index
    %358 = vector.load %arg31[%c1_349, %c0_350, %c0_351] : memref<3x128x128xf32, #tpu.memory_space<vmem>>, vector<1x128x128xf32>
    %359 = vector.shape_cast %358 : vector<1x128x128xf32> to vector<128x128xf32>
    %cst_352 = arith.constant dense<0.000000e+00> : vector<32x128xf32>
    %360 = tpu.matmul %354, %359, %cst_352 {dimension_numbers = #tpu.dot_dimension_numbers<[1], [0], [0], [1], [0, 0, 1, 1], [], []>} : vector<32x128xf32>, vector<128x128xf32>, vector<32x128xf32> -> vector<32x128xf32>
    %c2_353 = arith.constant 2 : index
    %c0_354 = arith.constant 0 : index
    %c0_355 = arith.constant 0 : index
    %361 = vector.load %arg31[%c2_353, %c0_354, %c0_355] : memref<3x128x128xf32, #tpu.memory_space<vmem>>, vector<1x128x128xf32>
    %362 = vector.shape_cast %361 : vector<1x128x128xf32> to vector<128x128xf32>
    %cst_356 = arith.constant dense<0.000000e+00> : vector<32x128xf32>
    %363 = tpu.matmul %354, %362, %cst_356 {dimension_numbers = #tpu.dot_dimension_numbers<[1], [0], [0], [1], [0, 0, 1, 1], [], []>} : vector<32x128xf32>, vector<128x128xf32>, vector<32x128xf32> -> vector<32x128xf32>
    %c0_357 = arith.constant 0 : index
    %c0_358 = arith.constant 0 : index
    %c0_359 = arith.constant 0 : index
    %364 = vector.load %arg32[%c0_357, %c0_358, %c0_359] : memref<2x32x32xf32, #tpu.memory_space<vmem>>, vector<1x32x32xf32>
    %365 = vector.shape_cast %364 : vector<1x32x32xf32> to vector<32x32xf32>
    %cst_360 = arith.constant dense<0.000000e+00> : vector<32x128xf32>
    %366 = tpu.matmul %365, %357, %cst_360 {dimension_numbers = #tpu.dot_dimension_numbers<[1], [0], [0], [1], [0, 0, 1, 1], [], []>} : vector<32x32xf32>, vector<32x128xf32>, vector<32x128xf32> -> vector<32x128xf32>
    %367 = arith.addf %360, %366 : vector<32x128xf32>
    %c1_361 = arith.constant 1 : index
    %c0_362 = arith.constant 0 : index
    %c0_363 = arith.constant 0 : index
    %368 = vector.load %arg32[%c1_361, %c0_362, %c0_363] : memref<2x32x32xf32, #tpu.memory_space<vmem>>, vector<1x32x32xf32>
    %369 = vector.shape_cast %368 : vector<1x32x32xf32> to vector<32x32xf32>
    %cst_364 = arith.constant dense<0.000000e+00> : vector<32x128xf32>
    %370 = tpu.matmul %369, %363, %cst_364 {dimension_numbers = #tpu.dot_dimension_numbers<[1], [0], [0], [1], [0, 0, 1, 1], [], []>} : vector<32x32xf32>, vector<32x128xf32>, vector<32x128xf32> -> vector<32x128xf32>
    %371 = arith.addf %367, %370 : vector<32x128xf32>
    %c0_365 = arith.constant 0 : index
    %c0_366 = arith.constant 0 : index
    %372 = vector.load %arg35[%c0_365, %c0_366] : memref<1x128xf32, #tpu.memory_space<vmem>>, vector<1x128xf32>
    %373 = vector.broadcast %372 : vector<1x128xf32> to vector<32x128xf32>
    %374 = arith.addf %371, %373 : vector<32x128xf32>
    %cst_367 = arith.constant 0.000000e+00 : f32
    %375 = vector.broadcast %cst_367 : f32 to vector<32x128xf32>
    %376 = arith.maximumf %374, %375 : vector<32x128xf32>
    %c0_368 = arith.constant 0 : index
    %c0_369 = arith.constant 0 : index
    %377 = vector.load %arg33[%c0_368, %c0_369] : memref<128x16xf32, #tpu.memory_space<vmem>>, vector<128x16xf32>
    %cst_370 = arith.constant dense<0.000000e+00> : vector<32x16xf32>
    %378 = tpu.matmul %376, %377, %cst_370 {dimension_numbers = #tpu.dot_dimension_numbers<[1], [0], [0], [1], [0, 0, 1, 1], [], []>} : vector<32x128xf32>, vector<128x16xf32>, vector<32x16xf32> -> vector<32x16xf32>
    %c0_371 = arith.constant 0 : index
    %c0_372 = arith.constant 0 : index
    %379 = vector.load %arg36[%c0_371, %c0_372] : memref<1x16xf32, #tpu.memory_space<vmem>>, vector<1x16xf32>
    %380 = vector.broadcast %379 : vector<1x16xf32> to vector<32x16xf32>
    %381 = arith.addf %378, %380 : vector<32x16xf32>
    %cst_373 = arith.constant 0.000000e+00 : f32
    %382 = vector.broadcast %cst_373 : f32 to vector<32x16xf32>
    %383 = arith.subf %382, %381 : vector<32x16xf32>
    %384 = math.exp %383 : vector<32x16xf32>
    %cst_374 = arith.constant 1.000000e+00 : f32
    %385 = vector.broadcast %cst_374 : f32 to vector<32x16xf32>
    %386 = arith.addf %385, %384 : vector<32x16xf32>
    %cst_375 = arith.constant 1.000000e+00 : f32
    %387 = vector.broadcast %cst_375 : f32 to vector<32x16xf32>
    %388 = arith.divf %387, %386 : vector<32x16xf32>
    %c0_376 = arith.constant 0 : index
    %c0_377 = arith.constant 0 : index
    %389 = vector.load %arg52[%c0_376, %c0_377] : memref<32x16xf32, #tpu.memory_space<vmem>>, vector<32x16xf32>
    tpu.vector_store %arg52[%c0_376, %c0_377], %388 {strides = array<i32>} : memref<32x16xf32, #tpu.memory_space<vmem>>, vector<32x16xf32>,
    return
  }
}

</mosaic_0001>

<bundles_post_ra>
// kernel: _lambda_.1
= control target key start
LH: loop header
LB: loop body
LE: loop exit
PB: predicated region body
PF: predicated region fallthrough
CT: control target
= control target key end

     0   :  { %s4964_s6 = smov 1   ;;  %s4965_s10 = smov 2   ;;  %s6076_s0 = inlined_call_operand.smem [shape: u32[53], index: -1, kind: input, shape index: {}] }
   0x1   :  { %s5058_s5 = sld [smem:[%s6076_s0]]   ;;  %s4966_s14 = smov 3  }
   0x2   :  { %s5063_s9 = sld [smem:[%s6076_s0 + %s4964_s6]]   ;;  %s4967_s18 = smov 4  }
   0x3   :  { %s5068_s13 = sld [smem:[%s6076_s0 + %s4965_s10]]   ;;  %s4968_s22 = smov 5  }
   0x4   :  { %s5073_s17 = sld [smem:[%s6076_s0 + %s4966_s14]]   ;;  %s4969_s26 = smov 6  }
   0x5   :  { %s5078_s21 = sld [smem:[%s6076_s0 + %s4967_s18]]   ;;  %s4970_s30 = smov 7  }
   0x6   :  { %s5083_s25 = sld [smem:[%s6076_s0 + %s4968_s22]]   ;;  %s4971_s4 = smov 8  }
   0x7   :  { %6108 = sst [smem:[#allocation68_spill]] %s5058_s5  ;;  %s4972_s10 = smov 9  }
   0x8   :  { %6109 = sst [smem:[#allocation69_spill]] %s5063_s9  ;;  %s4973_s15 = smov 10  }
   0x9   :  { %6110 = sst [smem:[#allocation70_spill]] %s5068_s13  ;;  %s4974_s20 = smov 11  }
   0xa   :  { %s5088_s29 = sld [smem:[%s6076_s0 + %s4969_s26]]   ;;  %s4975_s26 = smov 12  }
   0xb   :  { %6111 = sst [smem:[#allocation71_spill]] %s5078_s21  ;;  %s4976_s1 = smov 13  }
   0xc   :  { %6112 = sst [smem:[#allocation72_spill]] %s5083_s25  ;;  %s4977_s7 = smov 14  }
   0xd   :  { %s5093_s3 = sld [smem:[%s6076_s0 + %s4970_s30]]   ;;  %s4979_s22 = smov 16  }
   0xe   :  { %s5098_s8 = sld [smem:[%s6076_s0 + %s4971_s4]]   ;;  %s4980_s28 = smov 17  }
   0xf   :  { %s5103_s14 = sld [smem:[%s6076_s0 + %s4972_s10]]  }
  0x10   :  { %s5108_s19 = sld [smem:[%s6076_s0 + %s4973_s15]]   ;;  %s4978_s15 = smov 15  }
  0x11   :  { %s5113_s24 = sld [smem:[%s6076_s0 + %s4974_s20]]  }
  0x12   :  { %s5118_s30 = sld [smem:[%s6076_s0 + %s4975_s26]]  }
  0x13   :  { %6113 = sst [smem:[#allocation73_spill]] %s5093_s3 }
  0x14   :  { %s5123_s6 = sld [smem:[%s6076_s0 + %s4976_s1]]  }
  0x15   :  { %6114 = sst [smem:[#allocation74_spill]] %s5103_s14 }
  0x16   :  { %s5128_s12 = sld [smem:[%s6076_s0 + %s4977_s7]]   ;;  %s4981_s7 = smov 18  }
  0x17   :  { %6115 = sst [smem:[#allocation75_spill]] %s5113_s24 }
  0x18   :  { %6116 = sst [smem:[#allocation76_spill]] %s5118_s30 }
  0x19   :  { %s5133_s20 = sld [smem:[%s6076_s0 + %s4978_s15]]   ;;  %s4982_s15 = smov 19  }
  0x1a   :  { %s5138_s27 = sld [smem:[%s6076_s0 + %s4979_s22]]   ;;  %s4983_s22 = smov 20  }
  0x1b   :  { %s5143_s4 = sld [smem:[%s6076_s0 + %s4980_s28]]   ;;  %s4984_s28 = smov 21  }
  0x1c   :  { %6117 = sst [smem:[#allocation77_spill]] %s5128_s12 }
  0x1d   :  { %s5148_s25 = sld [smem:[%s6076_s0 + %s4981_s7]]   ;;  %s4985_s7 = smov 22  }
  0x1e   :  { %s5153_s13 = sld [smem:[%s6076_s0 + %s4982_s15]]   ;;  %s4986_s15 = smov 23  }
  0x1f   :  { %6118 = sst [smem:[#allocation78_spill]] %s5133_s20 }
  0x20   :  { %6119 = sst [smem:[#allocation79_spill]] %s5138_s27 }
  0x21   :  { %s5158_s12 = sld [smem:[%s6076_s0 + %s4983_s22]]   ;;  %s4987_s22 = smov 24  }
  0x22   :  { %s5163_s20 = sld [smem:[%s6076_s0 + %s4984_s28]]   ;;  %s4988_s28 = smov 25  }
  0x23   :  { %6120 = sst [smem:[#allocation80_spill]] %s5148_s25 }
  0x24   :  { %s5168_s30 = sld [smem:[%s6076_s0 + %s4985_s7]]   ;;  %s4989_s7 = smov 26  }
  0x25   :  { %s5173_s5 = sld [smem:[%s6076_s0 + %s4986_s15]]   ;;  %s4990_s15 = smov 27  }
  0x26   :  { %s5188_s25 = sld [smem:[%s6076_s0 + %s4989_s7]]   ;;  %s4993_s7 = smov 30  }
  0x27   :  { %6121 = sst [smem:[#allocation81_spill]] %s5158_s12 }
  0x28   :  { %6122 = sst [smem:[#allocation82_spill]] %s5163_s20 }
  0x29   :  { %s5178_s12 = sld [smem:[%s6076_s0 + %s4987_s22]]   ;;  %s4991_s22 = smov 28  }
  0x2a   :  { %s5183_s20 = sld [smem:[%s6076_s0 + %s4988_s28]]   ;;  %s4992_s28 = smov 29  }
  0x2b   :  { %6123 = sst [smem:[#allocation83_spill]] %s5173_s5 }
  0x2c   :  { %6125 = sst [smem:[#allocation85_spill]] %s5188_s25 }
  0x2d   :  { %s5193_s5 = sld [smem:[%s6076_s0 + %s4990_s15]]   ;;  %s4994_s15 = smov 31  }
  0x2e   :  { %s5203_s27 = sld [smem:[%s6076_s0 + %s4992_s28]]   ;;  %s4996_s28 = smov 33  }
  0x2f   :  { %6124 = sst [smem:[#allocation84_spill]] %s5178_s12 }
  0x30   :  { %s5198_s12 = sld [smem:[%s6076_s0 + %s4991_s22]]   ;;  %s4995_s22 = smov 32  }
  0x31   :  { %s5208_s25 = sld [smem:[%s6076_s0 + %s4993_s7]]   ;;  %s4997_s7 = smov 34  }
  0x32   :  { %s5213_s24 = sld [smem:[%s6076_s0 + %s4994_s15]]   ;;  %s4998_s15 = smov 35  }
  0x33   :  { %s5223_s14 = sld [smem:[%s6076_s0 + %s4996_s28]]   ;;  %s5000_s28 = smov 37  }
  0x34   :  { %s5233_s3 = sld [smem:[%s6076_s0 + %s4998_s15]]   ;;  %s5002_s15 = smov 39  }
  0x36   :  { %6126 = sst [smem:[#allocation86_spill]] %s5198_s12 }
  0x37   :  { %6127 = sst [smem:[#allocation87_spill]] %s5208_s25 }
  0x38   :  { %s5218_s12 = sld [smem:[%s6076_s0 + %s4995_s22]]   ;;  %s4999_s22 = smov 36  }
  0x39   :  { %6129 = sst [smem:[#allocation89_spill]] %s5223_s14 }
  0x3a   :  { %s5228_s25 = sld [smem:[%s6076_s0 + %s4997_s7]]   ;;  %s5001_s7 = smov 38  }
  0x3b   :  { %6130 = sst [smem:[#allocation90_spill]] %s5233_s3 }
  0x3c   :  { %s5243_s14 = sld [smem:[%s6076_s0 + %s5000_s28]]   ;;  %s5004_s28 = smov 41  }
  0x3d   :  { %s5248_s21 = sld [smem:[%s6076_s0 + %s5001_s7]]   ;;  %s5005_s7 = smov 42  }
  0x3e   :  { %6128 = sst [smem:[#allocation88_spill]] %s5218_s12 }
  0x3f   :  { %s5238_s12 = sld [smem:[%s6076_s0 + %s4999_s22]]   ;;  %s5003_s22 = smov 40  }
  0x40   :  { %s5253_s3 = sld [smem:[%s6076_s0 + %s5002_s15]]   ;;  %s5006_s15 = smov 43  }
  0x42   :  { %6132 = sst [smem:[#allocation92_spill]] %s5243_s14 }
  0x43   :  { %6133 = sst [smem:[#allocation93_spill]] %s5248_s21 }
  0x44   :  { %s5263_s14 = sld [smem:[%s6076_s0 + %s5004_s28]]   ;;  %s5008_s28 = smov 45  }
  0x45   :  { %6131 = sst [smem:[#allocation91_spill]] %s5238_s12 }
  0x46   :  { %6134 = sst [smem:[#allocation94_spill]] %s5253_s3 }
  0x47   :  { %s5258_s12 = sld [smem:[%s6076_s0 + %s5003_s22]]   ;;  %s5007_s22 = smov 44  }
  0x48   :  { %s5268_s21 = sld [smem:[%s6076_s0 + %s5005_s7]]   ;;  %s5009_s7 = smov 46  }
  0x49   :  { %s5273_s3 = sld [smem:[%s6076_s0 + %s5006_s15]]   ;;  %s5010_s15 = smov 47  }
  0x4a   :  { %s5283_s9 = sld [smem:[%s6076_s0 + %s5008_s28]]   ;;  %s5012_s28 = smov 49  }
  0x4d   :  { %6135 = sst [smem:[#allocation95_spill]] %s5258_s12 }
  0x4e   :  { %6136 = sst [smem:[#allocation96_spill]] %s5268_s21 }
  0x4f   :  { %6137 = sst [smem:[#allocation97_spill]] %s5273_s3 }
  0x50   :  { %s5278_s12 = sld [smem:[%s6076_s0 + %s5007_s22]]   ;;  %s5011_s22 = smov 48  }
  0x51   :  { %6139 = sst [smem:[#allocation99_spill]] %s5283_s9 }
  0x52   :  { %s5288_s21 = sld [smem:[%s6076_s0 + %s5009_s7]]   ;;  %s5013_s7 = smov 50  }
  0x53   :  { %s5293_s3 = sld [smem:[%s6076_s0 + %s5010_s15]]   ;;  %s5014_s15 = smov 51  }
  0x54   :  { %s5303_s9 = sld [smem:[%s6076_s0 + %s5012_s28]]  }
  0x56   :  { %6138 = sst [smem:[#allocation98_spill]] %s5278_s12 }
  0x57   :  { %s5298_s12 = sld [smem:[%s6076_s0 + %s5011_s22]]   ;;  %s5015_s22 = smov 52  }
  0x58   :  { %6140 = sst [smem:[#allocation100_spill]] %s5288_s21 }
  0x59   :  { %6141 = sst [smem:[#allocation101_spill]] %s5293_s3 }
  0x5a   :  { %s5308_s21 = sld [smem:[%s6076_s0 + %s5013_s7]]  }
  0x5b   :  { %s5313_s3 = sld [smem:[%s6076_s0 + %s5014_s15]]  }
  0x5d   :  { %6142 = sst [smem:[#allocation102_spill]] %s5298_s12 }
  0x5e   :  { %s5318_s12 = sld [smem:[%s6076_s0 + %s5015_s22]]  }
  0x5f   :  { %110 = vsyncpa [#allocation3], 0 }
  0x60   :  { %111 = vsyncpa [#allocation6], 0 }
  0x61   :  { %112 = vsyncpa [#allocation9], 0 }
  0x62   :  { %113 = vsyncpa [#allocation12], 0 }
  0x63   :  { %114 = vsyncpa [#allocation15], 0 }
  0x64   :  { %115 = vsyncpa [#allocation18], 0 }
  0x65   :  { %116 = vsyncpa [#allocation21], 0 }
  0x66   :  { %117 = vsyncpa [#allocation24], 0 }
  0x67   :  { %118 = vsyncpa [#allocation27], 0 }
  0x68   :  { %119 = vsyncpa [#allocation30], 0 }
  0x69   :  { %120 = vsyncpa [#allocation33], 0 }
  0x6a   :  { %121 = vsyncpa [#allocation36], 0 }
  0x6b   :  { %122 = vsyncpa [#allocation39], 0 }
  0x6c   :  { %123 = vsyncpa [#allocation42], 0 }
  0x6d   :  { %124 = vsyncpa [#allocation45], 0 }
  0x6e   :  { %125 = vsyncpa [#allocation48], 0 }
  0x6f   :  { %126 = vsyncpa [#allocation4], 0  ;;  %s148_s0 = sshll.u32 %s5073_s17, 4  ;;  %s5016_s28 = smov [#allocation5]   ;;  %s149_s0 = int_to_ptr.hbm [resolvable:$true] %s148_s0 }
  0x70   :  { %s150_s1 = sshll.u32 %s5016_s28, 4  ;;  %s177_s2 = sshll.u32 %s5088_s29, 4  ;;  %s151_s1 = int_to_ptr.vmem [resolvable:$true] %s150_s1  ;;  %s178_s2 = int_to_ptr.hbm [resolvable:$true] %s177_s2 }
  0x71   :  { %s4162_s7 = sshra.s32 %s149_s0, 4  ;;  %s4166_s11 = scalar_lea.hbm %s5073_s17, 256  ;;  %s4163_s7 = int_to_ptr.hbm [resolvable:$true] %s4162_s7 }
  0x72   :  { %s4164_s10 = scalar_lea.hbm %s4163_s7, 256  ;;  %p4167_p1 = scmp.lt.s32.totalorder %s4163_s7, %s5073_s17 }
  0x73   :  { %p4165_p0 = scmp.ne.s32.totalorder %s4163_s7, %s4164_s10  ;;  %p4168_p2 = scmp.lt.s32.totalorder %s4166_s11, %s4164_s10 }
  0x75   :  { %p4169_p3 = por %p4168_p2, %p4167_p1 }
  0x77   :  { %p4170_p4 = pnand %p4169_p3, %p4165_p0 }
  0x79   :  { %4173 = shalt.err (!%p4170_p4)
}
  0x7a   :  { %s5017_s15 = smov 128   ;;  %s5018_s16 = smov 8  }
  0x7b   :  { %156 = dma.hbm_to_vmem [thread:$0]  %s149_s0, 4096, %s151_s1, [#allocation6], %s5017_s15, %s5017_s15, %s5018_s16  }
  0x7c   :  { %s5019_s18 = smov [#allocation8]   ;;  %s199_s23 = sshll.u32 %s5098_s8, 4  ;;  %s200_s23 = int_to_ptr.hbm [resolvable:$true] %s199_s23 }
  0x7d   :  { %s179_s22 = sshll.u32 %s5019_s18, 4  ;;  %s4186_s17 = sshra.s32 %s178_s2, 4  ;;  %s180_s22 = int_to_ptr.vmem [resolvable:$true] %s179_s22  ;;  %s4187_s17 = int_to_ptr.hbm [resolvable:$true] %s4186_s17 }
  0x7e   :  { %s4188_s26 = scalar_lea.hbm %s4187_s17, 1  ;;  %s4190_s28 = scalar_lea.hbm %s5088_s29, 1 }
  0x7f   :  { %p4189_p5 = scmp.ne.s32.totalorder %s4187_s17, %s4188_s26  ;;  %p4191_p6 = scmp.lt.s32.totalorder %s4187_s17, %s5088_s29 }
  0x80   :  { %p4192_p7 = scmp.lt.s32.totalorder %s4190_s28, %s4188_s26 }
  0x82   :  { %p4193_p8 = por %p4192_p7, %p4191_p6 }
  0x84   :  { %p4194_p9 = pnand %p4193_p8, %p4189_p5 }
  0x86   :  { %4197 = shalt.err (!%p4194_p9)
}
  0x87   :  { %182 = dma.hbm_to_vmem [thread:$0]  %s178_s2, 16, %s180_s22, [#allocation9]  }
  0x88   :  { %s221_s0 = sshll.u32 %s5108_s19, 4  ;;  %s5020_s1 = smov [#allocation11]   ;;  %s222_s0 = int_to_ptr.hbm [resolvable:$true] %s221_s0 }
  0x89   :  { %s201_s7 = sshll.u32 %s5020_s1, 4  ;;  %s4210_s10 = sshra.s32 %s200_s23, 4  ;;  %s202_s7 = int_to_ptr.vmem [resolvable:$true] %s201_s7  ;;  %s4211_s10 = int_to_ptr.hbm [resolvable:$true] %s4210_s10 }
  0x8a   :  { %s4212_s11 = scalar_lea.hbm %s4211_s10, 2  ;;  %s4214_s18 = scalar_lea.hbm %s5098_s8, 2 }
  0x8b   :  { %p4213_p10 = scmp.ne.s32.totalorder %s4211_s10, %s4212_s11  ;;  %p4215_p11 = scmp.lt.s32.totalorder %s4211_s10, %s5098_s8 }
  0x8c   :  { %p4216_p12 = scmp.lt.s32.totalorder %s4214_s18, %s4212_s11 }
  0x8e   :  { %p4217_p13 = por %p4216_p12, %p4215_p11 }
  0x90   :  { %p4218_p0 = pnand %p4217_p13, %p4213_p10 }
  0x92   :  { %4221 = shalt.err (!%p4218_p0)
}
  0x93   :  { %204 = dma.hbm_to_vmem [thread:$0]  %s200_s23, 32, %s202_s7, [#allocation12]  }
  0x94   :  { %s5021_s29 = smov [#allocation14]   ;;  %s246_s22 = sshll.u32 %s5123_s6, 4  ;;  %s5334_s22 = int_to_ptr.hbm [resolvable:$true] %s246_s22 }
  0x95   :  { %s223_s2 = sshll.u32 %s5021_s29, 4  ;;  %s4234_s17 = sshra.s32 %s222_s0, 4  ;;  %s224_s2 = int_to_ptr.vmem [resolvable:$true] %s223_s2  ;;  %s4235_s17 = int_to_ptr.hbm [resolvable:$true] %s4234_s17 }
  0x96   :  { %s4236_s26 = scalar_lea.hbm %s4235_s17, 1  ;;  %s4238_s28 = scalar_lea.hbm %s5108_s19, 1 }
  0x97   :  { %p4237_p1 = scmp.ne.s32.totalorder %s4235_s17, %s4236_s26  ;;  %p4239_p2 = scmp.lt.s32.totalorder %s4235_s17, %s5108_s19 }
  0x98   :  { %p4240_p3 = scmp.lt.s32.totalorder %s4238_s28, %s4236_s26 }
  0x9a   :  { %p4241_p4 = por %p4240_p3, %p4239_p2 }
  0x9c   :  { %p4242_p5 = pnand %p4241_p4, %p4237_p1 }
  0x9e   :  { %4245 = shalt.err (!%p4242_p5)
}
  0x9f   :  { %226 = dma.hbm_to_vmem [thread:$0]  %s222_s0, 16, %s224_s2, [#allocation15]  }
  0xa0   :  { %s275_s8 = sshll.u32 %s5143_s4, 4  ;;  %s5022_s23 = smov [#allocation17]   ;;  %s276_s8 = int_to_ptr.hbm [resolvable:$true] %s275_s8 }
  0xa1   :  { %s248_s1 = sshll.u32 %s5022_s23, 4  ;;  %s4258_s7 = sshra.s32 %s5334_s22, 4  ;;  %s249_s1 = int_to_ptr.vmem [resolvable:$true] %s248_s1  ;;  %s4259_s7 = int_to_ptr.hbm [resolvable:$true] %s4258_s7 }
  0xa2   :  { %s4260_s10 = scalar_lea.hbm %s4259_s7, 64  ;;  %s4262_s11 = scalar_lea.hbm %s5123_s6, 64 }
  0xa3   :  { %p4261_p6 = scmp.ne.s32.totalorder %s4259_s7, %s4260_s10  ;;  %p4263_p7 = scmp.lt.s32.totalorder %s4259_s7, %s5123_s6 }
  0xa4   :  { %p4264_p8 = scmp.lt.s32.totalorder %s4262_s11, %s4260_s10 }
  0xa6   :  { %p4265_p9 = por %p4264_p8, %p4263_p7 }
  0xa8   :  { %p4266_p10 = pnand %p4265_p9, %p4261_p6 }
  0xaa   :  { %4269 = shalt.err (!%p4266_p10)
}
  0xab   :  { %254 = dma.hbm_to_vmem [thread:$0]  %s5334_s22, 1024, %s249_s1, [#allocation18], %s5017_s15, %s5017_s15, %s5018_s16  }
  0xac   :  { %s5023_s19 = smov [#allocation20]   ;;  %s297_s18 = sshll.u32 %s5153_s13, 4  ;;  %s298_s18 = int_to_ptr.hbm [resolvable:$true] %s297_s18 }
  0xad   :  { %s277_s0 = sshll.u32 %s5023_s19, 4  ;;  %s4282_s29 = sshra.s32 %s276_s8, 4  ;;  %s278_s0 = int_to_ptr.vmem [resolvable:$true] %s277_s0  ;;  %s4283_s29 = int_to_ptr.hbm [resolvable:$true] %s4282_s29 }
  0xae   :  { %s4284_s6 = scalar_lea.hbm %s4283_s29, 1  ;;  %s4286_s2 = scalar_lea.hbm %s5143_s4, 1 }
  0xaf   :  { %p4285_p11 = scmp.ne.s32.totalorder %s4283_s29, %s4284_s6  ;;  %p4287_p12 = scmp.lt.s32.totalorder %s4283_s29, %s5143_s4 }
  0xb0   :  { %p4288_p13 = scmp.lt.s32.totalorder %s4286_s2, %s4284_s6 }
  0xb2   :  { %p4289_p0 = por %p4288_p13, %p4287_p12 }
  0xb4   :  { %p4290_p1 = pnand %p4289_p0, %p4285_p11 }
  0xb6   :  { %4293 = shalt.err (!%p4290_p1)
}
  0xb7   :  { %280 = dma.hbm_to_vmem [thread:$0]  %s276_s8, 16, %s278_s0, [#allocation21]  }
  0xb8   :  { %s322_s22 = sshll.u32 %s5168_s30, 4  ;;  %s5024_s17 = smov [#allocation23]   ;;  %s5350_s22 = int_to_ptr.hbm [resolvable:$true] %s322_s22 }
  0xb9   :  { %s299_s26 = sshll.u32 %s5024_s17, 4  ;;  %s4306_s28 = sshra.s32 %s298_s18, 4  ;;  %s300_s26 = int_to_ptr.vmem [resolvable:$true] %s299_s26  ;;  %s4307_s28 = int_to_ptr.hbm [resolvable:$true] %s4306_s28 }
  0xba   :  { %s4308_s23 = scalar_lea.hbm %s4307_s28, 2  ;;  %s4310_s1 = scalar_lea.hbm %s5153_s13, 2 }
  0xbb   :  { %p4309_p2 = scmp.ne.s32.totalorder %s4307_s28, %s4308_s23  ;;  %p4311_p3 = scmp.lt.s32.totalorder %s4307_s28, %s5153_s13 }
  0xbc   :  { %p4312_p4 = scmp.lt.s32.totalorder %s4310_s1, %s4308_s23 }
  0xbe   :  { %p4313_p5 = por %p4312_p4, %p4311_p3 }
  0xc0   :  { %p4314_p6 = pnand %p4313_p5, %p4309_p2 }
  0xc2   :  { %4317 = shalt.err (!%p4314_p6)
}
  0xc3   :  { %302 = dma.hbm_to_vmem [thread:$0]  %s298_s18, 32, %s300_s26, [#allocation24]  }
  0xc4   :  { %s5025_s4 = smov [#allocation26]   ;;  %s351_s7 = sshll.u32 %s5183_s20, 4  ;;  %s352_s7 = int_to_ptr.hbm [resolvable:$true] %s351_s7 }
  0xc5   :  { %s324_s8 = sshll.u32 %s5025_s4, 4  ;;  %s4330_s10 = sshra.s32 %s5350_s22, 4  ;;  %s325_s8 = int_to_ptr.vmem [resolvable:$true] %s324_s8  ;;  %s4331_s10 = int_to_ptr.hbm [resolvable:$true] %s4330_s10 }
  0xc6   :  { %s4332_s11 = scalar_lea.hbm %s4331_s10, 32  ;;  %s4334_s19 = scalar_lea.hbm %s5168_s30, 32 }
  0xc7   :  { %p4333_p7 = scmp.ne.s32.totalorder %s4331_s10, %s4332_s11  ;;  %p4335_p8 = scmp.lt.s32.totalorder %s4331_s10, %s5168_s30 }
  0xc8   :  { %p4336_p9 = scmp.lt.s32.totalorder %s4334_s19, %s4332_s11 }
  0xca   :  { %p4337_p10 = por %p4336_p9, %p4335_p8 }
  0xcc   :  { %p4338_p11 = pnand %p4337_p10, %p4333_p7 }
  0xce   :  { %4341 = shalt.err (!%p4338_p11)
}
  0xcf   :  { %330 = dma.hbm_to_vmem [thread:$0]  %s5350_s22, 512, %s325_s8, [#allocation27], %s5017_s15, %s5017_s15, %s5018_s16  }
  0xd0   :  { %s373_s13 = sshll.u32 %s5193_s5, 4  ;;  %s5026_s0 = smov [#allocation29]   ;;  %s374_s13 = int_to_ptr.hbm [resolvable:$true] %s373_s13 }
  0xd1   :  { %s353_s18 = sshll.u32 %s5026_s0, 4  ;;  %s4354_s29 = sshra.s32 %s352_s7, 4  ;;  %s354_s18 = int_to_ptr.vmem [resolvable:$true] %s353_s18  ;;  %s4355_s29 = int_to_ptr.hbm [resolvable:$true] %s4354_s29 }
  0xd2   :  { %s4356_s30 = scalar_lea.hbm %s4355_s29, 1  ;;  %s4358_s6 = scalar_lea.hbm %s5183_s20, 1 }
  0xd3   :  { %p4357_p12 = scmp.ne.s32.totalorder %s4355_s29, %s4356_s30  ;;  %p4359_p13 = scmp.lt.s32.totalorder %s4355_s29, %s5183_s20 }
  0xd4   :  { %p4360_p0 = scmp.lt.s32.totalorder %s4358_s6, %s4356_s30 }
  0xd6   :  { %p4361_p1 = por %p4360_p0, %p4359_p13 }
  0xd8   :  { %p4362_p2 = pnand %p4361_p1, %p4357_p12 }
  0xda   :  { %4365 = shalt.err (!%p4362_p2)
}
  0xdb   :  { %356 = dma.hbm_to_vmem [thread:$0]  %s352_s7, 16, %s354_s18, [#allocation30]  }
  0xdc   :  { %s5027_s2 = smov [#allocation32]   ;;  %s394_s17 = sshll.u32 %s5203_s27, 4  ;;  %s5366_s17 = int_to_ptr.hbm [resolvable:$true] %s394_s17 }
  0xdd   :  { %s375_s22 = sshll.u32 %s5027_s2, 4  ;;  %s4378_s26 = sshra.s32 %s374_s13, 4  ;;  %s376_s22 = int_to_ptr.vmem [resolvable:$true] %s375_s22  ;;  %s4379_s26 = int_to_ptr.hbm [resolvable:$true] %s4378_s26 }
  0xde   :  { %s4380_s28 = scalar_lea.hbm %s4379_s26, 2  ;;  %s4382_s23 = scalar_lea.hbm %s5193_s5, 2 }
  0xdf   :  { %p4381_p3 = scmp.ne.s32.totalorder %s4379_s26, %s4380_s28  ;;  %p4383_p4 = scmp.lt.s32.totalorder %s4379_s26, %s5193_s5 }
  0xe0   :  { %p4384_p5 = scmp.lt.s32.totalorder %s4382_s23, %s4380_s28 }
  0xe2   :  { %p4385_p6 = por %p4384_p5, %p4383_p4 }
  0xe4   :  { %p4386_p7 = pnand %p4385_p6, %p4381_p3 }
  0xe6   :  { %4389 = shalt.err (!%p4386_p7)
}
  0xe7   :  { %378 = dma.hbm_to_vmem [thread:$0]  %s374_s13, 32, %s376_s22, [#allocation33]  }
  0xe8   :  { %s420_s20 = sshll.u32 %s5213_s24, 4  ;;  %s5028_s1 = smov [#allocation35]   ;;  %s5371_s20 = int_to_ptr.hbm [resolvable:$true] %s420_s20 }
  0xe9   :  { %s396_s4 = sshll.u32 %s5028_s1, 4  ;;  %s4402_s8 = sshra.s32 %s5366_s17, 4  ;;  %s397_s4 = int_to_ptr.vmem [resolvable:$true] %s396_s4  ;;  %s4403_s8 = int_to_ptr.hbm [resolvable:$true] %s4402_s8 }
  0xea   :  { %s4404_s7 = scalar_lea.hbm %s4403_s8, 384  ;;  %s4406_s5 = scalar_lea.hbm %s5203_s27, 384 }
  0xeb   :  { %p4405_p8 = scmp.ne.s32.totalorder %s4403_s8, %s4404_s7  ;;  %p4407_p9 = scmp.lt.s32.totalorder %s4403_s8, %s5203_s27 }
  0xec   :  { %p4408_p10 = scmp.lt.s32.totalorder %s4406_s5, %s4404_s7 }
  0xee   :  { %p4409_p11 = por %p4408_p10, %p4407_p9 }
  0xf0   :  { %p4410_p12 = pnand %p4409_p11, %p4405_p8 }
  0xf2   :  { %4413 = shalt.err (!%p4410_p12)
}
  0xf3   :  { %402 = dma.hbm_to_vmem [thread:$0]  %s5366_s17, 6144, %s397_s4, [#allocation36], %s5017_s15, %s5017_s15, %s5018_s16  }
  0xf4   :  { %s5029_s10 = smov [#allocation38]   ;;  %s449_s19 = sshll.u32 %s5228_s25, 4  ;;  %s450_s19 = int_to_ptr.hbm [resolvable:$true] %s449_s19 }
  0xf5   :  { %s422_s11 = sshll.u32 %s5029_s10, 4  ;;  %s4426_s13 = sshra.s32 %s5371_s20, 4  ;;  %s423_s11 = int_to_ptr.vmem [resolvable:$true] %s422_s11  ;;  %s4427_s13 = int_to_ptr.hbm [resolvable:$true] %s4426_s13 }
  0xf6   :  { %s4428_s27 = scalar_lea.hbm %s4427_s13, 384  ;;  %s4430_s0 = scalar_lea.hbm %s5213_s24, 384 }
  0xf7   :  { %p4429_p13 = scmp.ne.s32.totalorder %s4427_s13, %s4428_s27  ;;  %p4431_p0 = scmp.lt.s32.totalorder %s4427_s13, %s5213_s24 }
  0xf8   :  { %p4432_p1 = scmp.lt.s32.totalorder %s4430_s0, %s4428_s27 }
  0xfa   :  { %p4433_p2 = por %p4432_p1, %p4431_p0 }
  0xfc   :  { %p4434_p3 = pnand %p4433_p2, %p4429_p13 }
  0xfe   :  { %4437 = shalt.err (!%p4434_p3)
}
  0xff   :  { %428 = dma.hbm_to_vmem [thread:$0]  %s5371_s20, 6144, %s423_s11, [#allocation39], %s5017_s15, %s5017_s15, %s5018_s16  }
 0x100   :  { %s482_s18 = sshll.u32 %s5263_s14, 4  ;;  %s5030_s29 = smov [#allocation41]   ;;  %s5389_s18 = int_to_ptr.hbm [resolvable:$true] %s482_s18 }
 0x101   :  { %s451_s30 = sshll.u32 %s5030_s29, 4  ;;  %s4450_s6 = sshra.s32 %s450_s19, 4  ;;  %s452_s30 = int_to_ptr.vmem [resolvable:$true] %s451_s30  ;;  %s4451_s6 = int_to_ptr.hbm [resolvable:$true] %s4450_s6 }
 0x102   :  { %s4452_s24 = scalar_lea.hbm %s4451_s6, 1  ;;  %s4454_s2 = scalar_lea.hbm %s5228_s25, 1 }
 0x103   :  { %p4453_p4 = scmp.ne.s32.totalorder %s4451_s6, %s4452_s24  ;;  %p4455_p5 = scmp.lt.s32.totalorder %s4451_s6, %s5228_s25 }
 0x104   :  { %p4456_p6 = scmp.lt.s32.totalorder %s4454_s2, %s4452_s24 }
 0x106   :  { %p4457_p7 = por %p4456_p6, %p4455_p5 }
 0x108   :  { %p4458_p8 = pnand %p4457_p7, %p4453_p4 }
 0x10a   :  { %4461 = shalt.err (!%p4458_p8)
}
 0x10b   :  { %454 = dma.hbm_to_vmem [thread:$0]  %s450_s19, 16, %s452_s30, [#allocation42]  }
 0x10c   :  { %s6143_s22 = sld [smem:[#allocation97_spill]]  ;;  %s5031_s17 = smov [#allocation44]  }
 0x10d   :  { %s484_s26 = sshll.u32 %s5031_s17, 4  ;;  %s4474_s23 = sshra.s32 %s5389_s18, 4  ;;  %s485_s26 = int_to_ptr.vmem [resolvable:$true] %s484_s26  ;;  %s4475_s23 = int_to_ptr.hbm [resolvable:$true] %s4474_s23 }
 0x10e   :  { %s4476_s20 = scalar_lea.hbm %s4475_s23, 384  ;;  %s4478_s25 = scalar_lea.hbm %s5263_s14, 384 }
 0x10f   :  { %p4477_p9 = scmp.ne.s32.totalorder %s4475_s23, %s4476_s20  ;;  %p4479_p10 = scmp.lt.s32.totalorder %s4475_s23, %s5263_s14 }
 0x110   :  { %p4480_p11 = scmp.lt.s32.totalorder %s4478_s25, %s4476_s20 }
 0x112   :  { %s508_s28 = sshll.u32 %s6143_s22, 4  ;;  %p4481_p12 = por %p4480_p11, %p4479_p10  ;;  %s5394_s28 = int_to_ptr.hbm [resolvable:$true] %s508_s28 }
 0x114   :  { %p4482_p13 = pnand %p4481_p12, %p4477_p9 }
 0x116   :  { %4485 = shalt.err (!%p4482_p13)
}
 0x117   :  { %s6144_s1 = sld [smem:[#allocation69_spill]]  ;;  %s5032_s8 = smov [#allocation47]  }
 0x118   :  { %490 = dma.hbm_to_vmem [thread:$0]  %s5389_s18, 6144, %s485_s26, [#allocation45], %s5017_s15, %s5017_s15, %s5018_s16  }
 0x119   :  { %s510_s7 = sshll.u32 %s5032_s8, 4  ;;  %s4498_s14 = sshra.s32 %s5394_s28, 4  ;;  %s511_s7 = int_to_ptr.vmem [resolvable:$true] %s510_s7  ;;  %s4499_s14 = int_to_ptr.hbm [resolvable:$true] %s4498_s14 }
 0x11a   :  { %s4500_s5 = scalar_lea.hbm %s4499_s14, 256  ;;  %s4502_s10 = scalar_lea.hbm %s6143_s22, 256 }
 0x11b   :  { %p4501_p0 = scmp.ne.s32.totalorder %s4499_s14, %s4500_s5  ;;  %p4503_p1 = scmp.lt.s32.totalorder %s4499_s14, %s6143_s22 }
 0x11c   :  { %p4504_p2 = scmp.lt.s32.totalorder %s4502_s10, %s4500_s5 }
 0x11d   :  { %s133_s4 = sshll.u32 %s6144_s1, 4  ;;  %s5404_s4 = int_to_ptr.hbm [resolvable:$true] %s133_s4 }
 0x11e   :  { %p4505_p3 = por %p4504_p2, %p4503_p1 }
 0x120   :  { %p4506_p4 = pnand %p4505_p3, %p4501_p0 }
 0x122   :  { %4509 = shalt.err (!%p4506_p4)
}
 0x123   :  { %s6145_s11 = sld [smem:[#allocation71_spill]]  ;;  %s5033_s19 = smov [#allocation2]  }
 0x124   :  { %516 = dma.hbm_to_vmem [thread:$0]  %s5394_s28, 4096, %s511_s7, [#allocation48], %s5017_s15, %s5017_s15, %s5018_s16  }
 0x125   :  { %s135_s13 = sshll.u32 %s5033_s19, 4  ;;  %s4522_s0 = sshra.s32 %s5404_s4, 4  ;;  %s136_s13 = int_to_ptr.vmem [resolvable:$true] %s135_s13  ;;  %s4523_s0 = int_to_ptr.hbm [resolvable:$true] %s4522_s0 }
 0x126   :  { %s4524_s18 = scalar_lea.hbm %s4523_s0, 192  ;;  %s4526_s29 = scalar_lea.hbm %s6144_s1, 192 }
 0x127   :  { %p4525_p5 = scmp.ne.s32.totalorder %s4523_s0, %s4524_s18  ;;  %p4527_p6 = scmp.lt.s32.totalorder %s4523_s0, %s6144_s1 }
 0x128   :  { %p4528_p7 = scmp.lt.s32.totalorder %s4526_s29, %s4524_s18 }
 0x129   :  { %s161_s27 = sshll.u32 %s6145_s11, 4  ;;  %s5414_s27 = int_to_ptr.hbm [resolvable:$true] %s161_s27 }
 0x12a   :  { %p4529_p8 = por %p4528_p7, %p4527_p6 }
 0x12c   :  { %p4530_p9 = pnand %p4529_p8, %p4525_p5 }
 0x12e   :  { %4533 = shalt.err (!%p4530_p9)
}
 0x12f   :  { %s6146_s30 = sld [smem:[#allocation73_spill]]  ;;  %s5034_s24 = smov [#allocation7]  }
 0x130   :  { %141 = dma.hbm_to_vmem [thread:$0]  %s5404_s4, 3072, %s136_s13, [#allocation3], %s5017_s15, %s5017_s15, %s5018_s16  }
 0x131   :  { %s163_s2 = sshll.u32 %s5034_s24, 4  ;;  %s4546_s22 = sshra.s32 %s5414_s27, 4  ;;  %s164_s2 = int_to_ptr.vmem [resolvable:$true] %s163_s2  ;;  %s4547_s22 = int_to_ptr.hbm [resolvable:$true] %s4546_s22 }
 0x132   :  { %s4548_s17 = scalar_lea.hbm %s4547_s22, 16  ;;  %s4550_s26 = scalar_lea.hbm %s6145_s11, 16 }
 0x133   :  { %p4549_p10 = scmp.ne.s32.totalorder %s4547_s22, %s4548_s17  ;;  %p4551_p11 = scmp.lt.s32.totalorder %s4547_s22, %s6145_s11 }
 0x134   :  { %p4552_p12 = scmp.lt.s32.totalorder %s4550_s26, %s4548_s17 }
 0x135   :  { %s188_s6 = sshll.u32 %s6146_s30, 4  ;;  %s189_s6 = int_to_ptr.hbm [resolvable:$true] %s188_s6 }
 0x136   :  { %p4553_p13 = por %p4552_p12, %p4551_p11 }
 0x138   :  { %p4554_p0 = pnand %p4553_p13, %p4549_p10 }
 0x13a   :  { %4557 = shalt.err (!%p4554_p0)
}
 0x13b   :  { %s6147_s28 = sld [smem:[#allocation74_spill]]  ;;  %s5035_s23 = smov [#allocation10]  }
 0x13c   :  { %169 = dma.hbm_to_vmem [thread:$0]  %s5414_s27, 256, %s164_s2, [#allocation6], %s5017_s15, %s5017_s15, %s5018_s16  }
 0x13d   :  { %s190_s20 = sshll.u32 %s5035_s23, 4  ;;  %s4570_s1 = sshra.s32 %s189_s6, 4  ;;  %s191_s20 = int_to_ptr.vmem [resolvable:$true] %s190_s20  ;;  %s4571_s1 = int_to_ptr.hbm [resolvable:$true] %s4570_s1 }
 0x13e   :  { %s4572_s4 = scalar_lea.hbm %s4571_s1, 1  ;;  %s4574_s8 = scalar_lea.hbm %s6146_s30, 1 }
 0x13f   :  { %p4573_p1 = scmp.ne.s32.totalorder %s4571_s1, %s4572_s4  ;;  %p4575_p2 = scmp.lt.s32.totalorder %s4571_s1, %s6146_s30 }
 0x140   :  { %p4576_p3 = scmp.lt.s32.totalorder %s4574_s8, %s4572_s4 }
 0x141   :  { %s210_s25 = sshll.u32 %s6147_s28, 4  ;;  %s211_s25 = int_to_ptr.hbm [resolvable:$true] %s210_s25 }
 0x142   :  { %p4577_p4 = por %p4576_p3, %p4575_p2 }
 0x144   :  { %p4578_p5 = pnand %p4577_p4, %p4573_p1 }
 0x146   :  { %4581 = shalt.err (!%p4578_p5)
}
 0x147   :  { %193 = dma.hbm_to_vmem [thread:$0]  %s189_s6, 16, %s191_s20, [#allocation9]  }
 0x148   :  { %s6148_s7 = sld [smem:[#allocation75_spill]]  ;;  %s5036_s5 = smov [#allocation13]  }
 0x149   :  { %s212_s10 = sshll.u32 %s5036_s5, 4  ;;  %s4594_s11 = sshra.s32 %s211_s25, 4  ;;  %s213_s10 = int_to_ptr.vmem [resolvable:$true] %s212_s10  ;;  %s4595_s11 = int_to_ptr.hbm [resolvable:$true] %s4594_s11 }
 0x14a   :  { %s4596_s19 = scalar_lea.hbm %s4595_s11, 2  ;;  %s4598_s13 = scalar_lea.hbm %s6147_s28, 2 }
 0x14b   :  { %p4597_p6 = scmp.ne.s32.totalorder %s4595_s11, %s4596_s19  ;;  %p4599_p7 = scmp.lt.s32.totalorder %s4595_s11, %s6147_s28 }
 0x14c   :  { %p4600_p8 = scmp.lt.s32.totalorder %s4598_s13, %s4596_s19 }
 0x14e   :  { %s231_s14 = sshll.u32 %s6148_s7, 4  ;;  %p4601_p9 = por %p4600_p8, %p4599_p7  ;;  %s5435_s14 = int_to_ptr.hbm [resolvable:$true] %s231_s14 }
 0x150   :  { %p4602_p10 = pnand %p4601_p9, %p4597_p6 }
 0x152   :  { %4605 = shalt.err (!%p4602_p10)
}
 0x153   :  { %215 = dma.hbm_to_vmem [thread:$0]  %s211_s25, 32, %s213_s10, [#allocation12]  }
 0x154   :  { %s6149_s27 = sld [smem:[#allocation79_spill]]  ;;  %s5037_s0 = smov [#allocation16]  }
 0x155   :  { %s233_s18 = sshll.u32 %s5037_s0, 4  ;;  %s4618_s30 = sshra.s32 %s5435_s14, 4  ;;  %s234_s18 = int_to_ptr.vmem [resolvable:$true] %s233_s18  ;;  %s4619_s30 = int_to_ptr.hbm [resolvable:$true] %s4618_s30 }
 0x156   :  { %s4620_s6 = scalar_lea.hbm %s4619_s30, 192  ;;  %s4622_s24 = scalar_lea.hbm %s6148_s7, 192 }
 0x157   :  { %p4621_p11 = scmp.ne.s32.totalorder %s4619_s30, %s4620_s6  ;;  %p4623_p12 = scmp.lt.s32.totalorder %s4619_s30, %s6148_s7 }
 0x158   :  { %p4624_p13 = scmp.lt.s32.totalorder %s4622_s24, %s4620_s6 }
 0x15a   :  { %s264_s29 = sshll.u32 %s6149_s27, 4  ;;  %p4625_p0 = por %p4624_p13, %p4623_p12  ;;  %s265_s29 = int_to_ptr.hbm [resolvable:$true] %s264_s29 }
 0x15c   :  { %p4626_p1 = pnand %p4625_p0, %p4621_p11 }
 0x15e   :  { %4629 = shalt.err (!%p4626_p1)
}
 0x15f   :  { %s6150_s2 = sld [smem:[#allocation80_spill]]  ;;  %s5038_s17 = smov [#allocation19]  }
 0x160   :  { %239 = dma.hbm_to_vmem [thread:$0]  %s5435_s14, 3072, %s234_s18, [#allocation15], %s5017_s15, %s5017_s15, %s5018_s16  }
 0x161   :  { %s266_s26 = sshll.u32 %s5038_s17, 4  ;;  %s4642_s28 = sshra.s32 %s265_s29, 4  ;;  %s267_s26 = int_to_ptr.vmem [resolvable:$true] %s266_s26  ;;  %s4643_s28 = int_to_ptr.hbm [resolvable:$true] %s4642_s28 }
 0x162   :  { %s4644_s23 = scalar_lea.hbm %s4643_s28, 1  ;;  %s4646_s20 = scalar_lea.hbm %s6149_s27, 1 }
 0x163   :  { %p4645_p2 = scmp.ne.s32.totalorder %s4643_s28, %s4644_s23  ;;  %p4647_p3 = scmp.lt.s32.totalorder %s4643_s28, %s6149_s27 }
 0x164   :  { %p4648_p4 = scmp.lt.s32.totalorder %s4646_s20, %s4644_s23 }
 0x165   :  { %s286_s22 = sshll.u32 %s6150_s2, 4  ;;  %s287_s22 = int_to_ptr.hbm [resolvable:$true] %s286_s22 }
 0x166   :  { %p4649_p5 = por %p4648_p4, %p4647_p3 }
 0x168   :  { %p4650_p6 = pnand %p4649_p5, %p4645_p2 }
 0x16a   :  { %4653 = shalt.err (!%p4650_p6)
}
 0x16b   :  { %269 = dma.hbm_to_vmem [thread:$0]  %s265_s29, 16, %s267_s26, [#allocation18]  }
 0x16c   :  { %s6151_s25 = sld [smem:[#allocation81_spill]]  ;;  %s5039_s1 = smov [#allocation22]  }
 0x16d   :  { %s288_s4 = sshll.u32 %s5039_s1, 4  ;;  %s4666_s7 = sshra.s32 %s287_s22, 4  ;;  %s289_s4 = int_to_ptr.vmem [resolvable:$true] %s288_s4  ;;  %s4667_s7 = int_to_ptr.hbm [resolvable:$true] %s4666_s7 }
 0x16e   :  { %s4668_s14 = scalar_lea.hbm %s4667_s7, 2  ;;  %s4670_s5 = scalar_lea.hbm %s6150_s2, 2 }
 0x16f   :  { %p4669_p7 = scmp.ne.s32.totalorder %s4667_s7, %s4668_s14  ;;  %p4671_p8 = scmp.lt.s32.totalorder %s4667_s7, %s6150_s2 }
 0x170   :  { %p4672_p9 = scmp.lt.s32.totalorder %s4670_s5, %s4668_s14 }
 0x172   :  { %s307_s8 = sshll.u32 %s6151_s25, 4  ;;  %p4673_p10 = por %p4672_p9, %p4671_p8  ;;  %s5451_s8 = int_to_ptr.hbm [resolvable:$true] %s307_s8 }
 0x174   :  { %p4674_p11 = pnand %p4673_p10, %p4669_p7 }
 0x176   :  { %4677 = shalt.err (!%p4674_p11)
}
 0x177   :  { %291 = dma.hbm_to_vmem [thread:$0]  %s287_s22, 32, %s289_s4, [#allocation21]  }
 0x178   :  { %s6152_s10 = sld [smem:[#allocation83_spill]]  ;;  %s5040_s19 = smov [#allocation25]  }
 0x179   :  { %s309_s13 = sshll.u32 %s5040_s19, 4  ;;  %s4690_s27 = sshra.s32 %s5451_s8, 4  ;;  %s310_s13 = int_to_ptr.vmem [resolvable:$true] %s309_s13  ;;  %s4691_s27 = int_to_ptr.hbm [resolvable:$true] %s4690_s27 }
 0x17a   :  { %s4692_s0 = scalar_lea.hbm %s4691_s27, 192  ;;  %s4694_s18 = scalar_lea.hbm %s6151_s25, 192 }
 0x17b   :  { %p4693_p12 = scmp.ne.s32.totalorder %s4691_s27, %s4692_s0  ;;  %p4695_p13 = scmp.lt.s32.totalorder %s4691_s27, %s6151_s25 }
 0x17c   :  { %p4696_p0 = scmp.lt.s32.totalorder %s4694_s18, %s4692_s0 }
 0x17e   :  { %s335_s11 = sshll.u32 %s6152_s10, 4  ;;  %p4697_p1 = por %p4696_p0, %p4695_p13  ;;  %s5456_s11 = int_to_ptr.hbm [resolvable:$true] %s335_s11 }
 0x180   :  { %p4698_p2 = pnand %p4697_p1, %p4693_p12 }
 0x182   :  { %4701 = shalt.err (!%p4698_p2)
}
 0x183   :  { %s6153_s29 = sld [smem:[#allocation85_spill]]  ;;  %s5041_s30 = smov [#allocation28]  }
 0x184   :  { %315 = dma.hbm_to_vmem [thread:$0]  %s5451_s8, 3072, %s310_s13, [#allocation24], %s5017_s15, %s5017_s15, %s5018_s16  }
 0x185   :  { %s337_s6 = sshll.u32 %s5041_s30, 4  ;;  %s4714_s2 = sshra.s32 %s5456_s11, 4  ;;  %s338_s6 = int_to_ptr.vmem [resolvable:$true] %s337_s6  ;;  %s4715_s2 = int_to_ptr.hbm [resolvable:$true] %s4714_s2 }
 0x186   :  { %s4716_s22 = scalar_lea.hbm %s4715_s2, 16  ;;  %s4718_s17 = scalar_lea.hbm %s6152_s10, 16 }
 0x187   :  { %p4717_p3 = scmp.ne.s32.totalorder %s4715_s2, %s4716_s22  ;;  %p4719_p4 = scmp.lt.s32.totalorder %s4715_s2, %s6152_s10 }
 0x188   :  { %p4720_p5 = scmp.lt.s32.totalorder %s4718_s17, %s4716_s22 }
 0x189   :  { %s362_s24 = sshll.u32 %s6153_s29, 4  ;;  %s363_s24 = int_to_ptr.hbm [resolvable:$true] %s362_s24 }
 0x18a   :  { %p4721_p6 = por %p4720_p5, %p4719_p4 }
 0x18c   :  { %p4722_p7 = pnand %p4721_p6, %p4717_p3 }
 0x18e   :  { %4725 = shalt.err (!%p4722_p7)
}
 0x18f   :  { %s6154_s26 = sld [smem:[#allocation86_spill]]  ;;  %s5042_s23 = smov [#allocation31]  }
 0x190   :  { %343 = dma.hbm_to_vmem [thread:$0]  %s5456_s11, 256, %s338_s6, [#allocation27], %s5017_s15, %s5017_s15, %s5018_s16  }
 0x191   :  { %s364_s20 = sshll.u32 %s5042_s23, 4  ;;  %s4738_s25 = sshra.s32 %s363_s24, 4  ;;  %s365_s20 = int_to_ptr.vmem [resolvable:$true] %s364_s20  ;;  %s4739_s25 = int_to_ptr.hbm [resolvable:$true] %s4738_s25 }
 0x192   :  { %s4740_s1 = scalar_lea.hbm %s4739_s25, 1  ;;  %s4742_s4 = scalar_lea.hbm %s6153_s29, 1 }
 0x193   :  { %p4741_p8 = scmp.ne.s32.totalorder %s4739_s25, %s4740_s1  ;;  %p4743_p9 = scmp.lt.s32.totalorder %s4739_s25, %s6153_s29 }
 0x194   :  { %p4744_p10 = scmp.lt.s32.totalorder %s4742_s4, %s4740_s1 }
 0x195   :  { %s384_s28 = sshll.u32 %s6154_s26, 4  ;;  %s385_s28 = int_to_ptr.hbm [resolvable:$true] %s384_s28 }
 0x196   :  { %p4745_p11 = por %p4744_p10, %p4743_p9 }
 0x198   :  { %p4746_p12 = pnand %p4745_p11, %p4741_p8 }
 0x19a   :  { %4749 = shalt.err (!%p4746_p12)
}
 0x19b   :  { %367 = dma.hbm_to_vmem [thread:$0]  %s363_s24, 16, %s365_s20, [#allocation30]  }
 0x19c   :  { %s6155_s8 = sld [smem:[#allocation87_spill]]  ;;  %s5043_s7 = smov [#allocation34]  }
 0x19d   :  { %s386_s14 = sshll.u32 %s5043_s7, 4  ;;  %s4762_s10 = sshra.s32 %s385_s28, 4  ;;  %s387_s14 = int_to_ptr.vmem [resolvable:$true] %s386_s14  ;;  %s4763_s10 = int_to_ptr.hbm [resolvable:$true] %s4762_s10 }
 0x19e   :  { %s4764_s11 = scalar_lea.hbm %s4763_s10, 2  ;;  %s4766_s19 = scalar_lea.hbm %s6154_s26, 2 }
 0x19f   :  { %p4765_p13 = scmp.ne.s32.totalorder %s4763_s10, %s4764_s11  ;;  %p4767_p0 = scmp.lt.s32.totalorder %s4763_s10, %s6154_s26 }
 0x1a0   :  { %p4768_p1 = scmp.lt.s32.totalorder %s4766_s19, %s4764_s11 }
 0x1a2   :  { %s407_s5 = sshll.u32 %s6155_s8, 4  ;;  %p4769_p2 = por %p4768_p1, %p4767_p0  ;;  %s5477_s5 = int_to_ptr.hbm [resolvable:$true] %s407_s5 }
 0x1a4   :  { %p4770_p3 = pnand %p4769_p2, %p4765_p13 }
 0x1a6   :  { %4773 = shalt.err (!%p4770_p3)
}
 0x1a7   :  { %389 = dma.hbm_to_vmem [thread:$0]  %s385_s28, 32, %s387_s14, [#allocation33]  }
 0x1a8   :  { %s6156_s13 = sld [smem:[#allocation88_spill]]  ;;  %s5044_s0 = smov [#allocation37]  }
 0x1a9   :  { %s409_s18 = sshll.u32 %s5044_s0, 4  ;;  %s4786_s29 = sshra.s32 %s5477_s5, 4  ;;  %s410_s18 = int_to_ptr.vmem [resolvable:$true] %s409_s18  ;;  %s4787_s29 = int_to_ptr.hbm [resolvable:$true] %s4786_s29 }
 0x1aa   :  { %s4788_s30 = scalar_lea.hbm %s4787_s29, 384  ;;  %s4790_s6 = scalar_lea.hbm %s6155_s8, 384 }
 0x1ab   :  { %p4789_p4 = scmp.ne.s32.totalorder %s4787_s29, %s4788_s30  ;;  %p4791_p5 = scmp.lt.s32.totalorder %s4787_s29, %s6155_s8 }
 0x1ac   :  { %p4792_p6 = scmp.lt.s32.totalorder %s4790_s6, %s4788_s30 }
 0x1ae   :  { %s433_s27 = sshll.u32 %s6156_s13, 4  ;;  %p4793_p7 = por %p4792_p6, %p4791_p5  ;;  %s5482_s27 = int_to_ptr.hbm [resolvable:$true] %s433_s27 }
 0x1b0   :  { %p4794_p8 = pnand %p4793_p7, %p4789_p4 }
 0x1b2   :  { %4797 = shalt.err (!%p4794_p8)
}
 0x1b3   :  { %s6157_s24 = sld [smem:[#allocation95_spill]]  ;;  %s5045_s2 = smov [#allocation40]  }
 0x1b4   :  { %415 = dma.hbm_to_vmem [thread:$0]  %s5477_s5, 6144, %s410_s18, [#allocation36], %s5017_s15, %s5017_s15, %s5018_s16  }
 0x1b5   :  { %s435_s22 = sshll.u32 %s5045_s2, 4  ;;  %s4810_s26 = sshra.s32 %s5482_s27, 4  ;;  %s436_s22 = int_to_ptr.vmem [resolvable:$true] %s435_s22  ;;  %s4811_s26 = int_to_ptr.hbm [resolvable:$true] %s4810_s26 }
 0x1b6   :  { %s4812_s28 = scalar_lea.hbm %s4811_s26, 64  ;;  %s4814_s23 = scalar_lea.hbm %s6156_s13, 64 }
 0x1b7   :  { %p4813_p9 = scmp.ne.s32.totalorder %s4811_s26, %s4812_s28  ;;  %p4815_p10 = scmp.lt.s32.totalorder %s4811_s26, %s6156_s13 }
 0x1b8   :  { %p4816_p11 = scmp.lt.s32.totalorder %s4814_s23, %s4812_s28 }
 0x1b9   :  { %s469_s17 = sshll.u32 %s6157_s24, 4  ;;  %s5492_s17 = int_to_ptr.hbm [resolvable:$true] %s469_s17 }
 0x1ba   :  { %p4817_p12 = por %p4816_p11, %p4815_p10 }
 0x1bc   :  { %p4818_p13 = pnand %p4817_p12, %p4813_p9 }
 0x1be   :  { %4821 = shalt.err (!%p4818_p13)
}
 0x1bf   :  { %s6158_s20 = sld [smem:[#allocation96_spill]]  ;;  %s5046_s1 = smov [#allocation43]  }
 0x1c0   :  { %441 = dma.hbm_to_vmem [thread:$0]  %s5482_s27, 1024, %s436_s22, [#allocation39], %s5017_s15, %s5017_s15, %s5018_s16  }
 0x1c1   :  { %s471_s4 = sshll.u32 %s5046_s1, 4  ;;  %s4834_s8 = sshra.s32 %s5492_s17, 4  ;;  %s472_s4 = int_to_ptr.vmem [resolvable:$true] %s471_s4  ;;  %s4835_s8 = int_to_ptr.hbm [resolvable:$true] %s4834_s8 }
 0x1c2   :  { %s4836_s7 = scalar_lea.hbm %s4835_s8, 384  ;;  %s4838_s14 = scalar_lea.hbm %s6157_s24, 384 }
 0x1c3   :  { %p4837_p0 = scmp.ne.s32.totalorder %s4835_s8, %s4836_s7  ;;  %p4839_p1 = scmp.lt.s32.totalorder %s4835_s8, %s6157_s24 }
 0x1c4   :  { %p4840_p2 = scmp.lt.s32.totalorder %s4838_s14, %s4836_s7 }
 0x1c5   :  { %s495_s25 = sshll.u32 %s6158_s20, 4  ;;  %s5502_s25 = int_to_ptr.hbm [resolvable:$true] %s495_s25 }
 0x1c6   :  { %p4841_p3 = por %p4840_p2, %p4839_p1 }
 0x1c8   :  { %p4842_p4 = pnand %p4841_p3, %p4837_p0 }
 0x1ca   :  { %4845 = shalt.err (!%p4842_p4)
}
 0x1cb   :  { %s6159_s5 = sld [smem:[#allocation98_spill]]  ;;  %s5047_s10 = smov [#allocation46]  }
 0x1cc   :  { %477 = dma.hbm_to_vmem [thread:$0]  %s5492_s17, 6144, %s472_s4, [#allocation42], %s5017_s15, %s5017_s15, %s5018_s16  }
 0x1cd   :  { %s497_s11 = sshll.u32 %s5047_s10, 4  ;;  %s4858_s13 = sshra.s32 %s5502_s25, 4  ;;  %s498_s11 = int_to_ptr.vmem [resolvable:$true] %s497_s11  ;;  %s4859_s13 = int_to_ptr.hbm [resolvable:$true] %s4858_s13 }
 0x1ce   :  { %s4860_s27 = scalar_lea.hbm %s4859_s13, 384  ;;  %s4862_s0 = scalar_lea.hbm %s6158_s20, 384 }
 0x1cf   :  { %p4861_p5 = scmp.ne.s32.totalorder %s4859_s13, %s4860_s27  ;;  %p4863_p6 = scmp.lt.s32.totalorder %s4859_s13, %s6158_s20 }
 0x1d0   :  { %p4864_p7 = scmp.lt.s32.totalorder %s4862_s0, %s4860_s27 }
 0x1d1   :  { %s521_s19 = sshll.u32 %s6159_s5, 4  ;;  %s522_s19 = int_to_ptr.hbm [resolvable:$true] %s521_s19 }
 0x1d2   :  { %p4865_p8 = por %p4864_p7, %p4863_p6 }
 0x1d4   :  { %p4866_p9 = pnand %p4865_p8, %p4861_p5 }
 0x1d6   :  { %4869 = shalt.err (!%p4866_p9)
}
 0x1d7   :  { %503 = dma.hbm_to_vmem [thread:$0]  %s5502_s25, 6144, %s498_s11, [#allocation45], %s5017_s15, %s5017_s15, %s5018_s16  }
 0x1d8   :  { %s5048_s18 = smov [#allocation49]   ;;  %s4882_s30 = sshra.s32 %s522_s19, 4  ;;  %s4883_s30 = int_to_ptr.hbm [resolvable:$true] %s4882_s30 }
 0x1d9   :  { %s523_s29 = sshll.u32 %s5048_s18, 4  ;;  %s4884_s6 = scalar_lea.hbm %s4883_s30, 32  ;;  %s524_s29 = int_to_ptr.vmem [resolvable:$true] %s523_s29 }
 0x1da   :  { %p4885_p10 = scmp.ne.s32.totalorder %s4883_s30, %s4884_s6  ;;  %s4886_s24 = scalar_lea.hbm %s6159_s5, 32 }
 0x1db   :  { %p4887_p11 = scmp.lt.s32.totalorder %s4883_s30, %s6159_s5  ;;  %p4888_p12 = scmp.lt.s32.totalorder %s4886_s24, %s4884_s6 }
 0x1dd   :  { %p4889_p13 = por %p4888_p12, %p4887_p11 }
 0x1df   :  { %p4890_p0 = pnand %p4889_p13, %p4885_p10 }
 0x1e1   :  { %4893 = shalt.err (!%p4890_p0)
}
 0x1e2   :  { %529 = dma.hbm_to_vmem [thread:$0]  %s522_s19, 512, %s524_s29, [#allocation48], %s5017_s15, %s5017_s15, %s5018_s16  }
 0x1e3   :  { %4930 = dma.done.wait [#allocation3], 3072  }
 0x1e4   :  { %4931 = vsyncadd [#allocation3], 4294964224 }
 0x1e5   :  { %4932 = dma.done.wait [#allocation6], 4352  }
 0x1e6   :  { %4933 = vsyncadd [#allocation6], 4294962944 }
 0x1e7   :  { %4934 = dma.done.wait [#allocation9], 32  }
 0x1e8   :  { %4935 = vsyncadd [#allocation9], 4294967264 }
 0x1e9   :  { %4936 = dma.done.wait [#allocation12], 64  }
 0x1ea   :  { %4937 = vsyncadd [#allocation12], 4294967232 }
 0x1eb   :  { %4938 = dma.done.wait [#allocation15], 3088  }
 0x1ec   :  { %4939 = vsyncadd [#allocation15], 4294964208 }
 0x1ed   :  { %4940 = dma.done.wait [#allocation18], 1040  }
 0x1ee   :  { %4941 = vsyncadd [#allocation18], 4294966256 }
 0x1ef   :  { %4942 = dma.done.wait [#allocation21], 48  }
 0x1f0   :  { %4943 = vsyncadd [#allocation21], 4294967248 }
 0x1f1   :  { %4944 = dma.done.wait [#allocation24], 3104  }
 0x1f2   :  { %4945 = vsyncadd [#allocation24], 4294964192 }
 0x1f3   :  { %4946 = dma.done.wait [#allocation27], 768  }
 0x1f4   :  { %4947 = vsyncadd [#allocation27], 4294966528 }
 0x1f5   :  { %4948 = dma.done.wait [#allocation30], 32  }
 0x1f6   :  { %4949 = vsyncadd [#allocation30], 4294967264 }
 0x1f7   :  { %4950 = dma.done.wait [#allocation33], 64  }
 0x1f8   :  { %4951 = vsyncadd [#allocation33], 4294967232 }
 0x1f9   :  { %4952 = dma.done.wait [#allocation36], 12288  }
 0x1fa   :  { %4953 = vsyncadd [#allocation36], 4294955008 }
 0x1fb   :  { %4954 = dma.done.wait [#allocation39], 7168  }
 0x1fc   :  { %4955 = vsyncadd [#allocation39], 4294960128 }
 0x1fd   :  { %4956 = dma.done.wait [#allocation42], 6160  }
 0x1fe   :  { %4957 = vsyncadd [#allocation42], 4294961136 }
 0x1ff   :  { %4958 = dma.done.wait [#allocation45], 12288  }
 0x200   :  { %4959 = vsyncadd [#allocation45], 4294955008 }
 0x201   :  { %4960 = dma.done.wait [#allocation48], 4608  }
 0x202   :  { %4961 = vsyncadd [#allocation48], 4294962688  ;;  %s6160_s2 = sld [smem:[#allocation68_spill]]  ;;  %v691_v0 = vld [vmem:[#allocation16 + $0x38] sm:$0xff]  ;;  %v690_v1 = vld [vmem:[#allocation16 + $0x30] sm:$0xff]  ;;  %vm692_vm0 = vcmask 523264  }
 0x203   :  { %713 = vmatpush.msra.mxu0 %v691_v0  ;;  %v751_v2 = vld [vmem:[#allocation16 + $0xb8] sm:$0xff]  ;;  %v689_v3 = vld [vmem:[#allocation16 + $0x28] sm:$0xff]  ;;  %v750_v4 = vld [vmem:[#allocation16 + $0xb0] sm:$0xff]  ;;  %vm785_vm1 = vcmask 261120   ;;  %s6161_s22 = sld [smem:[#allocation76_spill]]  ;;  %vm1389_vm2 = vcmask 130048  }
 0x204   :  { %760 = vmatpush.msra.mxu1 %v751_v2  ;;  %v749_v5 = vld [vmem:[#allocation16 + $0xa8] sm:$0xff]  ;;  %v688_v6 = vld [vmem:[#allocation16 + $0x20] sm:$0xff]  ;;  %v687_v10 = vld [vmem:[#allocation16 + $0x18] sm:$0xff]  ;;  %s6162_s17 = sld [smem:[#allocation78_spill]]  ;;  %vm1874_vm3 = vcmask 64512   ;;  %s5049_s11 = smov [#allocation50]  }
 0x205   :  { %714 = vmatpush.msra.mxu0 %v690_v1  ;;  %v4109_v7 = vld [vmem:[#allocation22] ss:$0 sm:$0xff]  ;;  %v686_v11 = vld [vmem:[#allocation16 + $0x10] sm:$0xff]  ;;  %v4110_v12 = vld [vmem:[#allocation22 + $0x1] ss:$0 sm:$0xff]  ;;  %s6163_s26 = sld [smem:[#allocation77_spill]] }
 0x206   :  { %761 = vmatpush.msra.mxu1 %v750_v4  ;;  %v748_v8 = vld [vmem:[#allocation16 + $0xa0] sm:$0xff]  ;;  %v747_v13 = vld [vmem:[#allocation16 + $0x98] sm:$0xff]  ;;  %v746_v14 = vld [vmem:[#allocation16 + $0x90] sm:$0xff]  ;;  %s6164_s28 = sld [smem:[#allocation82_spill]]  ;;  %s3710_s19 = sshll.u32 %s5049_s11, 4  ;;  %s3711_s19 = int_to_ptr.vmem [resolvable:$true] %s3710_s19 }
 0x207   :  { %715 = vmatpush.msra.mxu0 %v689_v3  ;;  %v685_v15 = vld [vmem:[#allocation16 + $0x8] sm:$0xff]  ;;  %v684_v18 = vld [vmem:[#allocation16] sm:$0xff]  ;;  %v5552_v38 = vld [vmem:[#allocation17 + $0x10] sm:$0xff]  ;;  %s6165_s23 = sld [smem:[#allocation84_spill]]  ;;  %s3712_s13 = sshll.u32 %s5318_s12, 4  ;;  %s3713_s13 = int_to_ptr.hbm [resolvable:$true] %s3712_s13 }
 0x208   :  { %v668_v9 = vld [vmem:[%s6160_s2] sm:$0xff]  ;;  %762 = vmatpush.msra.mxu1 %v749_v5  ;;  %v669_v20 = vld [vmem:[%s6160_s2 + $0x8] sm:$0xff]  ;;  %v670_v24 = vld [vmem:[%s6160_s2 + $0x10] sm:$0xff]  ;;  %s6166_s20 = sld [smem:[#allocation70_spill]]  ;;  %s4918_s27 = sshra.s32 %s3713_s13, 4  ;;  %s4919_s27 = int_to_ptr.hbm [resolvable:$true] %s4918_s27 }
 0x209   :  { %716 = vmatpush.msra.mxu0 %v688_v6  ;;  %v674_v16 = vmul.f32 %v4109_v7, %v668_v9  ;;  %v745_v17 = vld [vmem:[#allocation16 + $0x88] sm:$0xff]  ;;  %v744_v19 = vld [vmem:[#allocation16 + $0x80] sm:$0xff]  ;;  %v675_v22 = vmul.f32 %v4109_v7, %v669_v20  ;;  %v676_v25 = vmul.f32 %v4109_v7, %v670_v24  ;;  %v742_v39 = vld [vmem:[#allocation16 + $0x78] sm:$0xff]  ;;  %s6167_s25 = sld [smem:[#allocation72_spill]]  ;;  %s4920_s0 = scalar_lea.hbm %s4919_s27, 32 }
 0x20a   :  { %763 = vmatpush.msra.mxu1 %v748_v8  ;;  %v671_v27 = vld [vmem:[%s6160_s2 + $0x18] sm:$0xff]  ;;  %v741_v41 = vld [vmem:[#allocation16 + $0x70] sm:$0xff]  ;;  %v740_v42 = vld [vmem:[#allocation16 + $0x68] sm:$0xff]  ;;  %s6169_s1 = sld [smem:[#allocation100_spill]]  ;;  %p4921_p1 = scmp.ne.s32.totalorder %s4919_s27, %s4920_s0 }
 0x20b   :  { %717 = vmatpush.msra.mxu0 %v687_v10  ;;  %v5526_v21 = vadd.f32 %v4110_v12, %v674_v16  ;;  %v5532_v23 = vadd.f32 %v4110_v12, %v675_v22  ;;  %v5539_v26 = vadd.f32 %v4110_v12, %v676_v25  ;;  %v677_v28 = vmul.f32 %v4109_v7, %v671_v27  ;;  %v5554_v40 = vld [vmem:[#allocation17] sm:$0xff]  ;;  %v5560_v44 = vld [vmem:[#allocation17 + $0x18] sm:$0xff]  ;;  %v5562_v46 = vld [vmem:[#allocation17 + $0x8] sm:$0xff]  ;;  %s6171_s4 = sld [smem:[#allocation93_spill]]  ;;  %s4922_s18 = scalar_lea.hbm %s5318_s12, 32 }
 0x20c   :  { %764 = vmatpush.msra.mxu1 %v747_v13  ;;  %v739_v43 = vld [vmem:[#allocation16 + $0x60] sm:$0xff]  ;;  %v738_v45 = vld [vmem:[#allocation16 + $0x58] sm:$0xff]  ;;  %v737_v47 = vld [vmem:[#allocation16 + $0x50] sm:$0xff]  ;;  %s6172_s8 = sld [smem:[#allocation99_spill]]  ;;  %p4923_p2 = scmp.lt.s32.totalorder %s4919_s27, %s5318_s12 }
 0x20d   :  { %718 = vmatpush.msra.mxu0 %v686_v11  ;;  %v5546_v29 = vadd.f32 %v4110_v12, %v677_v28  ;;  %v945_v48 = vld [vmem:[%s6161_s22 + $0x78] sm:$0xff]  ;;  %v736_v51 = vld [vmem:[#allocation16 + $0x48] sm:$0xff]  ;;  %v5583_v55 = vld [vmem:[#allocation17 + $0x30] sm:$0xff]  ;;  %s6173_s7 = sld [smem:[#allocation92_spill]]  ;;  %p4924_p3 = scmp.lt.s32.totalorder %s4922_s18, %s4920_s0 }
 0x20e   :  { %765 = vmatpush.msra.mxu1 %v746_v14  ;;  %v3843_v49 = vld [vmem:[%s6161_s22 + $0x178] sm:$0xff]  ;;  %v5577_v54 = vld [vmem:[#allocation17 + $0x28] sm:$0xff]  ;;  %v944_v57 = vld [vmem:[%s6161_s22 + $0x70] sm:$0xff]  ;;  %s6175_s14 = sld [smem:[#allocation89_spill]] }
 0x20f   :  { %719 = vmatpush.msra.mxu0 %v685_v15  ;;  %v3827_v50 = vld [vmem:[%s6161_s22 + $0xf8] sm:$0xff]  ;;  %v3842_v58 = vld [vmem:[%s6161_s22 + $0x170] sm:$0xff]  ;;  %v943_v60 = vld [vmem:[%s6161_s22 + $0x68] sm:$0xff]  ;;  %s6176_s5 = sld [smem:[#allocation90_spill]]  ;;  %p4925_p4 = por %p4924_p3, %p4923_p2 }
 0x210   :  { %766 = vmatpush.msra.mxu1 %v745_v17  ;;  %v735_v52 = vld [vmem:[#allocation16 + $0x40] sm:$0xff]  ;;  %v5589_v56 = vld [vmem:[#allocation17 + $0x38] sm:$0xff]  ;;  %v3841_v61 = vld [vmem:[%s6161_s22 + $0x168] sm:$0xff]  ;;  %s6177_s10 = sld [smem:[#allocation91_spill]] }
 0x211   :  { %720 = vmatpush.msra.mxu0 %v684_v18  ;;  %v5571_v53 = vld [vmem:[#allocation17 + $0x20] sm:$0xff]  ;;  %v3826_v59 = vld [vmem:[%s6161_s22 + $0xf0] sm:$0xff]  ;;  %v3825_v62 = vld [vmem:[%s6161_s22 + $0xe8] sm:$0xff]  ;;  %p4926_p5 = pnand %p4925_p4, %p4921_p1 }
 0x212   :  { %3792 = vmatmul.msk.f32.vlgmr.msra.gmra.mxu0 %vm692_vm0, %v5526_v21  ;;  %767 = vmatpush.msra.mxu1 %v744_v19  ;;  %v942_v63 = vld [vmem:[%s6161_s22 + $0x60] sm:$0xff]  ;;  %v941_v2 = vld [vmem:[%s6161_s22 + $0x58] sm:$0xff]  ;;  %v940_v5 = vld [vmem:[%s6161_s22 + $0x50] sm:$0xff] }
 0x213   :  { %3796 = vmatmul.msk.f32.vlgmr.msra.gmra.mxu1 %vm692_vm0, %v5526_v21  ;;  %946 = vmatpush.msrb.mxu0 %v945_v48  ;;  %v3840_v0 = vld [vmem:[%s6161_s22 + $0x160] sm:$0xff]  ;;  %v3839_v3 = vld [vmem:[%s6161_s22 + $0x158] sm:$0xff]  ;;  %v3838_v6 = vld [vmem:[%s6161_s22 + $0x150] sm:$0xff] }
 0x214   :  { %1009 = vmatpush.msrb.mxu1 %v3843_v49  ;;  %v3824_v1 = vld [vmem:[%s6161_s22 + $0xe0] sm:$0xff]  ;;  %v3823_v4 = vld [vmem:[%s6161_s22 + $0xd8] sm:$0xff]  ;;  %v3822_v7 = vld [vmem:[%s6161_s22 + $0xd0] sm:$0xff] }
 0x215   :  { %947 = vmatpush.msrb.mxu0 %v944_v57  ;;  %v939_v8 = vld [vmem:[%s6161_s22 + $0x48] sm:$0xff]  ;;  %v938_v11 = vld [vmem:[%s6161_s22 + $0x40] sm:$0xff]  ;;  %v937_v14 = vld [vmem:[%s6161_s22 + $0x38] sm:$0xff] }
 0x216   :  { %1010 = vmatpush.msrb.mxu1 %v3842_v58  ;;  %v3837_v9 = vld [vmem:[%s6161_s22 + $0x148] sm:$0xff]  ;;  %v3836_v12 = vld [vmem:[%s6161_s22 + $0x140] sm:$0xff]  ;;  %v3835_v15 = vld [vmem:[%s6161_s22 + $0x138] sm:$0xff] }
 0x217   :  { %948 = vmatpush.msrb.mxu0 %v943_v60  ;;  %v3821_v10 = vld [vmem:[%s6161_s22 + $0xc8] sm:$0xff]  ;;  %v3820_v13 = vld [vmem:[%s6161_s22 + $0xc0] sm:$0xff]  ;;  %v3819_v16 = vld [vmem:[%s6161_s22 + $0xb8] sm:$0xff] }
 0x218   :  { %1011 = vmatpush.msrb.mxu1 %v3841_v61  ;;  %v936_v17 = vld [vmem:[%s6161_s22 + $0x30] sm:$0xff]  ;;  %v935_v20 = vld [vmem:[%s6161_s22 + $0x28] sm:$0xff]  ;;  %v3832_v24 = vld [vmem:[%s6161_s22 + $0x120] sm:$0xff] }
 0x219   :  { %949 = vmatpush.msrb.mxu0 %v942_v63  ;;  %v3834_v18 = vld [vmem:[%s6161_s22 + $0x130] sm:$0xff]  ;;  %v3817_v22 = vld [vmem:[%s6161_s22 + $0xa8] sm:$0xff]  ;;  %v3816_v25 = vld [vmem:[%s6161_s22 + $0xa0] sm:$0xff] }
 0x21a   :  { %3793 = vmatmul.msk.f32.gmra.mxu0 %vm692_vm0, %v5532_v23  ;;  %1012 = vmatpush.msrb.mxu1 %v3840_v0  ;;  %v3818_v19 = vld [vmem:[%s6161_s22 + $0xb0] sm:$0xff]  ;;  %v3831_v27 = vld [vmem:[%s6161_s22 + $0x118] sm:$0xff]  ;;  %v4113_v58 = vld [vmem:[#allocation23 + $0x1] ss:$0 sm:$0xff] }
 0x21b   :  { %3797 = vmatmul.msk.f32.gmra.mxu1 %vm692_vm0, %v5532_v23  ;;  %950 = vmatpush.msrb.mxu0 %v941_v2  ;;  %v3815_v28 = vld [vmem:[%s6161_s22 + $0x98] sm:$0xff] }
 0x21c   :  { %1013 = vmatpush.msrb.mxu1 %v3839_v3  ;;  %v4111_v49 = vld [vmem:[#allocation19] ss:$0 sm:$0xff] }
 0x21d   :  { %951 = vmatpush.msrb.mxu0 %v940_v5 }
 0x21e   :  { %1014 = vmatpush.msrb.mxu1 %v3838_v6 }
 0x21f   :  { %952 = vmatpush.msrb.mxu0 %v939_v8 }
 0x220   :  { %1015 = vmatpush.msrb.mxu1 %v3837_v9 }
 0x221   :  { %953 = vmatpush.msrb.mxu0 %v938_v11 }
 0x222   :  { %3794 = vmatmul.msk.f32.gmra.mxu0 %vm692_vm0, %v5539_v26  ;;  %1016 = vmatpush.msrb.mxu1 %v3836_v12 }
 0x223   :  { %3798 = vmatmul.msk.f32.gmra.mxu1 %vm692_vm0, %v5539_v26  ;;  %954 = vmatpush.msrb.mxu0 %v937_v14 }
 0x224   :  { %1017 = vmatpush.msrb.mxu1 %v3835_v15 }
 0x225   :  { %955 = vmatpush.msrb.mxu0 %v936_v17 }
 0x226   :  { %1018 = vmatpush.msrb.mxu1 %v3834_v18 }
 0x227   :  { %956 = vmatpush.msrb.mxu0 %v935_v20 }
 0x22a   :  { %3795 = vmatmul.msk.f32.gmra.mxu0 %vm692_vm0, %v5546_v29 }
 0x22b   :  { %3799 = vmatmul.msk.f32.gmra.mxu1 %vm692_vm0, %v5546_v29 }
 0x28f   :  { %v722_v30 = vpop.f32.mrf.mxu0 }
 0x290   :  { %v769_v31 = vpop.f32.mrf.mxu1 }
 0x297   :  { %v725_v32 = vpop.f32.mrf.mxu0 }
 0x298   :  { %v772_v33 = vpop.f32.mrf.mxu1 }
 0x29f   :  { %v728_v34 = vpop.f32.mrf.mxu0 }
 0x2a0   :  { %v775_v35 = vpop.f32.mrf.mxu1 }
 0x2a7   :  { %v731_v36 = vpop.f32.mrf.mxu0 }
 0x2a8   :  { %810 = vmatpush.msra.mxu2 %v731_v36  ;;  %4019 = vmatpush.msra.mxu3 %v731_v36  ;;  %v778_v37 = vpop.f32.mrf.mxu1  ;;  %v3828_v36 = vld [vmem:[%s6161_s22 + $0x100] sm:$0xff] }
 0x2aa   :  { %811 = vmatpush.msra.mxu2 %v728_v34  ;;  %4020 = vmatpush.msra.mxu3 %v728_v34  ;;  %v3813_v34 = vld [vmem:[%s6161_s22 + $0x88] sm:$0xff] }
 0x2ac   :  { %812 = vmatpush.msra.mxu2 %v725_v32  ;;  %4021 = vmatpush.msra.mxu3 %v725_v32  ;;  %v931_v32 = vld [vmem:[%s6161_s22 + $0x8] sm:$0xff] }
 0x2ae   :  { %813 = vmatpush.msra.mxu2 %v722_v30  ;;  %4022 = vmatpush.msra.mxu3 %v722_v30  ;;  %v3830_v30 = vld [vmem:[%s6161_s22 + $0x110] sm:$0xff] }
 0x2af   :  { %3802 = vmatmul.msk.f32.vlgmr.msra.gmra.mxu3 %vm785_vm1, %v5552_v38  ;;  %3800 = vmatmul.msk.f32.vlgmr.msra.gmra.mxu2 %vm785_vm1, %v5554_v40 }
 0x2b0   :  { %885 = vmatpush.msrb.mxu2 %v778_v37  ;;  %835 = vmatpush.msrb.mxu3 %v742_v39  ;;  %v3812_v37 = vld [vmem:[%s6161_s22 + $0x80] sm:$0xff] }
 0x2b2   :  { %886 = vmatpush.msrb.mxu2 %v775_v35  ;;  %836 = vmatpush.msrb.mxu3 %v741_v41  ;;  %v930_v35 = vld [vmem:[%s6161_s22] sm:$0xff] }
 0x2b4   :  { %887 = vmatpush.msrb.mxu2 %v772_v33  ;;  %837 = vmatpush.msrb.mxu3 %v740_v42  ;;  %v3829_v33 = vld [vmem:[%s6161_s22 + $0x108] sm:$0xff] }
 0x2b6   :  { %888 = vmatpush.msrb.mxu2 %v769_v31  ;;  %838 = vmatpush.msrb.mxu3 %v739_v43  ;;  %v3814_v31 = vld [vmem:[%s6161_s22 + $0x90] sm:$0xff] }
 0x2b7   :  { %3803 = vmatmul.msk.f32.gmra.mxu3 %vm785_vm1, %v5560_v44  ;;  %3801 = vmatmul.msk.f32.gmra.mxu2 %vm785_vm1, %v5562_v46 }
 0x2b8   :  { %839 = vmatpush.msrb.mxu3 %v738_v45  ;;  %1067 = vmatpush.msra.mxu2 %v3827_v50 }
 0x2ba   :  { %840 = vmatpush.msrb.mxu3 %v737_v47  ;;  %1068 = vmatpush.msra.mxu2 %v3826_v59 }
 0x2bc   :  { %841 = vmatpush.msrb.mxu3 %v736_v51  ;;  %1069 = vmatpush.msra.mxu2 %v3825_v62 }
 0x2be   :  { %842 = vmatpush.msrb.mxu3 %v735_v52  ;;  %1070 = vmatpush.msra.mxu2 %v3824_v1  ;;  %v4112_v52 = vld [vmem:[#allocation23] ss:$0 sm:$0xff] }
 0x2bf   :  { %3804 = vmatmul.msk.f32.vlgmr.msrb.gmra.mxu3 %vm692_vm0, %v5526_v21  ;;  %3808 = vmatmul.msk.f32.vlgmr.msrb.gmra.mxu2 %vm785_vm1, %v5571_v53  ;;  %v3833_v21 = vld [vmem:[%s6161_s22 + $0x128] sm:$0xff] }
 0x2c0   :  { %1071 = vmatpush.msra.mxu2 %v3823_v4  ;;  %1019 = vmatpush.msrb.mxu1 %v3833_v21 }
 0x2c2   :  { %1072 = vmatpush.msra.mxu2 %v3822_v7  ;;  %1020 = vmatpush.msrb.mxu1 %v3832_v24 }
 0x2c4   :  { %1073 = vmatpush.msra.mxu2 %v3821_v10  ;;  %1021 = vmatpush.msrb.mxu1 %v3831_v27 }
 0x2c6   :  { %1074 = vmatpush.msra.mxu2 %v3820_v13  ;;  %1022 = vmatpush.msrb.mxu1 %v3830_v30  ;;  %v1155_v30 = vld [vmem:[%s6162_s17 + $0x70] sm:$0xff] }
 0x2c7   :  { %3805 = vmatmul.msk.f32.gmra.mxu3 %vm692_vm0, %v5532_v23  ;;  %3809 = vmatmul.msk.f32.gmra.mxu2 %vm785_vm1, %v5577_v54  ;;  %v934_v23 = vld [vmem:[%s6161_s22 + $0x20] sm:$0xff] }
 0x2c8   :  { %1075 = vmatpush.msra.mxu2 %v3819_v16  ;;  %957 = vmatpush.msrb.mxu0 %v934_v23 }
 0x2c9   :  { %1023 = vmatpush.msrb.mxu1 %v3829_v33  ;;  %v1153_v33 = vld [vmem:[%s6162_s17 + $0x60] sm:$0xff] }
 0x2ca   :  { %1076 = vmatpush.msra.mxu2 %v3818_v19 }
 0x2cb   :  { %1024 = vmatpush.msrb.mxu1 %v3828_v36  ;;  %v3865_v36 = vld [vmem:[%s6162_s17 + $0xe8] sm:$0xff] }
 0x2cc   :  { %1077 = vmatpush.msra.mxu2 %v3817_v22 }
 0x2ce   :  { %1078 = vmatpush.msra.mxu2 %v3816_v25 }
 0x2cf   :  { %3806 = vmatmul.msk.f32.gmra.mxu3 %vm692_vm0, %v5539_v26  ;;  %3810 = vmatmul.msk.f32.gmra.mxu2 %vm785_vm1, %v5583_v55  ;;  %v933_v26 = vld [vmem:[%s6161_s22 + $0x18] sm:$0xff] }
 0x2d0   :  { %958 = vmatpush.msrb.mxu0 %v933_v26  ;;  %1079 = vmatpush.msra.mxu2 %v3815_v28 }
 0x2d2   :  { %1080 = vmatpush.msra.mxu2 %v3814_v31  ;;  %v1154_v31 = vld [vmem:[%s6162_s17 + $0x68] sm:$0xff] }
 0x2d4   :  { %1081 = vmatpush.msra.mxu2 %v3813_v34  ;;  %v3866_v34 = vld [vmem:[%s6162_s17 + $0xf0] sm:$0xff] }
 0x2d6   :  { %1082 = vmatpush.msra.mxu2 %v3812_v37  ;;  %v1151_v37 = vld [vmem:[%s6162_s17 + $0x50] sm:$0xff] }
 0x2d7   :  { %3807 = vmatmul.msk.f32.gmra.mxu3 %vm692_vm0, %v5546_v29  ;;  %3811 = vmatmul.msk.f32.gmra.mxu2 %vm785_vm1, %v5589_v56  ;;  %v932_v29 = vld [vmem:[%s6161_s22 + $0x10] sm:$0xff] }
 0x2d8   :  { %959 = vmatpush.msrb.mxu0 %v932_v29  ;;  %v1156_v29 = vld [vmem:[%s6162_s17 + $0x78] sm:$0xff] }
 0x2d9   :  { %1157 = vmatpush.msra.mxu1 %v1156_v29 }
 0x2da   :  { %960 = vmatpush.msrb.mxu0 %v931_v32  ;;  %v3867_v32 = vld [vmem:[%s6162_s17 + $0xf8] sm:$0xff] }
 0x2db   :  { %1158 = vmatpush.msra.mxu1 %v1155_v30  ;;  %v1316_v30 = vld [vmem:[#allocation25 + $0x38] sm:$0xff] }
 0x2dc   :  { %961 = vmatpush.msrb.mxu0 %v930_v35  ;;  %v1152_v35 = vld [vmem:[%s6162_s17 + $0x58] sm:$0xff] }
 0x2dd   :  { %1159 = vmatpush.msra.mxu1 %v1154_v31  ;;  %v1363_v31 = vld [vmem:[#allocation25 + $0xb8] sm:$0xff] }
 0x2df   :  { %1160 = vmatpush.msra.mxu1 %v1153_v33  ;;  %v1362_v33 = vld [vmem:[#allocation25 + $0xb0] sm:$0xff] }
 0x2e1   :  { %1161 = vmatpush.msra.mxu1 %v1152_v35  ;;  %v1361_v35 = vld [vmem:[#allocation25 + $0xa8] sm:$0xff] }
 0x2e3   :  { %1162 = vmatpush.msra.mxu1 %v1151_v37  ;;  %v1313_v37 = vld [vmem:[#allocation25 + $0x20] sm:$0xff] }
 0x332   :  { %v821_v39 = vpop.f32.mrf.mxu3  ;;  %v815_v41 = vpop.f32.mrf.mxu2 }
 0x33a   :  { %v824_v42 = vpop.f32.mrf.mxu3  ;;  %v818_v43 = vpop.f32.mrf.mxu2 }
 0x342   :  { %v844_v45 = vpop.f32.mrf.mxu3  ;;  %v890_v48 = vpop.f32.mrf.mxu2 }
 0x343   :  { %v845_v47 = vadd.f32 %v844_v45, %v815_v41  ;;  %v1150_v41 = vld [vmem:[%s6162_s17 + $0x48] sm:$0xff] }
 0x344   :  { %1163 = vmatpush.msra.mxu1 %v1150_v41  ;;  %v3861_v45 = vld [vmem:[%s6162_s17 + $0xc8] sm:$0xff] }
 0x345   :  { %v902_v50 = vadd.f32 %v890_v48, %v845_v47  ;;  %v1147_v47 = vld [vmem:[%s6162_s17 + $0x30] sm:$0xff]  ;;  %v3860_v48 = vld [vmem:[%s6162_s17 + $0xc0] sm:$0xff] }
 0x347   :  { %v910_v51 = vadd.f32 %v4111_v49, %v902_v50  ;;  %v3857_v50 = vld [vmem:[%s6162_s17 + $0xa8] sm:$0xff] }
 0x349   :  { %v914_v57 = vmax.f32 %v910_v51, 0.0  ;;  %v1145_v51 = vld [vmem:[%s6162_s17 + $0x20] sm:$0xff] }
 0x34a   :  { %v847_v59 = vpop.f32.mrf.mxu3  ;;  %v893_v61 = vpop.f32.mrf.mxu2 }
 0x34b   :  { %v848_v60 = vadd.f32 %v847_v59, %v818_v43  ;;  %v920_v62 = vmul.f32 %v4112_v52, %v914_v57  ;;  %v1148_v43 = vld [vmem:[%s6162_s17 + $0x38] sm:$0xff]  ;;  %v1143_v57 = vld [vmem:[%s6162_s17 + $0x10] sm:$0xff]  ;;  %v1142_v59 = vld [vmem:[%s6162_s17 + $0x8] sm:$0xff] }
 0x34d   :  { %v903_v63 = vadd.f32 %v893_v61, %v848_v60  ;;  %v926_v0 = vadd.f32 %v4113_v58, %v920_v62  ;;  %v3853_v60 = vld [vmem:[%s6162_s17 + $0x88] sm:$0xff] }
 0x34f   :  { %v911_v1 = vadd.f32 %v4111_v49, %v903_v63  ;;  %962 = vmatmul.f32.vlgmr.msrb.gmra.mxu0 %v926_v0  ;;  %1025 = vmatmul.f32.vlgmr.msrb.gmra.mxu1 %v926_v0 }
 0x350   :  { %1083 = vmatmul.f32.vlgmr.msra.gmra.mxu2 %v926_v0 }
 0x351   :  { %v915_v2 = vmax.f32 %v911_v1, 0.0  ;;  %v4114_v1 = vld [vmem:[#allocation20] ss:$0 sm:$0xff] }
 0x352   :  { %v850_v3 = vpop.f32.mrf.mxu3  ;;  %v896_v5 = vpop.f32.mrf.mxu2 }
 0x353   :  { %v851_v4 = vadd.f32 %v850_v3, %v821_v39  ;;  %v921_v6 = vmul.f32 %v4112_v52, %v915_v2  ;;  %v3864_v39 = vld [vmem:[%s6162_s17 + $0xe0] sm:$0xff] }
 0x355   :  { %v904_v7 = vadd.f32 %v896_v5, %v851_v4  ;;  %v927_v8 = vadd.f32 %v4113_v58, %v921_v6 }
 0x357   :  { %v912_v9 = vadd.f32 %v4111_v49, %v904_v7  ;;  %965 = vmatmul.f32.gmra.mxu0 %v927_v8  ;;  %1028 = vmatmul.f32.gmra.mxu1 %v927_v8 }
 0x358   :  { %1086 = vmatmul.f32.gmra.mxu2 %v927_v8 }
 0x359   :  { %v916_v10 = vmax.f32 %v912_v9, 0.0 }
 0x35a   :  { %v853_v11 = vpop.f32.mrf.mxu3  ;;  %v899_v13 = vpop.f32.mrf.mxu2 }
 0x35b   :  { %v854_v12 = vadd.f32 %v853_v11, %v824_v42  ;;  %v922_v14 = vmul.f32 %v4112_v52, %v916_v10  ;;  %v3862_v42 = vld [vmem:[%s6162_s17 + $0xd0] sm:$0xff] }
 0x35d   :  { %v905_v15 = vadd.f32 %v899_v13, %v854_v12  ;;  %v928_v16 = vadd.f32 %v4113_v58, %v922_v14 }
 0x35f   :  { %v913_v17 = vadd.f32 %v4111_v49, %v905_v15  ;;  %968 = vmatmul.f32.gmra.mxu0 %v928_v16  ;;  %1031 = vmatmul.f32.gmra.mxu1 %v928_v16  ;;  %v1146_v49 = vld [vmem:[%s6162_s17 + $0x28] sm:$0xff] }
 0x360   :  { %1089 = vmatmul.f32.gmra.mxu2 %v928_v16 }
 0x361   :  { %v917_v18 = vmax.f32 %v913_v17, 0.0 }
 0x363   :  { %v923_v19 = vmul.f32 %v4112_v52, %v917_v18  ;;  %v3855_v52 = vld [vmem:[%s6162_s17 + $0x98] sm:$0xff] }
 0x365   :  { %v929_v20 = vadd.f32 %v4113_v58, %v923_v19  ;;  %v3854_v58 = vld [vmem:[%s6162_s17 + $0x90] sm:$0xff] }
 0x367   :  { %971 = vmatmul.f32.gmra.mxu0 %v929_v20  ;;  %1034 = vmatmul.f32.gmra.mxu1 %v929_v20 }
 0x368   :  { %1092 = vmatmul.f32.gmra.mxu2 %v929_v20 }
 0x3cc   :  { %v963_v21 = vpop.f32.mrf.mxu0  ;;  %v1026_v22 = vpop.f32.mrf.mxu1 }
 0x3d3   :  { %v1084_v61 = vpop.f32.mrf.mxu2 }
 0x3d4   :  { %v966_v23 = vpop.f32.mrf.mxu0  ;;  %v1029_v24 = vpop.f32.mrf.mxu1 }
 0x3db   :  { %v1087_v2 = vpop.f32.mrf.mxu2 }
 0x3dc   :  { %v969_v25 = vpop.f32.mrf.mxu0  ;;  %v1032_v26 = vpop.f32.mrf.mxu1 }
 0x3e3   :  { %v1090_v10 = vpop.f32.mrf.mxu2 }
 0x3e4   :  { %v972_v27 = vpop.f32.mrf.mxu0  ;;  %v1035_v28 = vpop.f32.mrf.mxu1 }
 0x3e5   :  { %1050 = vmatpush.msra.mxu3 %v972_v27  ;;  %1108 = vmatpush.msra.mxu0 %v1035_v28 }
 0x3e7   :  { %1051 = vmatpush.msra.mxu3 %v969_v25  ;;  %1109 = vmatpush.msra.mxu0 %v1032_v26 }
 0x3e9   :  { %1052 = vmatpush.msra.mxu3 %v966_v23  ;;  %1110 = vmatpush.msra.mxu0 %v1029_v24 }
 0x3eb   :  { %1053 = vmatpush.msra.mxu3 %v963_v21  ;;  %1111 = vmatpush.msra.mxu0 %v1026_v22  ;;  %v1093_v18 = vpop.f32.mrf.mxu2 }
 0x3ec   :  { %3844 = vmatmul.msk.f32.vlgmr.msra.gmra.mxu3 %vm785_vm1, %v5554_v40  ;;  %3848 = vmatmul.msk.f32.vlgmr.msra.gmra.mxu0 %vm785_vm1, %v5571_v53  ;;  %v3863_v40 = vld [vmem:[%s6162_s17 + $0xd8] sm:$0xff]  ;;  %v1149_v53 = vld [vmem:[%s6162_s17 + $0x40] sm:$0xff] }
 0x3ed   :  { %1203 = vmatpush.msrb.mxu3 %v3867_v32  ;;  %1164 = vmatpush.msra.mxu1 %v1149_v53  ;;  %v1315_v32 = vld [vmem:[#allocation25 + $0x30] sm:$0xff] }
 0x3ef   :  { %1204 = vmatpush.msrb.mxu3 %v3866_v34  ;;  %1165 = vmatpush.msra.mxu1 %v1148_v43  ;;  %v1314_v34 = vld [vmem:[#allocation25 + $0x28] sm:$0xff] }
 0x3f1   :  { %1205 = vmatpush.msrb.mxu3 %v3865_v36  ;;  %1166 = vmatpush.msra.mxu1 %v1147_v47 }
 0x3f3   :  { %1206 = vmatpush.msrb.mxu3 %v3864_v39  ;;  %1167 = vmatpush.msra.mxu1 %v1146_v49  ;;  %v1360_v39 = vld [vmem:[#allocation25 + $0xa0] sm:$0xff]  ;;  %v3870_v49 = vld [vmem:[%s6163_s26 + $0x10] sm:$0xff] }
 0x3f4   :  { %3845 = vmatmul.msk.f32.gmra.mxu3 %vm785_vm1, %v5562_v46  ;;  %3849 = vmatmul.msk.f32.gmra.mxu0 %vm785_vm1, %v5577_v54  ;;  %v3859_v46 = vld [vmem:[%s6162_s17 + $0xb8] sm:$0xff]  ;;  %v3858_v54 = vld [vmem:[%s6162_s17 + $0xb0] sm:$0xff] }
 0x3f5   :  { %1207 = vmatpush.msrb.mxu3 %v3863_v40  ;;  %1168 = vmatpush.msra.mxu1 %v1145_v51  ;;  %v1351_v51 = vld [vmem:[#allocation25 + $0x60] sm:$0xff] }
 0x3f7   :  { %1208 = vmatpush.msrb.mxu3 %v3862_v42 }
 0x3f9   :  { %1209 = vmatpush.msrb.mxu3 %v3861_v45 }
 0x3fb   :  { %1210 = vmatpush.msrb.mxu3 %v3860_v48  ;;  %v1236_v48 = vld [vmem:[%s6163_s26] sm:$0xff] }
 0x3fc   :  { %3846 = vmatmul.msk.f32.gmra.mxu3 %vm785_vm1, %v5552_v38  ;;  %3850 = vmatmul.msk.f32.gmra.mxu0 %vm785_vm1, %v5583_v55  ;;  %v3856_v38 = vld [vmem:[%s6162_s17 + $0xa0] sm:$0xff]  ;;  %v1144_v55 = vld [vmem:[%s6162_s17 + $0x18] sm:$0xff] }
 0x3fd   :  { %1211 = vmatpush.msrb.mxu3 %v3859_v46  ;;  %1169 = vmatpush.msra.mxu1 %v1144_v55  ;;  %v1354_v46 = vld [vmem:[#allocation25 + $0x78] sm:$0xff] }
 0x3fe   :  { %v3871_v55 = vld [vmem:[%s6163_s26 + $0x18] sm:$0xff] }
 0x3ff   :  { %1212 = vmatpush.msrb.mxu3 %v3858_v54  ;;  %1170 = vmatpush.msra.mxu1 %v1143_v57  ;;  %v1353_v54 = vld [vmem:[#allocation25 + $0x70] sm:$0xff]  ;;  %v1359_v57 = vld [vmem:[#allocation25 + $0x98] sm:$0xff] }
 0x401   :  { %1213 = vmatpush.msrb.mxu3 %v3857_v50  ;;  %1171 = vmatpush.msra.mxu1 %v1142_v59  ;;  %v1352_v50 = vld [vmem:[#allocation25 + $0x68] sm:$0xff]  ;;  %v1311_v59 = vld [vmem:[#allocation25 + $0x10] sm:$0xff] }
 0x403   :  { %1214 = vmatpush.msrb.mxu3 %v3856_v38  ;;  %v1237_v38 = vld [vmem:[%s6163_s26 + $0x8] sm:$0xff] }
 0x404   :  { %3847 = vmatmul.msk.f32.gmra.mxu3 %vm785_vm1, %v5560_v44  ;;  %3851 = vmatmul.msk.f32.gmra.mxu0 %vm785_vm1, %v5589_v56  ;;  %v1141_v44 = vld [vmem:[%s6162_s17] sm:$0xff] }
 0x405   :  { %1215 = vmatpush.msrb.mxu3 %v3855_v52  ;;  %v3852_v56 = vld [vmem:[%s6162_s17 + $0x80] sm:$0xff]  ;;  %1172 = vmatpush.msra.mxu1 %v1141_v44  ;;  %v1349_v44 = vld [vmem:[#allocation25 + $0x50] sm:$0xff] }
 0x406   :  { %v1312_v52 = vld [vmem:[#allocation25 + $0x18] sm:$0xff] }
 0x407   :  { %1216 = vmatpush.msrb.mxu3 %v3854_v58  ;;  %1331 = vmatpush.msrb.mxu1 %v1316_v30  ;;  %v1350_v58 = vld [vmem:[#allocation25 + $0x58] sm:$0xff]  ;;  %v5727_v30 = vld [vmem:[#allocation26] sm:$0xff] }
 0x409   :  { %1217 = vmatpush.msrb.mxu3 %v3853_v60  ;;  %1332 = vmatpush.msrb.mxu1 %v1315_v32  ;;  %v1358_v60 = vld [vmem:[#allocation25 + $0x90] sm:$0xff] }
 0x40a   :  { %v3914_v32 = vld [vmem:[%s6164_s28 + $0x170] sm:$0xff] }
 0x40b   :  { %1218 = vmatpush.msrb.mxu3 %v3852_v56  ;;  %1333 = vmatpush.msrb.mxu1 %v1314_v34  ;;  %v1310_v56 = vld [vmem:[#allocation25 + $0x8] sm:$0xff] }
 0x40c   :  { %v3913_v34 = vld [vmem:[%s6164_s28 + $0x168] sm:$0xff] }
 0x40d   :  { %1372 = vmatpush.msra.mxu3 %v1363_v31  ;;  %1334 = vmatpush.msrb.mxu1 %v1313_v37  ;;  %v3915_v31 = vld [vmem:[%s6164_s28 + $0x178] sm:$0xff]  ;;  %v3912_v37 = vld [vmem:[%s6164_s28 + $0x160] sm:$0xff] }
 0x40f   :  { %1373 = vmatpush.msra.mxu3 %v1362_v33  ;;  %1335 = vmatpush.msrb.mxu1 %v1312_v52  ;;  %v3906_v52 = vld [vmem:[%s6164_s28 + $0x130] sm:$0xff] }
 0x411   :  { %1374 = vmatpush.msra.mxu3 %v1361_v35  ;;  %1336 = vmatpush.msrb.mxu1 %v1311_v59  ;;  %v5734_v35 = vld [vmem:[#allocation26 + $0x10] sm:$0xff]  ;;  %v3905_v59 = vld [vmem:[%s6164_s28 + $0x128] sm:$0xff] }
 0x413   :  { %1375 = vmatpush.msra.mxu3 %v1360_v39  ;;  %1337 = vmatpush.msrb.mxu1 %v1310_v56  ;;  %v5738_v39 = vld [vmem:[#allocation26 + $0x8] sm:$0xff]  ;;  %v3904_v56 = vld [vmem:[%s6164_s28 + $0x120] sm:$0xff] }
 0x415   :  { %1376 = vmatpush.msra.mxu3 %v1359_v57  ;;  %v3890_v57 = vld [vmem:[%s6164_s28 + $0xb0] sm:$0xff] }
 0x417   :  { %1377 = vmatpush.msra.mxu3 %v1358_v60  ;;  %v3889_v60 = vld [vmem:[%s6164_s28 + $0xa8] sm:$0xff] }
 0x469   :  { %v1113_v62 = vpop.f32.mrf.mxu0 }
 0x46f   :  { %v1055_v63 = vpop.f32.mrf.mxu3 }
 0x470   :  { %v1085_v0 = vadd.f32 %v1084_v61, %v1055_v63  ;;  %v1357_v61 = vld [vmem:[#allocation25 + $0x88] sm:$0xff]  ;;  %v1309_v63 = vld [vmem:[#allocation25] sm:$0xff] }
 0x471   :  { %v1116_v4 = vpop.f32.mrf.mxu0  ;;  %1378 = vmatpush.msra.mxu3 %v1357_v61  ;;  %1338 = vmatpush.msrb.mxu1 %v1309_v63  ;;  %v3888_v61 = vld [vmem:[%s6164_s28 + $0xa0] sm:$0xff]  ;;  %v3903_v63 = vld [vmem:[%s6164_s28 + $0x118] sm:$0xff] }
 0x472   :  { %v1125_v3 = vadd.f32 %v1113_v62, %v1085_v0  ;;  %v1348_v62 = vld [vmem:[#allocation25 + $0x48] sm:$0xff]  ;;  %v1356_v0 = vld [vmem:[#allocation25 + $0x80] sm:$0xff] }
 0x473   :  { %1379 = vmatpush.msra.mxu3 %v1356_v0  ;;  %v3887_v0 = vld [vmem:[%s6164_s28 + $0x98] sm:$0xff] }
 0x474   :  { %v1133_v5 = vadd.f32 %v4114_v1, %v1125_v3  ;;  %v4117_v3 = vld [vmem:[#allocation32] ss:$0 sm:$0xff] }
 0x476   :  { %v5688_v6 = vmax.f32 %v1133_v5, 0.0 }
 0x477   :  { %v1058_v7 = vpop.f32.mrf.mxu3 }
 0x478   :  { %v1088_v8 = vadd.f32 %v1087_v2, %v1058_v7  ;;  %1173 = vmatmul.f32.vlgmr.msra.gmra.mxu1 %v5688_v6  ;;  %1219 = vmatmul.f32.vlgmr.msrb.gmra.mxu3 %v5688_v6  ;;  %v4118_v7 = vld [vmem:[#allocation32 + $0x1] ss:$0 sm:$0xff] }
 0x479   :  { %v1119_v12 = vpop.f32.mrf.mxu0 }
 0x47a   :  { %v1126_v9 = vadd.f32 %v1116_v4, %v1088_v8 }
 0x47c   :  { %v1134_v11 = vadd.f32 %v4114_v1, %v1126_v9 }
 0x47e   :  { %v5692_v13 = vmax.f32 %v1134_v11, 0.0 }
 0x47f   :  { %v1061_v14 = vpop.f32.mrf.mxu3 }
 0x480   :  { %v1091_v15 = vadd.f32 %v1090_v10, %v1061_v14  ;;  %1176 = vmatmul.f32.gmra.mxu1 %v5692_v13  ;;  %1222 = vmatmul.f32.gmra.mxu3 %v5692_v13 }
 0x481   :  { %v1122_v21 = vpop.f32.mrf.mxu0 }
 0x482   :  { %v1127_v16 = vadd.f32 %v1119_v12, %v1091_v15 }
 0x484   :  { %v1135_v17 = vadd.f32 %v4114_v1, %v1127_v16  ;;  %v1507_v16 = vld [vmem:[%s6164_s28 + $0x78] sm:$0xff] }
 0x485   :  { %1508 = vmatpush.msrb.mxu3 %v1507_v16  ;;  %v4119_v16 = vld [vmem:[#allocation29] ss:$0 sm:$0xff] }
 0x486   :  { %v5696_v19 = vmax.f32 %v1135_v17, 0.0  ;;  %v1506_v17 = vld [vmem:[%s6164_s28 + $0x70] sm:$0xff] }
 0x487   :  { %v1064_v20 = vpop.f32.mrf.mxu3  ;;  %1509 = vmatpush.msrb.mxu3 %v1506_v17 }
 0x488   :  { %v1094_v22 = vadd.f32 %v1093_v18, %v1064_v20  ;;  %1179 = vmatmul.f32.gmra.mxu1 %v5696_v19  ;;  %1225 = vmatmul.f32.gmra.mxu3 %v5696_v19  ;;  %v1505_v18 = vld [vmem:[%s6164_s28 + $0x68] sm:$0xff]  ;;  %v1504_v20 = vld [vmem:[%s6164_s28 + $0x60] sm:$0xff] }
 0x489   :  { %1510 = vmatpush.msrb.mxu3 %v1505_v18 }
 0x48a   :  { %v1128_v23 = vadd.f32 %v1122_v21, %v1094_v22  ;;  %v1503_v22 = vld [vmem:[%s6164_s28 + $0x58] sm:$0xff] }
 0x48b   :  { %1511 = vmatpush.msrb.mxu3 %v1504_v20  ;;  %v4120_v20 = vld [vmem:[#allocation34] ss:$0 sm:$0xff] }
 0x48c   :  { %v1136_v24 = vadd.f32 %v4114_v1, %v1128_v23  ;;  %v1347_v1 = vld [vmem:[#allocation25 + $0x40] sm:$0xff]  ;;  %v1502_v23 = vld [vmem:[%s6164_s28 + $0x50] sm:$0xff] }
 0x48d   :  { %1512 = vmatpush.msrb.mxu3 %v1503_v22 }
 0x48e   :  { %v5700_v25 = vmax.f32 %v1136_v24, 0.0  ;;  %v1501_v24 = vld [vmem:[%s6164_s28 + $0x48] sm:$0xff] }
 0x48f   :  { %1513 = vmatpush.msrb.mxu3 %v1502_v23  ;;  %v4121_v23 = vld [vmem:[#allocation34 + $0x1] ss:$0 sm:$0xff] }
 0x490   :  { %1182 = vmatmul.f32.gmra.mxu1 %v5700_v25  ;;  %1228 = vmatmul.f32.gmra.mxu3 %v5700_v25 }
 0x491   :  { %1514 = vmatpush.msrb.mxu3 %v1501_v24 }
 0x4f5   :  { %v1174_v26 = vpop.f32.mrf.mxu1 }
 0x4fb   :  { %v1220_v27 = vpop.f32.mrf.mxu3 }
 0x4fc   :  { %v1232_v47 = vmax.f32 %v1174_v26, %v1220_v27  ;;  %v1500_v27 = vld [vmem:[%s6164_s28 + $0x40] sm:$0xff] }
 0x4fd   :  { %v1177_v28 = vpop.f32.mrf.mxu1  ;;  %1515 = vmatpush.msrb.mxu3 %v1500_v27 }
 0x503   :  { %v1223_v29 = vpop.f32.mrf.mxu3 }
 0x504   :  { %v1233_v45 = vmax.f32 %v1177_v28, %v1223_v29  ;;  %v1499_v29 = vld [vmem:[%s6164_s28 + $0x38] sm:$0xff] }
 0x505   :  { %v1180_v36 = vpop.f32.mrf.mxu1  ;;  %1516 = vmatpush.msrb.mxu3 %v1499_v29 }
 0x50b   :  { %v1226_v41 = vpop.f32.mrf.mxu3 }
 0x50c   :  { %v1234_v43 = vmax.f32 %v1180_v36, %v1226_v41  ;;  %v3899_v36 = vld [vmem:[%s6164_s28 + $0xf8] sm:$0xff]  ;;  %v3898_v41 = vld [vmem:[%s6164_s28 + $0xf0] sm:$0xff] }
 0x50d   :  { %v1183_v40 = vpop.f32.mrf.mxu1 }
 0x513   :  { %v1229_v53 = vpop.f32.mrf.mxu3 }
 0x514   :  { %v1235_v42 = vmax.f32 %v1183_v40, %v1229_v53  ;;  %v3911_v40 = vld [vmem:[%s6164_s28 + $0x158] sm:$0xff]  ;;  %v3897_v53 = vld [vmem:[%s6164_s28 + $0xe8] sm:$0xff] }
 0x516   :  { %1256 = vmatpush.msrb.mxu2 %v1235_v42  ;;  %1288 = vmatpush.msrb.mxu0 %v1235_v42  ;;  %v3910_v42 = vld [vmem:[%s6164_s28 + $0x150] sm:$0xff] }
 0x518   :  { %1257 = vmatpush.msrb.mxu2 %v1234_v43  ;;  %1289 = vmatpush.msrb.mxu0 %v1234_v43  ;;  %v3896_v43 = vld [vmem:[%s6164_s28 + $0xe0] sm:$0xff] }
 0x51a   :  { %1258 = vmatpush.msrb.mxu2 %v1233_v45  ;;  %1290 = vmatpush.msrb.mxu0 %v1233_v45  ;;  %v3909_v45 = vld [vmem:[%s6164_s28 + $0x148] sm:$0xff] }
 0x51c   :  { %1259 = vmatpush.msrb.mxu2 %v1232_v47  ;;  %1291 = vmatpush.msrb.mxu0 %v1232_v47  ;;  %v5750_v47 = vld [vmem:[#allocation26 + $0x18] sm:$0xff] }
 0x51d   :  { %3868 = vmatmul.msk.f32.vlgmr.msrb.gmra.mxu2 %vm785_vm1, %v1236_v48  ;;  %3872 = vmatmul.msk.f32.vlgmr.msrb.gmra.mxu0 %vm785_vm1, %v3870_v49  ;;  %v3895_v48 = vld [vmem:[%s6164_s28 + $0xd8] sm:$0xff]  ;;  %v3908_v49 = vld [vmem:[%s6164_s28 + $0x140] sm:$0xff] }
 0x51e   :  { %1427 = vmatpush.msra.mxu0 %v1354_v46  ;;  %v3894_v46 = vld [vmem:[%s6164_s28 + $0xd0] sm:$0xff] }
 0x520   :  { %1428 = vmatpush.msra.mxu0 %v1353_v54  ;;  %v3907_v54 = vld [vmem:[%s6164_s28 + $0x138] sm:$0xff] }
 0x522   :  { %1429 = vmatpush.msra.mxu0 %v1352_v50  ;;  %v3893_v50 = vld [vmem:[%s6164_s28 + $0xc8] sm:$0xff] }
 0x524   :  { %1430 = vmatpush.msra.mxu0 %v1351_v51  ;;  %v3892_v51 = vld [vmem:[%s6164_s28 + $0xc0] sm:$0xff] }
 0x525   :  { %3869 = vmatmul.msk.f32.gmra.mxu2 %vm785_vm1, %v1237_v38  ;;  %3873 = vmatmul.msk.f32.gmra.mxu0 %vm785_vm1, %v3871_v55  ;;  %v3891_v38 = vld [vmem:[%s6164_s28 + $0xb8] sm:$0xff]  ;;  %v1498_v55 = vld [vmem:[%s6164_s28 + $0x30] sm:$0xff] }
 0x526   :  { %1431 = vmatpush.msra.mxu0 %v1350_v58  ;;  %1517 = vmatpush.msrb.mxu3 %v1498_v55  ;;  %v1497_v58 = vld [vmem:[%s6164_s28 + $0x28] sm:$0xff]  ;;  %v3930_v55 = vld [vmem:[%s6165_s23 + $0xd0] sm:$0xff] }
 0x528   :  { %1432 = vmatpush.msra.mxu0 %v1349_v44  ;;  %1518 = vmatpush.msrb.mxu3 %v1497_v58  ;;  %v1496_v44 = vld [vmem:[%s6164_s28 + $0x20] sm:$0xff]  ;;  %v3927_v58 = vld [vmem:[%s6165_s23 + $0xb8] sm:$0xff] }
 0x52a   :  { %1433 = vmatpush.msra.mxu0 %v1348_v62  ;;  %1519 = vmatpush.msrb.mxu3 %v1496_v44  ;;  %v1495_v62 = vld [vmem:[%s6164_s28 + $0x18] sm:$0xff]  ;;  %v1672_v44 = vld [vmem:[%s6165_s23 + $0x28] sm:$0xff] }
 0x52c   :  { %1434 = vmatpush.msra.mxu0 %v1347_v1  ;;  %1520 = vmatpush.msrb.mxu3 %v1495_v62  ;;  %v1494_v1 = vld [vmem:[%s6164_s28 + $0x10] sm:$0xff]  ;;  %v3924_v62 = vld [vmem:[%s6165_s23 + $0xa0] sm:$0xff] }
 0x52e   :  { %1521 = vmatpush.msrb.mxu3 %v1494_v1  ;;  %v1669_v1 = vld [vmem:[%s6165_s23 + $0x10] sm:$0xff] }
 0x59a   :  { %v1293_v2 = vpop.f32.mrf.mxu0 }
 0x5a0   :  { %v1261_v4 = vpop.f32.mrf.mxu2 }
 0x5a1   :  { %v1299_v5 = vmax.f32 %v1261_v4, %v1293_v2  ;;  %v3902_v2 = vld [vmem:[%s6164_s28 + $0x110] sm:$0xff]  ;;  %v1493_v4 = vld [vmem:[%s6164_s28 + $0x8] sm:$0xff] }
 0x5a2   :  { %v1296_v10 = vpop.f32.mrf.mxu0  ;;  %1522 = vmatpush.msrb.mxu3 %v1493_v4  ;;  %v3921_v4 = vld [vmem:[%s6165_s23 + $0x88] sm:$0xff] }
 0x5a3   :  { %v1303_v8 = vmul.f32 %v4117_v3, %v1299_v5  ;;  %v3901_v5 = vld [vmem:[%s6164_s28 + $0x108] sm:$0xff] }
 0x5a5   :  { %v1307_v9 = vadd.f32 %v4118_v7, %v1303_v8  ;;  %v1492_v8 = vld [vmem:[%s6164_s28] sm:$0xff] }
 0x5a6   :  { %1523 = vmatpush.msrb.mxu3 %v1492_v8 }
 0x5a7   :  { %3874 = vmatmul.msk.f32.vlgmr.msrb.gmra.mxu1 %vm692_vm0, %v1307_v9  ;;  %3876 = vmatmul.msk.f32.vlgmr.msra.gmra.mxu3 %vm692_vm0, %v1307_v9 }
 0x5a8   :  { %3880 = vmatmul.msk.f32.vlgmr.msra.gmra.mxu0 %vm692_vm0, %v1307_v9  ;;  %v1264_v11 = vpop.f32.mrf.mxu2  ;;  %v3900_v9 = vld [vmem:[%s6164_s28 + $0x100] sm:$0xff] }
 0x5a9   :  { %v1300_v12 = vmax.f32 %v1264_v11, %v1296_v10  ;;  %v3884_v10 = vld [vmem:[%s6164_s28 + $0x80] sm:$0xff] }
 0x5ab   :  { %v1304_v14 = vmul.f32 %v4117_v3, %v1300_v12  ;;  %v3886_v3 = vld [vmem:[%s6164_s28 + $0x90] sm:$0xff] }
 0x5ad   :  { %v1308_v15 = vadd.f32 %v4118_v7, %v1304_v14  ;;  %v3885_v7 = vld [vmem:[%s6164_s28 + $0x88] sm:$0xff] }
 0x5af   :  { %3875 = vmatmul.msk.f32.gmra.mxu1 %vm692_vm0, %v1308_v15  ;;  %3877 = vmatmul.msk.f32.gmra.mxu3 %vm692_vm0, %v1308_v15 }
 0x5b0   :  { %3881 = vmatmul.msk.f32.gmra.mxu0 %vm692_vm0, %v1308_v15 }
 0x624   :  { %v1340_v21 = vpop.f32.mrf.mxu1 }
 0x625   :  { %v1436_v11 = vpop.f32.mrf.mxu0 }
 0x62a   :  { %v1381_v26 = vpop.f32.mrf.mxu3 }
 0x62c   :  { %v1343_v28 = vpop.f32.mrf.mxu1 }
 0x62d   :  { %1410 = vmatpush.msra.mxu2 %v1343_v28 }
 0x62f   :  { %1411 = vmatpush.msra.mxu2 %v1340_v21  ;;  %v1439_v21 = vpop.f32.mrf.mxu0 }
 0x630   :  { %3878 = vmatmul.msk.f32.vlgmr.msra.gmra.mxu2 %vm1389_vm2, %v5727_v30 }
 0x631   :  { %1565 = vmatpush.msrb.mxu2 %v3915_v31 }
 0x632   :  { %v1384_v33 = vpop.f32.mrf.mxu3 }
 0x633   :  { %1465 = vmatpush.msra.mxu1 %v1384_v33  ;;  %1566 = vmatpush.msrb.mxu2 %v3914_v32 }
 0x635   :  { %1466 = vmatpush.msra.mxu1 %v1381_v26  ;;  %1567 = vmatpush.msrb.mxu2 %v3913_v34 }
 0x636   :  { %3882 = vmatmul.msk.f32.vlgmr.msra.gmra.mxu1 %vm1389_vm2, %v5734_v35 }
 0x637   :  { %1611 = vmatpush.msrb.mxu1 %v3899_v36  ;;  %1568 = vmatpush.msrb.mxu2 %v3912_v37 }
 0x638   :  { %3879 = vmatmul.msk.f32.gmra.mxu2 %vm1389_vm2, %v5738_v39 }
 0x639   :  { %1612 = vmatpush.msrb.mxu1 %v3898_v41  ;;  %1569 = vmatpush.msrb.mxu2 %v3911_v40  ;;  %v1682_v40 = vld [vmem:[%s6165_s23 + $0x78] sm:$0xff] }
 0x63a   :  { %1683 = vmatpush.msra.mxu3 %v1682_v40  ;;  %v1810_v40 = vld [vmem:[#allocation2 + $0x30] sm:$0xff] }
 0x63b   :  { %1613 = vmatpush.msrb.mxu1 %v3897_v53  ;;  %1570 = vmatpush.msrb.mxu2 %v3910_v42  ;;  %v3935_v53 = vld [vmem:[%s6165_s23 + $0xf8] sm:$0xff]  ;;  %v1681_v42 = vld [vmem:[%s6165_s23 + $0x70] sm:$0xff] }
 0x63c   :  { %1684 = vmatpush.msra.mxu3 %v1681_v42  ;;  %v1842_v42 = vld [vmem:[#allocation2 + $0x70] sm:$0xff] }
 0x63d   :  { %1614 = vmatpush.msrb.mxu1 %v3896_v43  ;;  %1571 = vmatpush.msrb.mxu2 %v3909_v45  ;;  %v3934_v43 = vld [vmem:[%s6165_s23 + $0xf0] sm:$0xff]  ;;  %v1680_v45 = vld [vmem:[%s6165_s23 + $0x68] sm:$0xff] }
 0x63e   :  { %3883 = vmatmul.msk.f32.gmra.mxu1 %vm1389_vm2, %v5750_v47  ;;  %1685 = vmatpush.msra.mxu3 %v1680_v45  ;;  %v1850_v45 = vld [vmem:[#allocation2 + $0xa8] sm:$0xff] }
 0x63f   :  { %1615 = vmatpush.msrb.mxu1 %v3895_v48  ;;  %1572 = vmatpush.msrb.mxu2 %v3908_v49  ;;  %v3933_v48 = vld [vmem:[%s6165_s23 + $0xe8] sm:$0xff] }
 0x641   :  { %1616 = vmatpush.msrb.mxu1 %v3894_v46  ;;  %1573 = vmatpush.msrb.mxu2 %v3907_v54  ;;  %v1679_v46 = vld [vmem:[%s6165_s23 + $0x60] sm:$0xff] }
 0x642   :  { %v3932_v54 = vld [vmem:[%s6165_s23 + $0xe0] sm:$0xff]  ;;  %1686 = vmatpush.msra.mxu3 %v1679_v46 }
 0x643   :  { %1617 = vmatpush.msrb.mxu1 %v3893_v50  ;;  %1574 = vmatpush.msrb.mxu2 %v3906_v52  ;;  %v1676_v52 = vld [vmem:[%s6165_s23 + $0x48] sm:$0xff]  ;;  %v1849_v46 = vld [vmem:[#allocation2 + $0xa0] sm:$0xff] }
 0x645   :  { %1618 = vmatpush.msrb.mxu1 %v3892_v51  ;;  %1575 = vmatpush.msrb.mxu2 %v3905_v59  ;;  %v1678_v51 = vld [vmem:[%s6165_s23 + $0x58] sm:$0xff]  ;;  %v1673_v59 = vld [vmem:[%s6165_s23 + $0x30] sm:$0xff] }
 0x646   :  { %1687 = vmatpush.msra.mxu3 %v1678_v51  ;;  %v1848_v51 = vld [vmem:[#allocation2 + $0x98] sm:$0xff] }
 0x647   :  { %1619 = vmatpush.msrb.mxu1 %v3891_v38  ;;  %1576 = vmatpush.msrb.mxu2 %v3904_v56  ;;  %v3931_v38 = vld [vmem:[%s6165_s23 + $0xd8] sm:$0xff]  ;;  %v3925_v56 = vld [vmem:[%s6165_s23 + $0xa8] sm:$0xff] }
 0x649   :  { %1620 = vmatpush.msrb.mxu1 %v3890_v57  ;;  %1577 = vmatpush.msrb.mxu2 %v3903_v63  ;;  %v3929_v57 = vld [vmem:[%s6165_s23 + $0xc8] sm:$0xff]  ;;  %v1670_v63 = vld [vmem:[%s6165_s23 + $0x18] sm:$0xff] }
 0x64b   :  { %1621 = vmatpush.msrb.mxu1 %v3889_v60  ;;  %1578 = vmatpush.msrb.mxu2 %v3902_v2  ;;  %v3926_v60 = vld [vmem:[%s6165_s23 + $0xb0] sm:$0xff] }
 0x64c   :  { %v3922_v2 = vld [vmem:[%s6165_s23 + $0x90] sm:$0xff] }
 0x64d   :  { %1622 = vmatpush.msrb.mxu1 %v3888_v61  ;;  %1579 = vmatpush.msrb.mxu2 %v3901_v5  ;;  %v1671_v61 = vld [vmem:[%s6165_s23 + $0x20] sm:$0xff] }
 0x64e   :  { %v1667_v5 = vld [vmem:[%s6165_s23] sm:$0xff] }
 0x64f   :  { %1623 = vmatpush.msrb.mxu1 %v3887_v0  ;;  %1580 = vmatpush.msrb.mxu2 %v3900_v9  ;;  %v3923_v0 = vld [vmem:[%s6165_s23 + $0x98] sm:$0xff] }
 0x651   :  { %1624 = vmatpush.msrb.mxu1 %v3886_v3  ;;  %1723 = vmatpush.msra.mxu2 %v3935_v53  ;;  %v1668_v3 = vld [vmem:[%s6165_s23 + $0x8] sm:$0xff]  ;;  %v1851_v53 = vld [vmem:[#allocation2 + $0xb0] sm:$0xff] }
 0x653   :  { %1625 = vmatpush.msrb.mxu1 %v3885_v7  ;;  %1724 = vmatpush.msra.mxu2 %v3934_v43  ;;  %v3920_v7 = vld [vmem:[%s6165_s23 + $0x80] sm:$0xff]  ;;  %v1809_v43 = vld [vmem:[#allocation2 + $0x28] sm:$0xff] }
 0x655   :  { %1626 = vmatpush.msrb.mxu1 %v3884_v10  ;;  %1725 = vmatpush.msra.mxu2 %v3933_v48  ;;  %v1841_v48 = vld [vmem:[#allocation2 + $0x68] sm:$0xff] }
 0x657   :  { %1726 = vmatpush.msra.mxu2 %v3932_v54  ;;  %v1840_v54 = vld [vmem:[#allocation2 + $0x60] sm:$0xff] }
 0x659   :  { %1727 = vmatpush.msra.mxu2 %v3931_v38  ;;  %v1839_v38 = vld [vmem:[#allocation2 + $0x58] sm:$0xff] }
 0x65b   :  { %1728 = vmatpush.msra.mxu2 %v3930_v55  ;;  %v1847_v55 = vld [vmem:[#allocation2 + $0x90] sm:$0xff] }
 0x65d   :  { %1729 = vmatpush.msra.mxu2 %v3929_v57  ;;  %v1805_v57 = vld [vmem:[#allocation2 + $0x8] sm:$0xff] }
 0x6b3   :  { %v1413_v12 = vpop.f32.mrf.mxu2  ;;  %v1468_v14 = vpop.f32.mrf.mxu1 }
 0x6b4   :  { %v1437_v15 = vadd.f32 %v1436_v11, %v1413_v12  ;;  %v4122_v12 = vld [vmem:[#allocation31] ss:$0 sm:$0xff] }
 0x6b6   :  { %v1474_v17 = vadd.f32 %v1468_v14, %v1437_v15 }
 0x6b8   :  { %v1480_v18 = vadd.f32 %v4119_v16, %v1474_v17 }
 0x6ba   :  { %v1482_v22 = vmax.f32 %v1480_v18, 0.0 }
 0x6bb   :  { %v1416_v24 = vpop.f32.mrf.mxu2  ;;  %v1471_v26 = vpop.f32.mrf.mxu1 }
 0x6bc   :  { %v1486_v27 = vmul.f32 %v4120_v20, %v1482_v22  ;;  %v1440_v28 = vadd.f32 %v1439_v21, %v1416_v24 }
 0x6be   :  { %v1475_v29 = vadd.f32 %v1471_v26, %v1440_v28  ;;  %v1490_v31 = vadd.f32 %v4121_v23, %v1486_v27 }
 0x6c0   :  { %v1481_v32 = vadd.f32 %v4119_v16, %v1475_v29  ;;  %1524 = vmatmul.f32.vlgmr.msrb.gmra.mxu3 %v1490_v31  ;;  %1581 = vmatmul.f32.vlgmr.msrb.gmra.mxu2 %v1490_v31 }
 0x6c1   :  { %1627 = vmatmul.f32.vlgmr.msrb.gmra.mxu1 %v1490_v31 }
 0x6c2   :  { %v1483_v33 = vmax.f32 %v1481_v32, 0.0 }
 0x6c4   :  { %v1487_v34 = vmul.f32 %v4120_v20, %v1483_v33  ;;  %v1748_v33 = vld [vmem:[#allocation28] sm:$0xff] }
 0x6c6   :  { %v1491_v36 = vadd.f32 %v4121_v23, %v1487_v34  ;;  %v1773_v34 = vld [vmem:[#allocation28 + $0x8] sm:$0xff] }
 0x6c8   :  { %1527 = vmatmul.f32.gmra.mxu3 %v1491_v36  ;;  %1584 = vmatmul.f32.gmra.mxu2 %v1491_v36 }
 0x6c9   :  { %1630 = vmatmul.f32.gmra.mxu1 %v1491_v36  ;;  %v1811_v36 = vld [vmem:[#allocation2 + $0x38] sm:$0xff] }
 0x73e   :  { %v1628_v10 = vpop.f32.mrf.mxu1 }
 0x743   :  { %v1525_v37 = vpop.f32.mrf.mxu3  ;;  %v1582_v41 = vpop.f32.mrf.mxu2 }
 0x746   :  { %v1631_v18 = vpop.f32.mrf.mxu1 }
 0x74b   :  { %v1528_v49 = vpop.f32.mrf.mxu3  ;;  %v1585_v50 = vpop.f32.mrf.mxu2 }
 0x74c   :  { %1602 = vmatpush.msrb.mxu0 %v1528_v49  ;;  %v1808_v49 = vld [vmem:[#allocation2 + $0x20] sm:$0xff] }
 0x74e   :  { %1603 = vmatpush.msrb.mxu0 %v1525_v37  ;;  %v1852_v37 = vld [vmem:[#allocation2 + $0xb8] sm:$0xff] }
 0x74f   :  { %3916 = vmatmul.msk.f32.vlgmr.msrb.gmra.mxu0 %vm1389_vm2, %v5727_v30  ;;  %v1677_v30 = vld [vmem:[%s6165_s23 + $0x50] sm:$0xff]  ;;  %1861 = vmatpush.msra.mxu1 %v1852_v37  ;;  %v3968_v37 = vld [vmem:[%s6166_s20 + $0x148] sm:$0xff] }
 0x750   :  { %1648 = vmatpush.msra.mxu0 %v1585_v50  ;;  %1688 = vmatpush.msra.mxu3 %v1677_v30  ;;  %v1807_v50 = vld [vmem:[#allocation2 + $0x18] sm:$0xff]  ;;  %v1806_v30 = vld [vmem:[#allocation2 + $0x10] sm:$0xff] }
 0x751   :  { %1862 = vmatpush.msra.mxu1 %v1851_v53  ;;  %v1962_v53 = vld [vmem:[%s6166_s20 + $0x30] sm:$0xff] }
 0x752   :  { %1649 = vmatpush.msra.mxu0 %v1582_v41  ;;  %1689 = vmatpush.msra.mxu3 %v1676_v52  ;;  %v1843_v41 = vld [vmem:[#allocation2 + $0x78] sm:$0xff]  ;;  %v1838_v52 = vld [vmem:[#allocation2 + $0x50] sm:$0xff] }
 0x753   :  { %1863 = vmatpush.msra.mxu1 %v1850_v45  ;;  %v1961_v45 = vld [vmem:[%s6166_s20 + $0x28] sm:$0xff] }
 0x755   :  { %1864 = vmatpush.msra.mxu1 %v1849_v46  ;;  %v1960_v46 = vld [vmem:[%s6166_s20 + $0x20] sm:$0xff] }
 0x757   :  { %3917 = vmatmul.msk.f32.gmra.mxu0 %vm1389_vm2, %v5738_v39  ;;  %v3928_v39 = vld [vmem:[%s6165_s23 + $0xc0] sm:$0xff]  ;;  %1865 = vmatpush.msra.mxu1 %v1848_v51  ;;  %v1959_v51 = vld [vmem:[%s6166_s20 + $0x18] sm:$0xff] }
 0x758   :  { %1730 = vmatpush.msra.mxu2 %v3928_v39  ;;  %v1837_v39 = vld [vmem:[#allocation2 + $0x48] sm:$0xff] }
 0x759   :  { %1866 = vmatpush.msra.mxu1 %v1847_v55  ;;  %v1958_v55 = vld [vmem:[%s6166_s20 + $0x10] sm:$0xff] }
 0x75a   :  { %1731 = vmatpush.msra.mxu2 %v3927_v58  ;;  %v1845_v58 = vld [vmem:[#allocation2 + $0x80] sm:$0xff] }
 0x75c   :  { %1732 = vmatpush.msra.mxu2 %v3926_v60 }
 0x75e   :  { %1733 = vmatpush.msra.mxu2 %v3925_v56 }
 0x75f   :  { %3918 = vmatmul.msk.f32.vlgmr.msra.gmra.mxu0 %vm1389_vm2, %v5734_v35  ;;  %v1675_v35 = vld [vmem:[%s6165_s23 + $0x40] sm:$0xff] }
 0x760   :  { %1690 = vmatpush.msra.mxu3 %v1675_v35  ;;  %1734 = vmatpush.msra.mxu2 %v3924_v62  ;;  %v1846_v35 = vld [vmem:[#allocation2 + $0x88] sm:$0xff]  ;;  %v4126_v62 = vld [vmem:[#allocation11 + $0x1] ss:$0 sm:$0xff] }
 0x761   :  { %1867 = vmatpush.msra.mxu1 %v1846_v35  ;;  %v1957_v35 = vld [vmem:[%s6166_s20 + $0x8] sm:$0xff] }
 0x762   :  { %1735 = vmatpush.msra.mxu2 %v3923_v0 }
 0x763   :  { %1868 = vmatpush.msra.mxu1 %v1845_v58  ;;  %v1956_v58 = vld [vmem:[%s6166_s20] sm:$0xff] }
 0x764   :  { %1736 = vmatpush.msra.mxu2 %v3922_v2  ;;  %v3958_v2 = vld [vmem:[%s6166_s20 + $0xf8] sm:$0xff] }
 0x766   :  { %1737 = vmatpush.msra.mxu2 %v3921_v4  ;;  %v3957_v4 = vld [vmem:[%s6166_s20 + $0xf0] sm:$0xff] }
 0x767   :  { %3919 = vmatmul.msk.f32.gmra.mxu0 %vm1389_vm2, %v5750_v47  ;;  %v1674_v47 = vld [vmem:[%s6165_s23 + $0x38] sm:$0xff] }
 0x768   :  { %1691 = vmatpush.msra.mxu3 %v1674_v47  ;;  %1738 = vmatpush.msra.mxu2 %v3920_v7  ;;  %v1804_v47 = vld [vmem:[#allocation2] sm:$0xff]  ;;  %v3956_v7 = vld [vmem:[%s6166_s20 + $0xe8] sm:$0xff] }
 0x76a   :  { %1692 = vmatpush.msra.mxu3 %v1673_v59  ;;  %1906 = vmatpush.msrb.mxu2 %v1843_v41  ;;  %v1836_v59 = vld [vmem:[#allocation2 + $0x40] sm:$0xff] }
 0x76b   :  { %v3967_v41 = vld [vmem:[%s6166_s20 + $0x140] sm:$0xff] }
 0x76c   :  { %1693 = vmatpush.msra.mxu3 %v1672_v44  ;;  %1907 = vmatpush.msrb.mxu2 %v1842_v42  ;;  %v4125_v44 = vld [vmem:[#allocation11] ss:$0 sm:$0xff] }
 0x76d   :  { %v3965_v42 = vld [vmem:[%s6166_s20 + $0x130] sm:$0xff] }
 0x76e   :  { %1694 = vmatpush.msra.mxu3 %v1671_v61  ;;  %1908 = vmatpush.msrb.mxu2 %v1841_v48  ;;  %v3964_v48 = vld [vmem:[%s6166_s20 + $0x128] sm:$0xff] }
 0x770   :  { %1695 = vmatpush.msra.mxu3 %v1670_v63  ;;  %1909 = vmatpush.msrb.mxu2 %v1840_v54  ;;  %v3963_v54 = vld [vmem:[%s6166_s20 + $0x120] sm:$0xff] }
 0x772   :  { %1696 = vmatpush.msra.mxu3 %v1669_v1  ;;  %1910 = vmatpush.msrb.mxu2 %v1839_v38  ;;  %v1971_v1 = vld [vmem:[%s6166_s20 + $0x78] sm:$0xff] }
 0x773   :  { %1972 = vmatpush.msrb.mxu1 %v1971_v1  ;;  %v3962_v38 = vld [vmem:[%s6166_s20 + $0x118] sm:$0xff] }
 0x774   :  { %1697 = vmatpush.msra.mxu3 %v1668_v3  ;;  %1911 = vmatpush.msrb.mxu2 %v1838_v52  ;;  %v1970_v3 = vld [vmem:[%s6166_s20 + $0x70] sm:$0xff] }
 0x775   :  { %1973 = vmatpush.msrb.mxu1 %v1970_v3  ;;  %v3961_v52 = vld [vmem:[%s6166_s20 + $0x110] sm:$0xff] }
 0x776   :  { %1698 = vmatpush.msra.mxu3 %v1667_v5  ;;  %1912 = vmatpush.msrb.mxu2 %v1837_v39  ;;  %v1969_v5 = vld [vmem:[%s6166_s20 + $0x68] sm:$0xff] }
 0x777   :  { %1974 = vmatpush.msrb.mxu1 %v1969_v5  ;;  %v3960_v39 = vld [vmem:[%s6166_s20 + $0x108] sm:$0xff] }
 0x778   :  { %1913 = vmatpush.msrb.mxu2 %v1836_v59  ;;  %v3959_v59 = vld [vmem:[%s6166_s20 + $0x100] sm:$0xff] }
 0x7cc   :  { %v1605_v8 = vpop.f32.mrf.mxu0 }
 0x7cd   :  { %v1629_v11 = vadd.f32 %v1628_v10, %v1605_v8  ;;  %v1968_v8 = vld [vmem:[%s6166_s20 + $0x60] sm:$0xff]  ;;  %v1967_v10 = vld [vmem:[%s6166_s20 + $0x58] sm:$0xff] }
 0x7ce   :  { %1975 = vmatpush.msrb.mxu1 %v1968_v8  ;;  %v2165_v8 = vld [vmem:[#allocation5 + $0xf8] sm:$0xff] }
 0x7d0   :  { %1976 = vmatpush.msrb.mxu1 %v1967_v10  ;;  %v2164_v10 = vld [vmem:[#allocation5 + $0xf0] sm:$0xff] }
 0x7d4   :  { %v1608_v9 = vpop.f32.mrf.mxu0 }
 0x7d5   :  { %v1632_v20 = vadd.f32 %v1631_v18, %v1608_v9  ;;  %v3955_v9 = vld [vmem:[%s6166_s20 + $0xe0] sm:$0xff] }
 0x7d6   :  { %v1964_v18 = vld [vmem:[%s6166_s20 + $0x40] sm:$0xff] }
 0x7dc   :  { %v1651_v14 = vpop.f32.mrf.mxu0 }
 0x7dd   :  { %v1657_v15 = vadd.f32 %v1651_v14, %v1629_v11  ;;  %v3954_v11 = vld [vmem:[%s6166_s20 + $0xd8] sm:$0xff]  ;;  %v3953_v14 = vld [vmem:[%s6166_s20 + $0xd0] sm:$0xff] }
 0x7df   :  { %v1663_v16 = vadd.f32 %v4122_v12, %v1657_v15  ;;  %v1965_v15 = vld [vmem:[%s6166_s20 + $0x48] sm:$0xff] }
 0x7e1   :  { %v5822_v17 = vmax.f32 %v1663_v16, 0.0  ;;  %v3952_v16 = vld [vmem:[%s6166_s20 + $0xc8] sm:$0xff] }
 0x7e3   :  { %1699 = vmatmul.f32.vlgmr.msra.gmra.mxu3 %v5822_v17  ;;  %1739 = vmatmul.f32.vlgmr.msra.gmra.mxu2 %v5822_v17 }
 0x7e4   :  { %v1654_v21 = vpop.f32.mrf.mxu0  ;;  %2066 = vmatpush.msra.mxu2 %v3958_v2  ;;  %v4128_v2 = vld [vmem:[#allocation13] ss:$0 sm:$0xff] }
 0x7e5   :  { %v1658_v22 = vadd.f32 %v1654_v21, %v1632_v20  ;;  %v3951_v20 = vld [vmem:[%s6166_s20 + $0xc0] sm:$0xff]  ;;  %v1963_v21 = vld [vmem:[%s6166_s20 + $0x38] sm:$0xff] }
 0x7e6   :  { %2067 = vmatpush.msra.mxu2 %v3957_v4  ;;  %v4129_v4 = vld [vmem:[#allocation13 + $0x1] ss:$0 sm:$0xff] }
 0x7e7   :  { %v1664_v23 = vadd.f32 %v4122_v12, %v1658_v22  ;;  %v1966_v12 = vld [vmem:[%s6166_s20 + $0x50] sm:$0xff]  ;;  %v3950_v22 = vld [vmem:[%s6166_s20 + $0xb8] sm:$0xff] }
 0x7e8   :  { %2068 = vmatpush.msra.mxu2 %v3956_v7  ;;  %1977 = vmatpush.msrb.mxu1 %v1966_v12  ;;  %v2128_v12 = vld [vmem:[#allocation5 + $0x78] sm:$0xff] }
 0x7e9   :  { %v5826_v24 = vmax.f32 %v1664_v23, 0.0  ;;  %v5853_v23 = vld [vmem:[#allocation7] sm:$0xff] }
 0x7ea   :  { %2069 = vmatpush.msra.mxu2 %v3955_v9  ;;  %1978 = vmatpush.msrb.mxu1 %v1965_v15 }
 0x7eb   :  { %1702 = vmatmul.f32.gmra.mxu3 %v5826_v24  ;;  %1742 = vmatmul.f32.gmra.mxu2 %v5826_v24 }
 0x7ec   :  { %2070 = vmatpush.msra.mxu2 %v3954_v11  ;;  %1979 = vmatpush.msrb.mxu1 %v1964_v18  ;;  %v2163_v11 = vld [vmem:[#allocation5 + $0xe8] sm:$0xff]  ;;  %v2127_v18 = vld [vmem:[#allocation5 + $0x70] sm:$0xff] }
 0x7ee   :  { %2071 = vmatpush.msra.mxu2 %v3953_v14  ;;  %1980 = vmatpush.msrb.mxu1 %v1963_v21  ;;  %v2162_v14 = vld [vmem:[#allocation5 + $0xe0] sm:$0xff]  ;;  %v2126_v21 = vld [vmem:[#allocation5 + $0x68] sm:$0xff] }
 0x7f0   :  { %2072 = vmatpush.msra.mxu2 %v3952_v16  ;;  %1981 = vmatpush.msrb.mxu1 %v1962_v53  ;;  %v2161_v16 = vld [vmem:[#allocation5 + $0xd8] sm:$0xff]  ;;  %v2113_v53 = vld [vmem:[#allocation5] sm:$0xff] }
 0x7f2   :  { %2073 = vmatpush.msra.mxu2 %v3951_v20  ;;  %1982 = vmatpush.msrb.mxu1 %v1961_v45  ;;  %v2160_v20 = vld [vmem:[#allocation5 + $0xd0] sm:$0xff]  ;;  %v2380_v45 = vld [vmem:[#allocation44 + $0xe8] sm:$0xff] }
 0x7f4   :  { %2074 = vmatpush.msra.mxu2 %v3950_v22  ;;  %1983 = vmatpush.msrb.mxu1 %v1960_v46  ;;  %v2159_v22 = vld [vmem:[#allocation5 + $0xc8] sm:$0xff]  ;;  %v2378_v46 = vld [vmem:[#allocation44 + $0xd8] sm:$0xff] }
 0x7f6   :  { %1984 = vmatpush.msrb.mxu1 %v1959_v51  ;;  %v2155_v51 = vld [vmem:[#allocation5 + $0xa8] sm:$0xff] }
 0x7f8   :  { %1985 = vmatpush.msrb.mxu1 %v1958_v55  ;;  %v2375_v55 = vld [vmem:[#allocation44 + $0xc0] sm:$0xff] }
 0x7fa   :  { %1986 = vmatpush.msrb.mxu1 %v1957_v35  ;;  %v2152_v35 = vld [vmem:[#allocation5 + $0x90] sm:$0xff] }
 0x7fc   :  { %1987 = vmatpush.msrb.mxu1 %v1956_v58  ;;  %v2372_v58 = vld [vmem:[#allocation44 + $0xa8] sm:$0xff] }
 0x866   :  { %v1700_v26 = vpop.f32.mrf.mxu3  ;;  %v1740_v27 = vpop.f32.mrf.mxu2 }
 0x867   :  { %v1746_v32 = vmax.f32 %v1700_v26, %v1740_v27  ;;  %v5855_v26 = vld [vmem:[#allocation7 + $0x8] sm:$0xff] }
 0x86e   :  { %v1703_v28 = vpop.f32.mrf.mxu3  ;;  %v1743_v29 = vpop.f32.mrf.mxu2 }
 0x86f   :  { %v1747_v31 = vmax.f32 %v1703_v28, %v1743_v29  ;;  %v3974_v29 = vld [vmem:[%s6166_s20 + $0x178] sm:$0xff] }
 0x871   :  { %1766 = vmatpush.msrb.mxu0 %v1747_v31 }
 0x873   :  { %1767 = vmatpush.msrb.mxu0 %v1746_v32 }
 0x874   :  { %3936 = vmatmul.msk.f32.vlgmr.msrb.gmra.mxu0 %vm1389_vm2, %v1748_v33  ;;  %v3971_v33 = vld [vmem:[%s6166_s20 + $0x160] sm:$0xff] }
 0x875   :  { %1791 = vmatpush.msra.mxu0 %v1747_v31  ;;  %v3973_v31 = vld [vmem:[%s6166_s20 + $0x170] sm:$0xff] }
 0x877   :  { %1792 = vmatpush.msra.mxu0 %v1746_v32  ;;  %v3972_v32 = vld [vmem:[%s6166_s20 + $0x168] sm:$0xff] }
 0x879   :  { %1823 = vmatpush.msrb.mxu0 %v1811_v36  ;;  %v3969_v36 = vld [vmem:[%s6166_s20 + $0x150] sm:$0xff] }
 0x87b   :  { %1824 = vmatpush.msrb.mxu0 %v1810_v40  ;;  %v3966_v40 = vld [vmem:[%s6166_s20 + $0x138] sm:$0xff] }
 0x87c   :  { %3937 = vmatmul.msk.f32.vlgmr.msra.gmra.mxu0 %vm1389_vm2, %v1773_v34  ;;  %v3970_v34 = vld [vmem:[%s6166_s20 + $0x158] sm:$0xff] }
 0x87d   :  { %1825 = vmatpush.msrb.mxu0 %v1809_v43  ;;  %v3949_v43 = vld [vmem:[%s6166_s20 + $0xb0] sm:$0xff] }
 0x87e   :  { %2075 = vmatpush.msra.mxu2 %v3949_v43  ;;  %v2381_v43 = vld [vmem:[#allocation44 + $0xf0] sm:$0xff] }
 0x87f   :  { %1826 = vmatpush.msrb.mxu0 %v1808_v49  ;;  %v3948_v49 = vld [vmem:[%s6166_s20 + $0xa8] sm:$0xff] }
 0x880   :  { %2076 = vmatpush.msra.mxu2 %v3948_v49  ;;  %v2157_v49 = vld [vmem:[#allocation5 + $0xb8] sm:$0xff] }
 0x881   :  { %1827 = vmatpush.msrb.mxu0 %v1807_v50  ;;  %v3947_v50 = vld [vmem:[%s6166_s20 + $0xa0] sm:$0xff] }
 0x882   :  { %2077 = vmatpush.msra.mxu2 %v3947_v50  ;;  %v2377_v50 = vld [vmem:[#allocation44 + $0xd0] sm:$0xff] }
 0x883   :  { %1828 = vmatpush.msrb.mxu0 %v1806_v30  ;;  %v3946_v30 = vld [vmem:[%s6166_s20 + $0x98] sm:$0xff] }
 0x884   :  { %2078 = vmatpush.msra.mxu2 %v3946_v30  ;;  %v2154_v30 = vld [vmem:[#allocation5 + $0xa0] sm:$0xff] }
 0x885   :  { %1829 = vmatpush.msrb.mxu0 %v1805_v57  ;;  %v3945_v57 = vld [vmem:[%s6166_s20 + $0x90] sm:$0xff] }
 0x886   :  { %2079 = vmatpush.msra.mxu2 %v3945_v57  ;;  %v2374_v57 = vld [vmem:[#allocation44 + $0xb8] sm:$0xff] }
 0x887   :  { %1830 = vmatpush.msrb.mxu0 %v1804_v47  ;;  %v3944_v47 = vld [vmem:[%s6166_s20 + $0x88] sm:$0xff] }
 0x888   :  { %2080 = vmatpush.msra.mxu2 %v3944_v47  ;;  %v2151_v47 = vld [vmem:[#allocation5 + $0x88] sm:$0xff] }
 0x8f1   :  { %v1769_v60 = vpop.f32.mrf.mxu0 }
 0x8f9   :  { %v1794_v56 = vpop.f32.mrf.mxu0 }
 0x8fa   :  { %v1797_v61 = vmax.f32 %v1769_v60, %v1794_v56  ;;  %v3943_v60 = vld [vmem:[%s6166_s20 + $0x80] sm:$0xff] }
 0x8fb   :  { %2081 = vmatpush.msra.mxu2 %v3943_v60  ;;  %v2371_v60 = vld [vmem:[#allocation44 + $0xa0] sm:$0xff] }
 0x8fc   :  { %v1800_v63 = vmul.f32 %v4125_v44, %v1797_v61 }
 0x8fe   :  { %v1803_v0 = vadd.f32 %v4126_v62, %v1800_v63  ;;  %v4127_v63 = vld [vmem:[#allocation8] ss:$0 sm:$0xff] }
 0x900   :  { %3938 = vmatmul.msk.f32.vlgmr.msrb.gmra.mxu0 %vm692_vm0, %v1803_v0  ;;  %3939 = vmatmul.msk.f32.vlgmr.msra.gmra.mxu1 %vm692_vm0, %v1803_v0 }
 0x901   :  { %3941 = vmatmul.msk.f32.vlgmr.msrb.gmra.mxu2 %vm692_vm0, %v1803_v0  ;;  %2166 = vmatpush.msra.mxu1 %v2165_v8 }
 0x903   :  { %2167 = vmatpush.msra.mxu1 %v2164_v10  ;;  %v4124_v10 = vld [vmem:[%s5303_s9 + $0x1] ss:$0 sm:$0xff] }
 0x905   :  { %2168 = vmatpush.msra.mxu1 %v2163_v11 }
 0x907   :  { %2169 = vmatpush.msra.mxu1 %v2162_v14 }
 0x909   :  { %2170 = vmatpush.msra.mxu1 %v2161_v16  ;;  %v2186_v16 = vld [vmem:[%s6167_s25] sm:$0xff] }
 0x90b   :  { %2171 = vmatpush.msra.mxu1 %v2160_v20 }
 0x90d   :  { %2172 = vmatpush.msra.mxu1 %v2159_v22  ;;  %v2299_v22 = vld [vmem:[#allocation44 + $0x60] sm:$0xff] }
 0x97d   :  { %v1832_v27 = vpop.f32.mrf.mxu0  ;;  %v1870_v28 = vpop.f32.mrf.mxu1 }
 0x97e   :  { %1893 = vmatpush.msrb.mxu3 %v1832_v27  ;;  %1938 = vmatpush.msra.mxu0 %v1870_v28  ;;  %v2158_v27 = vld [vmem:[#allocation5 + $0xc0] sm:$0xff]  ;;  %v2124_v28 = vld [vmem:[#allocation5 + $0x58] sm:$0xff] }
 0x97f   :  { %3940 = vmatmul.msk.f32.vlgmr.msrb.gmra.mxu3 %vm1874_vm3, %v5853_v23  ;;  %3942 = vmatmul.msk.f32.vlgmr.msra.gmra.mxu0 %vm1874_vm3, %v5855_v26 }
 0x980   :  { %2026 = vmatpush.msra.mxu3 %v3974_v29  ;;  %2173 = vmatpush.msra.mxu1 %v2158_v27  ;;  %v2123_v29 = vld [vmem:[#allocation5 + $0x50] sm:$0xff]  ;;  %v2187_v27 = vld [vmem:[%s6167_s25 + $0x8] sm:$0xff] }
 0x982   :  { %2027 = vmatpush.msra.mxu3 %v3973_v31  ;;  %v2122_v31 = vld [vmem:[#allocation5 + $0x48] sm:$0xff]  ;;  %2174 = vmatpush.msra.mxu1 %v2157_v49  ;;  %v2458_v49 = vld [vmem:[#allocation44 + $0x158] sm:$0xff] }
 0x984   :  { %2028 = vmatpush.msra.mxu3 %v3972_v32  ;;  %v1915_v44 = vpop.f32.mrf.mxu2  ;;  %v2121_v32 = vld [vmem:[#allocation5 + $0x40] sm:$0xff] }
 0x986   :  { %2029 = vmatpush.msra.mxu3 %v3971_v33  ;;  %v2120_v33 = vld [vmem:[#allocation5 + $0x38] sm:$0xff] }
 0x988   :  { %2030 = vmatpush.msra.mxu3 %v3970_v34  ;;  %v2118_v34 = vld [vmem:[#allocation5 + $0x28] sm:$0xff] }
 0x98a   :  { %2031 = vmatpush.msra.mxu3 %v3969_v36  ;;  %v2117_v36 = vld [vmem:[#allocation5 + $0x20] sm:$0xff] }
 0x98c   :  { %2032 = vmatpush.msra.mxu3 %v3968_v37  ;;  %v2116_v37 = vld [vmem:[#allocation5 + $0x18] sm:$0xff] }
 0x98e   :  { %2033 = vmatpush.msra.mxu3 %v3967_v41  ;;  %v2115_v41 = vld [vmem:[#allocation5 + $0x10] sm:$0xff] }
 0x990   :  { %2034 = vmatpush.msra.mxu3 %v3966_v40  ;;  %v2114_v40 = vld [vmem:[#allocation5 + $0x8] sm:$0xff] }
 0x992   :  { %2035 = vmatpush.msra.mxu3 %v3965_v42  ;;  %v2382_v42 = vld [vmem:[#allocation44 + $0xf8] sm:$0xff] }
 0x994   :  { %2036 = vmatpush.msra.mxu3 %v3964_v48  ;;  %v2379_v48 = vld [vmem:[#allocation44 + $0xe0] sm:$0xff] }
 0x996   :  { %2037 = vmatpush.msra.mxu3 %v3963_v54  ;;  %v2156_v54 = vld [vmem:[#allocation5 + $0xb0] sm:$0xff] }
 0x997   :  { %2175 = vmatpush.msra.mxu1 %v2156_v54  ;;  %v2286_v54 = vld [vmem:[#allocation43 + $0x78] sm:$0xff] }
 0x998   :  { %2038 = vmatpush.msra.mxu3 %v3962_v38  ;;  %v2376_v38 = vld [vmem:[#allocation44 + $0xc8] sm:$0xff] }
 0x999   :  { %2176 = vmatpush.msra.mxu1 %v2155_v51  ;;  %v2456_v51 = vld [vmem:[#allocation44 + $0x148] sm:$0xff] }
 0x99a   :  { %2039 = vmatpush.msra.mxu3 %v3961_v52  ;;  %v2153_v52 = vld [vmem:[#allocation5 + $0x98] sm:$0xff] }
 0x99b   :  { %2177 = vmatpush.msra.mxu1 %v2154_v30  ;;  %v2365_v30 = vld [vmem:[#allocation43 + $0xf8] sm:$0xff] }
 0x99c   :  { %2040 = vmatpush.msra.mxu3 %v3960_v39  ;;  %v2373_v39 = vld [vmem:[#allocation44 + $0xb0] sm:$0xff] }
 0x99d   :  { %2178 = vmatpush.msra.mxu1 %v2153_v52  ;;  %v2455_v52 = vld [vmem:[#allocation44 + $0x140] sm:$0xff] }
 0x99e   :  { %2041 = vmatpush.msra.mxu3 %v3959_v59  ;;  %v2150_v59 = vld [vmem:[#allocation5 + $0x80] sm:$0xff] }
 0x99f   :  { %2179 = vmatpush.msra.mxu1 %v2152_v35  ;;  %v2363_v35 = vld [vmem:[#allocation43 + $0xe8] sm:$0xff] }
 0x9a1   :  { %2180 = vmatpush.msra.mxu1 %v2151_v47  ;;  %v2282_v47 = vld [vmem:[#allocation43 + $0x58] sm:$0xff] }
 0x9a3   :  { %2181 = vmatpush.msra.mxu1 %v2150_v59  ;;  %v2453_v59 = vld [vmem:[#allocation44 + $0x130] sm:$0xff] }
 0x9fc   :  { %v1940_v61 = vpop.f32.mrf.mxu0 }
 0xa02   :  { %v1895_v56 = vpop.f32.mrf.mxu3 }
 0xa03   :  { %v1916_v62 = vadd.f32 %v1915_v44, %v1895_v56  ;;  %v2370_v44 = vld [vmem:[#allocation44 + $0x98] sm:$0xff]  ;;  %v2369_v56 = vld [vmem:[#allocation44 + $0x90] sm:$0xff] }
 0xa05   :  { %v1943_v0 = vadd.f32 %v1940_v61, %v1916_v62  ;;  %v2368_v61 = vld [vmem:[#allocation44 + $0x88] sm:$0xff]  ;;  %v2367_v62 = vld [vmem:[#allocation44 + $0x80] sm:$0xff] }
 0xa07   :  { %v1948_v1 = vadd.f32 %v4127_v63, %v1943_v0 }
 0xa09   :  { %v1949_v3 = vmax.f32 %v1948_v1, 0.0 }
 0xa0b   :  { %v1952_v5 = vmul.f32 %v4128_v2, %v1949_v3  ;;  %v4130_v2 = vld [vmem:[#allocation10] ss:$0 sm:$0xff] }
 0xa0d   :  { %v1955_v7 = vadd.f32 %v4129_v4, %v1952_v5 }
 0xa0f   :  { %1988 = vmatmul.f32.vlgmr.msrb.gmra.mxu1 %v1955_v7  ;;  %2042 = vmatmul.f32.vlgmr.msra.gmra.mxu3 %v1955_v7 }
 0xa10   :  { %2082 = vmatmul.f32.vlgmr.msra.gmra.mxu2 %v1955_v7  ;;  %v4123_v7 = vld [vmem:[%s5303_s9] ss:$0 sm:$0xff]  ;;  %2406 = vmatpush.msrb.mxu1 %v2365_v30  ;;  %s6168_s9 = sld [smem:[#allocation102_spill]] }
 0xa16   :  { %v4133_v30 = vld [vmem:[%s6168_s9 + $0x1] ss:$0 sm:$0xff] }
 0xa8c   :  { %v1989_v9 = vpop.f32.mrf.mxu1 }
 0xa8d   :  { %2061 = vmatpush.msrb.mxu0 %v1989_v9  ;;  %v2265_v9 = vmul.f32 %v4123_v7, %v5822_v17  ;;  %v2301_v17 = vld [vmem:[#allocation44 + $0x70] sm:$0xff] }
 0xa8e   :  { %3975 = vmatmul.msk.f32.vlgmr.msrb.gmra.mxu0 %vm1874_vm3, %v5853_v23  ;;  %v2125_v23 = vld [vmem:[#allocation5 + $0x60] sm:$0xff] }
 0xa8f   :  { %v5898_v11 = vadd.f32 %v4124_v10, %v2265_v9  ;;  %v2448_v9 = vld [vmem:[#allocation44 + $0x108] sm:$0xff] }
 0xa92   :  { %v2043_v15 = vpop.f32.mrf.mxu3 }
 0xa93   :  { %2101 = vmatpush.msra.mxu0 %v2043_v15  ;;  %v2083_v0 = vpop.f32.mrf.mxu2  ;;  %v3977_v15 = vld [vmem:[%s6167_s25 + $0x10] sm:$0xff] }
 0xa95   :  { %2129 = vmatpush.msrb.mxu0 %v2128_v12  ;;  %v2266_v12 = vmul.f32 %v4123_v7, %v5826_v24  ;;  %v2300_v24 = vld [vmem:[#allocation44 + $0x68] sm:$0xff]  ;;  %v2277_v7 = vld [vmem:[#allocation43 + $0x30] sm:$0xff] }
 0xa96   :  { %3976 = vmatmul.msk.f32.vlgmr.msra.gmra.mxu0 %vm1874_vm3, %v5855_v26  ;;  %v2119_v26 = vld [vmem:[#allocation5 + $0x30] sm:$0xff] }
 0xa97   :  { %2130 = vmatpush.msrb.mxu0 %v2127_v18  ;;  %v5902_v14 = vadd.f32 %v4124_v10, %v2266_v12  ;;  %v2276_v10 = vld [vmem:[#allocation43 + $0x28] sm:$0xff]  ;;  %v2356_v12 = vld [vmem:[#allocation43 + $0xb0] sm:$0xff] }
 0xa99   :  { %2131 = vmatpush.msrb.mxu0 %v2126_v21  ;;  %v2302_v21 = vld [vmem:[#allocation44 + $0x78] sm:$0xff] }
 0xa9b   :  { %2132 = vmatpush.msrb.mxu0 %v2125_v23  ;;  %v3978_v23 = vld [vmem:[%s6167_s25 + $0x18] sm:$0xff] }
 0xa9d   :  { %2133 = vmatpush.msrb.mxu0 %v2124_v28  ;;  %v2298_v28 = vld [vmem:[#allocation44 + $0x58] sm:$0xff] }
 0xa9f   :  { %2134 = vmatpush.msrb.mxu0 %v2123_v29  ;;  %v2297_v29 = vld [vmem:[#allocation44 + $0x50] sm:$0xff] }
 0xaa1   :  { %2135 = vmatpush.msrb.mxu0 %v2122_v31  ;;  %v2296_v31 = vld [vmem:[#allocation44 + $0x48] sm:$0xff] }
 0xaa3   :  { %2136 = vmatpush.msrb.mxu0 %v2121_v32  ;;  %v2295_v32 = vld [vmem:[#allocation44 + $0x40] sm:$0xff] }
 0xaa5   :  { %2137 = vmatpush.msrb.mxu0 %v2120_v33  ;;  %v2294_v33 = vld [vmem:[#allocation44 + $0x38] sm:$0xff] }
 0xaa7   :  { %2138 = vmatpush.msrb.mxu0 %v2119_v26  ;;  %v2293_v26 = vld [vmem:[#allocation44 + $0x30] sm:$0xff] }
 0xaa9   :  { %2139 = vmatpush.msrb.mxu0 %v2118_v34  ;;  %v2292_v34 = vld [vmem:[#allocation44 + $0x28] sm:$0xff] }
 0xaab   :  { %2140 = vmatpush.msrb.mxu0 %v2117_v36  ;;  %v2291_v36 = vld [vmem:[#allocation44 + $0x20] sm:$0xff] }
 0xaad   :  { %2141 = vmatpush.msrb.mxu0 %v2116_v37  ;;  %v2290_v37 = vld [vmem:[#allocation44 + $0x18] sm:$0xff] }
 0xaaf   :  { %2142 = vmatpush.msrb.mxu0 %v2115_v41  ;;  %v2289_v41 = vld [vmem:[#allocation44 + $0x10] sm:$0xff] }
 0xab1   :  { %2143 = vmatpush.msrb.mxu0 %v2114_v40  ;;  %v2288_v40 = vld [vmem:[#allocation44 + $0x8] sm:$0xff] }
 0xab3   :  { %2144 = vmatpush.msrb.mxu0 %v2113_v53  ;;  %v2287_v53 = vld [vmem:[#allocation44] sm:$0xff] }
 0xab5   :  { %2383 = vmatpush.msra.mxu0 %v2382_v42  ;;  %v2462_v42 = vld [vmem:[#allocation44 + $0x178] sm:$0xff] }
 0xab7   :  { %2384 = vmatpush.msra.mxu0 %v2381_v43  ;;  %v2461_v43 = vld [vmem:[#allocation44 + $0x170] sm:$0xff] }
 0xab9   :  { %2385 = vmatpush.msra.mxu0 %v2380_v45  ;;  %v2460_v45 = vld [vmem:[#allocation44 + $0x168] sm:$0xff] }
 0xabb   :  { %2386 = vmatpush.msra.mxu0 %v2379_v48  ;;  %v2459_v48 = vld [vmem:[#allocation44 + $0x160] sm:$0xff] }
 0xabd   :  { %2387 = vmatpush.msra.mxu0 %v2378_v46  ;;  %v2457_v46 = vld [vmem:[#allocation44 + $0x150] sm:$0xff] }
 0xabf   :  { %2388 = vmatpush.msra.mxu0 %v2377_v50  ;;  %v2285_v50 = vld [vmem:[#allocation43 + $0x70] sm:$0xff] }
 0xac1   :  { %2389 = vmatpush.msra.mxu0 %v2376_v38  ;;  %v2284_v38 = vld [vmem:[#allocation43 + $0x68] sm:$0xff] }
 0xac3   :  { %2390 = vmatpush.msra.mxu0 %v2375_v55  ;;  %v2364_v55 = vld [vmem:[#allocation43 + $0xf0] sm:$0xff] }
 0xac4   :  { %2407 = vmatpush.msrb.mxu1 %v2364_v55 }
 0xac5   :  { %2391 = vmatpush.msra.mxu0 %v2374_v57  ;;  %v2283_v57 = vld [vmem:[#allocation43 + $0x60] sm:$0xff] }
 0xac6   :  { %2408 = vmatpush.msrb.mxu1 %v2363_v35 }
 0xac7   :  { %2392 = vmatpush.msra.mxu0 %v2373_v39  ;;  %v2454_v39 = vld [vmem:[#allocation44 + $0x138] sm:$0xff] }
 0xac9   :  { %2393 = vmatpush.msra.mxu0 %v2372_v58  ;;  %v2362_v58 = vld [vmem:[#allocation43 + $0xe0] sm:$0xff] }
 0xaca   :  { %2409 = vmatpush.msrb.mxu1 %v2362_v58 }
 0xacb   :  { %2394 = vmatpush.msra.mxu0 %v2371_v60  ;;  %v2281_v60 = vld [vmem:[#allocation43 + $0x50] sm:$0xff] }
 0xacd   :  { %2395 = vmatpush.msra.mxu0 %v2370_v44  ;;  %v2361_v44 = vld [vmem:[#allocation43 + $0xd8] sm:$0xff] }
 0xace   :  { %2410 = vmatpush.msrb.mxu1 %v2361_v44 }
 0xacf   :  { %2396 = vmatpush.msra.mxu0 %v2369_v56  ;;  %v2452_v56 = vld [vmem:[#allocation44 + $0x128] sm:$0xff] }
 0xad1   :  { %2397 = vmatpush.msra.mxu0 %v2368_v61  ;;  %v2280_v61 = vld [vmem:[#allocation43 + $0x48] sm:$0xff] }
 0xad3   :  { %2398 = vmatpush.msra.mxu0 %v2367_v62  ;;  %v2360_v62 = vld [vmem:[#allocation43 + $0xd0] sm:$0xff] }
 0xad4   :  { %2411 = vmatpush.msrb.mxu1 %v2360_v62  ;;  %v2647_v62 = vld [vmem:[#allocation46 + $0xf8] sm:$0xff] }
 0xb0b   :  { %v2063_v63 = vpop.f32.mrf.mxu0 }
 0xb0c   :  { %v2084_v1 = vadd.f32 %v2083_v0, %v2063_v63  ;;  %v2451_v63 = vld [vmem:[#allocation44 + $0x120] sm:$0xff] }
 0xb0d   :  { %v2279_v0 = vld [vmem:[#allocation43 + $0x40] sm:$0xff] }
 0xb13   :  { %v2103_v3 = vpop.f32.mrf.mxu0 }
 0xb14   :  { %v2106_v4 = vadd.f32 %v2103_v3, %v2084_v1  ;;  %v2359_v1 = vld [vmem:[#allocation43 + $0xc8] sm:$0xff]  ;;  %v2278_v3 = vld [vmem:[#allocation43 + $0x38] sm:$0xff] }
 0xb15   :  { %2412 = vmatpush.msrb.mxu1 %v2359_v1 }
 0xb16   :  { %v2111_v5 = vadd.f32 %v4130_v2, %v2106_v4  ;;  %v2450_v2 = vld [vmem:[#allocation44 + $0x118] sm:$0xff]  ;;  %v2358_v4 = vld [vmem:[#allocation43 + $0xc0] sm:$0xff] }
 0xb17   :  { %2413 = vmatpush.msrb.mxu1 %v2358_v4  ;;  %v5919_v4 = vld [vmem:[#allocation49] sm:$0xff] }
 0xb18   :  { %v2112_v8 = vmax.f32 %v2111_v5, 0.0  ;;  %v2449_v5 = vld [vmem:[#allocation44 + $0x110] sm:$0xff] }
 0xb1a   :  { %2145 = vmatmul.f32.vlgmr.msrb.gmra.mxu0 %v2112_v8  ;;  %2182 = vmatmul.f32.vlgmr.msra.gmra.mxu1 %v2112_v8  ;;  %v2357_v8 = vld [vmem:[#allocation43 + $0xb8] sm:$0xff] }
 0xb1b   :  { %2414 = vmatpush.msrb.mxu1 %v2357_v8  ;;  %v2606_v8 = vld [vmem:[#allocation46 + $0x70] sm:$0xff] }
 0xb1d   :  { %2415 = vmatpush.msrb.mxu1 %v2356_v12 }
 0xb22   :  { %2399 = vmatmul.f32.vlgmr.msra.gmra.mxu0 %v5898_v11 }
 0xb2a   :  { %2402 = vmatmul.f32.gmra.mxu0 %v5902_v14 }
 0xb97   :  { %v2146_v18 = vpop.f32.mrf.mxu0  ;;  %v2183_v20 = vpop.f32.mrf.mxu1 }
 0xb98   :  { %2212 = vmatpush.msrb.mxu3 %v2183_v20  ;;  %2241 = vmatpush.msrb.mxu2 %v2146_v18  ;;  %v2355_v18 = vld [vmem:[#allocation43 + $0xa8] sm:$0xff]  ;;  %v2274_v20 = vld [vmem:[#allocation43 + $0x18] sm:$0xff] }
 0xb99   :  { %3979 = vmatmul.msk.f32.vlgmr.msrb.gmra.mxu3 %vm1874_vm3, %v3977_v15  ;;  %3981 = vmatmul.msk.f32.vlgmr.msrb.gmra.mxu2 %vm1874_vm3, %v2186_v16  ;;  %v2447_v15 = vld [vmem:[#allocation44 + $0x100] sm:$0xff] }
 0xb9a   :  { %2303 = vmatpush.msra.mxu3 %v2302_v21  ;;  %2326 = vmatpush.msra.mxu2 %v2286_v54  ;;  %v2275_v16 = vld [vmem:[#allocation43 + $0x20] sm:$0xff]  ;;  %v2273_v21 = vld [vmem:[#allocation43 + $0x10] sm:$0xff] }
 0xb9b   :  { %2416 = vmatpush.msrb.mxu1 %v2355_v18 }
 0xb9c   :  { %2304 = vmatpush.msra.mxu3 %v2301_v17  ;;  %2327 = vmatpush.msra.mxu2 %v2285_v50  ;;  %v2272_v17 = vld [vmem:[#allocation43 + $0x8] sm:$0xff] }
 0xb9e   :  { %2305 = vmatpush.msra.mxu3 %v2300_v24  ;;  %2328 = vmatpush.msra.mxu2 %v2284_v38  ;;  %v2271_v24 = vld [vmem:[#allocation43] sm:$0xff] }
 0xba0   :  { %2306 = vmatpush.msra.mxu3 %v2299_v22  ;;  %2329 = vmatpush.msra.mxu2 %v2283_v57  ;;  %v2445_v22 = vld [vmem:[#allocation43 + $0x178] sm:$0xff] }
 0xba1   :  { %3980 = vmatmul.msk.f32.gmra.mxu3 %vm1874_vm3, %v3978_v23  ;;  %3982 = vmatmul.msk.f32.gmra.mxu2 %vm1874_vm3, %v2187_v27  ;;  %v2444_v23 = vld [vmem:[#allocation43 + $0x170] sm:$0xff]  ;;  %v2443_v27 = vld [vmem:[#allocation43 + $0x168] sm:$0xff] }
 0xba2   :  { %2307 = vmatpush.msra.mxu3 %v2298_v28  ;;  %2330 = vmatpush.msra.mxu2 %v2282_v47  ;;  %v2354_v28 = vld [vmem:[#allocation43 + $0xa0] sm:$0xff] }
 0xba3   :  { %2417 = vmatpush.msrb.mxu1 %v2354_v28  ;;  %v2644_v28 = vld [vmem:[#allocation46 + $0xe0] sm:$0xff] }
 0xba4   :  { %2308 = vmatpush.msra.mxu3 %v2297_v29  ;;  %2331 = vmatpush.msra.mxu2 %v2281_v60  ;;  %v2442_v29 = vld [vmem:[#allocation43 + $0x160] sm:$0xff] }
 0xba6   :  { %2309 = vmatpush.msra.mxu3 %v2296_v31  ;;  %2332 = vmatpush.msra.mxu2 %v2280_v61  ;;  %v2441_v31 = vld [vmem:[#allocation43 + $0x158] sm:$0xff] }
 0xba7   :  { %v2664_v61 = vld [vmem:[#allocation46 + $0x178] sm:$0xff] }
 0xba8   :  { %2310 = vmatpush.msra.mxu3 %v2295_v32  ;;  %2333 = vmatpush.msra.mxu2 %v2279_v0  ;;  %v2352_v32 = vld [vmem:[#allocation43 + $0x90] sm:$0xff] }
 0xba9   :  { %v2646_v0 = vld [vmem:[#allocation46 + $0xf0] sm:$0xff] }
 0xbaa   :  { %2311 = vmatpush.msra.mxu3 %v2294_v33  ;;  %2334 = vmatpush.msra.mxu2 %v2278_v3  ;;  %v2440_v33 = vld [vmem:[#allocation43 + $0x150] sm:$0xff] }
 0xbac   :  { %2312 = vmatpush.msra.mxu3 %v2293_v26  ;;  %2335 = vmatpush.msra.mxu2 %v2277_v7  ;;  %v2351_v26 = vld [vmem:[#allocation43 + $0x88] sm:$0xff] }
 0xbae   :  { %2313 = vmatpush.msra.mxu3 %v2292_v34  ;;  %2336 = vmatpush.msra.mxu2 %v2276_v10  ;;  %v2439_v34 = vld [vmem:[#allocation43 + $0x148] sm:$0xff] }
 0xbaf   :  { %v5923_v10 = vld [vmem:[#allocation49 + $0x8] sm:$0xff] }
 0xbb0   :  { %2314 = vmatpush.msra.mxu3 %v2291_v36  ;;  %2337 = vmatpush.msra.mxu2 %v2275_v16  ;;  %v2438_v36 = vld [vmem:[#allocation43 + $0x140] sm:$0xff] }
 0xbb2   :  { %2315 = vmatpush.msra.mxu3 %v2290_v37  ;;  %2338 = vmatpush.msra.mxu2 %v2274_v20  ;;  %v2437_v37 = vld [vmem:[#allocation43 + $0x138] sm:$0xff]  ;;  %v5927_v20 = vld [vmem:[#allocation49 + $0x10] sm:$0xff] }
 0xbb4   :  { %2316 = vmatpush.msra.mxu3 %v2289_v41  ;;  %2339 = vmatpush.msra.mxu2 %v2273_v21  ;;  %v2436_v41 = vld [vmem:[#allocation43 + $0x130] sm:$0xff]  ;;  %v5931_v21 = vld [vmem:[#allocation49 + $0x18] sm:$0xff] }
 0xbb6   :  { %2317 = vmatpush.msra.mxu3 %v2288_v40  ;;  %2340 = vmatpush.msra.mxu2 %v2272_v17  ;;  %v2435_v40 = vld [vmem:[#allocation43 + $0x128] sm:$0xff] }
 0xbb7   :  { %v2605_v17 = vld [vmem:[#allocation46 + $0x68] sm:$0xff] }
 0xbb8   :  { %2318 = vmatpush.msra.mxu3 %v2287_v53  ;;  %2341 = vmatpush.msra.mxu2 %v2271_v24  ;;  %v2434_v53 = vld [vmem:[#allocation43 + $0x120] sm:$0xff]  ;;  %v2662_v24 = vld [vmem:[#allocation46 + $0x168] sm:$0xff] }
 0xbb9   :  { %2319 = vmatmul.f32.vlgmr.msra.gmra.mxu3 %v5898_v11 }
 0xbba   :  { %2463 = vmatpush.msrb.mxu3 %v2462_v42  ;;  %2486 = vmatpush.msrb.mxu2 %v2445_v22  ;;  %v2433_v42 = vld [vmem:[#allocation43 + $0x118] sm:$0xff]  ;;  %v2645_v22 = vld [vmem:[#allocation46 + $0xe8] sm:$0xff] }
 0xbbc   :  { %2464 = vmatpush.msrb.mxu3 %v2461_v43  ;;  %2487 = vmatpush.msrb.mxu2 %v2444_v23  ;;  %v2432_v43 = vld [vmem:[#allocation43 + $0x110] sm:$0xff]  ;;  %v2604_v23 = vld [vmem:[#allocation46 + $0x60] sm:$0xff] }
 0xbbe   :  { %2465 = vmatpush.msrb.mxu3 %v2460_v45  ;;  %2488 = vmatpush.msrb.mxu2 %v2443_v27  ;;  %v2431_v45 = vld [vmem:[#allocation43 + $0x108] sm:$0xff]  ;;  %v2661_v27 = vld [vmem:[#allocation46 + $0x160] sm:$0xff] }
 0xbc0   :  { %2466 = vmatpush.msrb.mxu3 %v2459_v48  ;;  %2489 = vmatpush.msrb.mxu2 %v2442_v29  ;;  %v2430_v48 = vld [vmem:[#allocation43 + $0x100] sm:$0xff]  ;;  %v2603_v29 = vld [vmem:[#allocation46 + $0x58] sm:$0xff] }
 0xbc1   :  { %2322 = vmatmul.f32.gmra.mxu3 %v5902_v14 }
 0xbc2   :  { %2467 = vmatpush.msrb.mxu3 %v2458_v49  ;;  %2490 = vmatpush.msrb.mxu2 %v2441_v31  ;;  %v4131_v49 = vld [vmem:[#allocation14] ss:$0 sm:$0xff] }
 0xbc3   :  { %v2643_v31 = vld [vmem:[#allocation46 + $0xd8] sm:$0xff] }
 0xbc4   :  { %2468 = vmatpush.msrb.mxu3 %v2457_v46  ;;  %2491 = vmatpush.msrb.mxu2 %v2440_v33  ;;  %v2659_v33 = vld [vmem:[#allocation46 + $0x150] sm:$0xff] }
 0xbc6   :  { %2469 = vmatpush.msrb.mxu3 %v2456_v51  ;;  %2492 = vmatpush.msrb.mxu2 %v2439_v34  ;;  %v4132_v51 = vld [vmem:[%s6168_s9] ss:$0 sm:$0xff]  ;;  %v2601_v34 = vld [vmem:[#allocation46 + $0x48] sm:$0xff] }
 0xbc8   :  { %2470 = vmatpush.msrb.mxu3 %v2455_v52  ;;  %2493 = vmatpush.msrb.mxu2 %v2438_v36  ;;  %v2641_v36 = vld [vmem:[#allocation46 + $0xc8] sm:$0xff] }
 0xbca   :  { %2471 = vmatpush.msrb.mxu3 %v2454_v39  ;;  %2494 = vmatpush.msrb.mxu2 %v2437_v37  ;;  %v2600_v37 = vld [vmem:[#allocation46 + $0x40] sm:$0xff] }
 0xbcc   :  { %2472 = vmatpush.msrb.mxu3 %v2453_v59  ;;  %2495 = vmatpush.msrb.mxu2 %v2436_v41  ;;  %v2657_v41 = vld [vmem:[#allocation46 + $0x140] sm:$0xff] }
 0xbce   :  { %2473 = vmatpush.msrb.mxu3 %v2452_v56  ;;  %2496 = vmatpush.msrb.mxu2 %v2435_v40  ;;  %v2640_v40 = vld [vmem:[#allocation46 + $0xc0] sm:$0xff] }
 0xbd0   :  { %2474 = vmatpush.msrb.mxu3 %v2451_v63  ;;  %2497 = vmatpush.msrb.mxu2 %v2434_v53  ;;  %v2663_v63 = vld [vmem:[#allocation46 + $0x170] sm:$0xff]  ;;  %v2599_v53 = vld [vmem:[#allocation46 + $0x38] sm:$0xff] }
 0xbd2   :  { %2475 = vmatpush.msrb.mxu3 %v2450_v2  ;;  %2498 = vmatpush.msrb.mxu2 %v2433_v42  ;;  %v2656_v42 = vld [vmem:[#allocation46 + $0x138] sm:$0xff] }
 0xbd4   :  { %2476 = vmatpush.msrb.mxu3 %v2449_v5  ;;  %2499 = vmatpush.msrb.mxu2 %v2432_v43  ;;  %v2607_v5 = vld [vmem:[#allocation46 + $0x78] sm:$0xff] }
 0xbd5   :  { %v2639_v43 = vld [vmem:[#allocation46 + $0xb8] sm:$0xff] }
 0xbd6   :  { %2477 = vmatpush.msrb.mxu3 %v2448_v9  ;;  %2500 = vmatpush.msrb.mxu2 %v2431_v45  ;;  %v2598_v45 = vld [vmem:[#allocation46 + $0x30] sm:$0xff] }
 0xbd8   :  { %2478 = vmatpush.msrb.mxu3 %v2447_v15  ;;  %2501 = vmatpush.msrb.mxu2 %v2430_v48  ;;  %v2655_v48 = vld [vmem:[#allocation46 + $0x130] sm:$0xff] }
 0xbd9   :  { %2479 = vmatmul.f32.vlgmr.msrb.gmra.mxu3 %v5898_v11  ;;  %v2353_v11 = vld [vmem:[#allocation43 + $0x98] sm:$0xff] }
 0xbda   :  { %2418 = vmatpush.msrb.mxu1 %v2353_v11  ;;  %2665 = vmatpush.msra.mxu3 %v2664_v61  ;;  %v2660_v11 = vld [vmem:[#allocation46 + $0x158] sm:$0xff]  ;;  %v2649_v61 = vld [vmem:[#allocation46 + $0x100] sm:$0xff] }
 0xbdc   :  { %2419 = vmatpush.msrb.mxu1 %v2352_v32  ;;  %2666 = vmatpush.msra.mxu3 %v2663_v63  ;;  %v2602_v32 = vld [vmem:[#allocation46 + $0x50] sm:$0xff] }
 0xbde   :  { %2420 = vmatpush.msrb.mxu1 %v2351_v26  ;;  %2667 = vmatpush.msra.mxu3 %v2662_v24  ;;  %v2642_v26 = vld [vmem:[#allocation46 + $0xd0] sm:$0xff]  ;;  %v4136_v24 = vld [vmem:[%s5308_s21 + $0x1] ss:$0 sm:$0xff] }
 0xbe0   :  { %2668 = vmatpush.msra.mxu3 %v2661_v27 }
 0xbe1   :  { %2482 = vmatmul.f32.gmra.mxu3 %v5902_v14  ;;  %v2350_v14 = vld [vmem:[#allocation43 + $0x80] sm:$0xff] }
 0xbe2   :  { %2421 = vmatpush.msrb.mxu1 %v2350_v14  ;;  %2669 = vmatpush.msra.mxu3 %v2660_v11  ;;  %v2658_v14 = vld [vmem:[#allocation46 + $0x148] sm:$0xff] }
 0xbe4   :  { %2670 = vmatpush.msra.mxu3 %v2659_v33 }
 0xbe6   :  { %2671 = vmatpush.msra.mxu3 %v2658_v14  ;;  %v2781_v14 = vld [vmem:[#allocation47 + $0x70] sm:$0xff] }
 0xbe8   :  { %2672 = vmatpush.msra.mxu3 %v2657_v41  ;;  %v2822_v41 = vld [vmem:[#allocation47 + $0xf8] sm:$0xff] }
 0xbea   :  { %2673 = vmatpush.msra.mxu3 %v2656_v42  ;;  %v2779_v42 = vld [vmem:[#allocation47 + $0x60] sm:$0xff] }
 0xbec   :  { %2674 = vmatpush.msra.mxu3 %v2655_v48  ;;  %v2819_v48 = vld [vmem:[#allocation47 + $0xe0] sm:$0xff] }
 0xc1c   :  { %v2214_v46 = vpop.f32.mrf.mxu3  ;;  %v2243_v54 = vpop.f32.mrf.mxu2 }
 0xc1d   :  { %v2244_v50 = vadd.f32 %v2243_v54, %v2214_v46  ;;  %v2597_v46 = vld [vmem:[#allocation46 + $0x28] sm:$0xff] }
 0xc1e   :  { %v2654_v54 = vld [vmem:[#allocation46 + $0x128] sm:$0xff] }
 0xc1f   :  { %v2253_v38 = vadd.f32 %v4131_v49, %v2244_v50  ;;  %2675 = vmatpush.msra.mxu3 %v2654_v54  ;;  %v2637_v50 = vld [vmem:[#allocation46 + $0xa8] sm:$0xff] }
 0xc20   :  { %v2776_v54 = vld [vmem:[#allocation47 + $0x48] sm:$0xff] }
 0xc21   :  { %v2257_v55 = vmul.f32 %v4132_v51, %v2253_v38  ;;  %v2653_v38 = vld [vmem:[#allocation46 + $0x120] sm:$0xff] }
 0xc22   :  { %2676 = vmatpush.msra.mxu3 %v2653_v38  ;;  %v2773_v38 = vld [vmem:[#allocation47 + $0x30] sm:$0xff] }
 0xc23   :  { %v2261_v52 = vadd.f32 %v4133_v30, %v2257_v55  ;;  %v2595_v55 = vld [vmem:[#allocation46 + $0x18] sm:$0xff] }
 0xc24   :  { %v2217_v57 = vpop.f32.mrf.mxu3  ;;  %v2246_v35 = vpop.f32.mrf.mxu2 }
 0xc25   :  { %v2247_v39 = vadd.f32 %v2246_v35, %v2217_v57  ;;  %2342 = vmatmul.f32.vlgmr.msra.gmra.mxu2 %v2261_v52  ;;  %2422 = vmatmul.f32.vlgmr.msrb.gmra.mxu1 %v2261_v52  ;;  %v2635_v57 = vld [vmem:[#allocation46 + $0x98] sm:$0xff]  ;;  %v2594_v35 = vld [vmem:[#allocation46 + $0x10] sm:$0xff] }
 0xc26   :  { %2711 = vmatpush.msra.mxu2 %v2647_v62  ;;  %v2632_v62 = vld [vmem:[#allocation46 + $0x80] sm:$0xff] }
 0xc27   :  { %v2254_v47 = vadd.f32 %v4131_v49, %v2247_v39  ;;  %v2638_v49 = vld [vmem:[#allocation46 + $0xb0] sm:$0xff] }
 0xc28   :  { %2712 = vmatpush.msra.mxu2 %v2646_v0  ;;  %v2651_v39 = vld [vmem:[#allocation46 + $0x110] sm:$0xff] }
 0xc29   :  { %v2258_v58 = vmul.f32 %v4132_v51, %v2254_v47  ;;  %v2596_v51 = vld [vmem:[#allocation46 + $0x20] sm:$0xff]  ;;  %v2400_v47 = vpop.f32.mrf.mxu0 }
 0xc2a   :  { %2713 = vmatpush.msra.mxu2 %v2645_v22 }
 0xc2b   :  { %v2262_v59 = vadd.f32 %v4133_v30, %v2258_v58  ;;  %v2636_v30 = vld [vmem:[#allocation46 + $0xa0] sm:$0xff]  ;;  %v2634_v58 = vld [vmem:[#allocation46 + $0x90] sm:$0xff] }
 0xc2c   :  { %2714 = vmatpush.msra.mxu2 %v2644_v28 }
 0xc2d   :  { %2345 = vmatmul.f32.gmra.mxu2 %v2262_v59  ;;  %2425 = vmatmul.f32.gmra.mxu1 %v2262_v59 }
 0xc2e   :  { %2715 = vmatpush.msra.mxu2 %v2643_v31 }
 0xc30   :  { %2716 = vmatpush.msra.mxu2 %v2642_v26 }
 0xc31   :  { %v2403_v0 = vpop.f32.mrf.mxu0 }
 0xc32   :  { %2717 = vmatpush.msra.mxu2 %v2641_v36 }
 0xc34   :  { %2718 = vmatpush.msra.mxu2 %v2640_v40  ;;  %v2821_v40 = vld [vmem:[#allocation47 + $0xf0] sm:$0xff] }
 0xc35   :  { %2502 = vmatmul.f32.vlgmr.msrb.gmra.mxu2 %v2261_v52  ;;  %v2652_v52 = vld [vmem:[#allocation46 + $0x118] sm:$0xff] }
 0xc36   :  { %2719 = vmatpush.msra.mxu2 %v2639_v43  ;;  %2677 = vmatpush.msra.mxu3 %v2652_v52  ;;  %v2820_v43 = vld [vmem:[#allocation47 + $0xe8] sm:$0xff]  ;;  %v2770_v52 = vld [vmem:[#allocation47 + $0x18] sm:$0xff] }
 0xc38   :  { %2720 = vmatpush.msra.mxu2 %v2638_v49  ;;  %2678 = vmatpush.msra.mxu3 %v2651_v39  ;;  %v2777_v49 = vld [vmem:[#allocation47 + $0x50] sm:$0xff]  ;;  %v2768_v39 = vld [vmem:[#allocation47 + $0x8] sm:$0xff] }
 0xc3a   :  { %2721 = vmatpush.msra.mxu2 %v2637_v50  ;;  %v2775_v50 = vld [vmem:[#allocation47 + $0x40] sm:$0xff] }
 0xc3c   :  { %v2320_v60 = vpop.f32.mrf.mxu3  ;;  %2722 = vmatpush.msra.mxu2 %v2636_v30  ;;  %v2772_v30 = vld [vmem:[#allocation47 + $0x28] sm:$0xff] }
 0xc3d   :  { %2505 = vmatmul.f32.gmra.mxu2 %v2262_v59  ;;  %v2593_v59 = vld [vmem:[#allocation46 + $0x8] sm:$0xff] }
 0xc3e   :  { %2723 = vmatpush.msra.mxu2 %v2635_v57  ;;  %v2817_v57 = vld [vmem:[#allocation47 + $0xd0] sm:$0xff] }
 0xc40   :  { %2724 = vmatpush.msra.mxu2 %v2634_v58  ;;  %v2767_v58 = vld [vmem:[#allocation47] sm:$0xff] }
 0xc44   :  { %v2323_v56 = vpop.f32.mrf.mxu3 }
 0xc5c   :  { %v2480_v7 = vpop.f32.mrf.mxu3 }
 0xc64   :  { %v2483_v12 = vpop.f32.mrf.mxu3 }
 0xca2   :  { %v2423_v63 = vpop.f32.mrf.mxu1 }
 0xca8   :  { %v2343_v44 = vpop.f32.mrf.mxu2 }
 0xca9   :  { %v2344_v3 = vadd.f32 %v2343_v44, %v2320_v60  ;;  %v2650_v60 = vld [vmem:[#allocation46 + $0x108] sm:$0xff] }
 0xcaa   :  { %v2633_v44 = vld [vmem:[#allocation46 + $0x88] sm:$0xff]  ;;  %2679 = vmatpush.msra.mxu3 %v2650_v60  ;;  %v2813_v60 = vld [vmem:[#allocation47 + $0xb0] sm:$0xff] }
 0xcab   :  { %2725 = vmatpush.msra.mxu2 %v2633_v44  ;;  %v2812_v44 = vld [vmem:[#allocation47 + $0xa8] sm:$0xff] }
 0xcac   :  { %2680 = vmatpush.msra.mxu3 %v2649_v61  ;;  %v2811_v61 = vld [vmem:[#allocation47 + $0xa0] sm:$0xff] }
 0xcad   :  { %2726 = vmatpush.msra.mxu2 %v2632_v62  ;;  %v3089_v62 = vld [vmem:[#allocation37 + $0xe0] sm:$0xff] }
 0xcae   :  { %2823 = vmatpush.msrb.mxu3 %v2822_v41 }
 0xcb0   :  { %v2346_v1 = vpop.f32.mrf.mxu2  ;;  %2824 = vmatpush.msrb.mxu3 %v2821_v40  ;;  %v4115_v40 = vld [vmem:[%s6171_s4] ss:$0 sm:$0xff] }
 0xcb1   :  { %v2347_v2 = vadd.f32 %v2346_v1, %v2323_v56  ;;  %v2592_v56 = vld [vmem:[#allocation46] sm:$0xff]  ;;  %v2426_v1 = vpop.f32.mrf.mxu1 }
 0xcb2   :  { %2825 = vmatpush.msrb.mxu3 %v2820_v43  ;;  %v4116_v43 = vld [vmem:[%s6171_s4 + $0x1] ss:$0 sm:$0xff] }
 0xcb3   :  { %2531 = vmatpush.msrb.mxu0 %v2347_v2 }
 0xcb4   :  { %2826 = vmatpush.msrb.mxu3 %v2819_v48  ;;  %v2960_v48 = vmul.f32 %v4115_v40, %v5692_v13 }
 0xcb5   :  { %2532 = vmatpush.msrb.mxu0 %v2344_v3  ;;  %v2424_v3 = vadd.f32 %v2423_v63, %v2400_v47  ;;  %v2815_v47 = vld [vmem:[#allocation47 + $0xc0] sm:$0xff]  ;;  %v2810_v63 = vld [vmem:[#allocation47 + $0x98] sm:$0xff] }
 0xcb6   :  { %3983 = vmatmul.msk.f32.vlgmr.msrb.gmra.mxu0 %vm1389_vm2, %v5919_v4 }
 0xcb7   :  { %2608 = vmatpush.msra.mxu0 %v2607_v5 }
 0xcb8   :  { %v2503_v9 = vpop.f32.mrf.mxu2 }
 0xcb9   :  { %2609 = vmatpush.msra.mxu0 %v2606_v8  ;;  %v2504_v18 = vadd.f32 %v2503_v9, %v2480_v7  ;;  %v4134_v7 = vld [vmem:[%s6169_s1] ss:$0 sm:$0xff] }
 0xcbb   :  { %2610 = vmatpush.msra.mxu0 %v2605_v17 }
 0xcbd   :  { %2611 = vmatpush.msra.mxu0 %v2604_v23 }
 0xcbe   :  { %3984 = vmatmul.msk.f32.gmra.mxu0 %vm1389_vm2, %v5923_v10 }
 0xcbf   :  { %2612 = vmatpush.msra.mxu0 %v2603_v29 }
 0xcc0   :  { %v2506_v15 = vpop.f32.mrf.mxu2 }
 0xcc1   :  { %v2507_v16 = vadd.f32 %v2506_v15, %v2483_v12  ;;  %2613 = vmatpush.msra.mxu0 %v2602_v32  ;;  %v4135_v15 = vld [vmem:[%s5308_s21] ss:$0 sm:$0xff]  ;;  %s6170_s21 = sld [smem:[#allocation101_spill]] }
 0xcc3   :  { %2565 = vmatpush.msra.mxu1 %v2507_v16  ;;  %2614 = vmatpush.msra.mxu0 %v2601_v34  ;;  %v2782_v34 = vld [vmem:[#allocation47 + $0x78] sm:$0xff] }
 0xcc5   :  { %2566 = vmatpush.msra.mxu1 %v2504_v18  ;;  %2615 = vmatpush.msra.mxu0 %v2600_v37  ;;  %v2427_v18 = vadd.f32 %v2426_v1, %v2403_v0  ;;  %v2780_v37 = vld [vmem:[#allocation47 + $0x68] sm:$0xff]  ;;  %v3088_v0 = vld [vmem:[#allocation37 + $0xd8] sm:$0xff] }
 0xcc6   :  { %3985 = vmatmul.msk.f32.vlgmr.msra.gmra.mxu1 %vm1389_vm2, %v5927_v20  ;;  %v2809_v1 = vld [vmem:[#allocation47 + $0x90] sm:$0xff] }
 0xcc7   :  { %2616 = vmatpush.msra.mxu0 %v2599_v53 }
 0xcc9   :  { %2617 = vmatpush.msra.mxu0 %v2598_v45  ;;  %v2778_v45 = vld [vmem:[#allocation47 + $0x58] sm:$0xff] }
 0xccb   :  { %2618 = vmatpush.msra.mxu0 %v2597_v46 }
 0xccd   :  { %2619 = vmatpush.msra.mxu0 %v2596_v51  ;;  %v2774_v51 = vld [vmem:[#allocation47 + $0x38] sm:$0xff] }
 0xcce   :  { %3986 = vmatmul.msk.f32.gmra.mxu1 %vm1389_vm2, %v5931_v21 }
 0xccf   :  { %2620 = vmatpush.msra.mxu0 %v2595_v55  ;;  %v2818_v55 = vld [vmem:[#allocation47 + $0xd8] sm:$0xff] }
 0xcd0   :  { %2827 = vmatpush.msrb.mxu3 %v2818_v55  ;;  %v3000_v55 = vld [vmem:[#allocation37 + $0x78] sm:$0xff] }
 0xcd1   :  { %2621 = vmatpush.msra.mxu0 %v2594_v35  ;;  %v2769_v35 = vld [vmem:[#allocation47 + $0x10] sm:$0xff] }
 0xcd2   :  { %2828 = vmatpush.msrb.mxu3 %v2817_v57  ;;  %v2998_v57 = vld [vmem:[#allocation37 + $0x68] sm:$0xff] }
 0xcd3   :  { %2622 = vmatpush.msra.mxu0 %v2593_v59  ;;  %v3092_v59 = vld [vmem:[#allocation37 + $0xf8] sm:$0xff] }
 0xcd5   :  { %2623 = vmatpush.msra.mxu0 %v2592_v56  ;;  %v3090_v56 = vld [vmem:[#allocation37 + $0xe8] sm:$0xff] }
 0xcd7   :  { %2783 = vmatpush.msrb.mxu0 %v2782_v34 }
 0xcd9   :  { %2784 = vmatpush.msrb.mxu0 %v2781_v14 }
 0xcdb   :  { %2785 = vmatpush.msrb.mxu0 %v2780_v37 }
 0xcdd   :  { %2786 = vmatpush.msrb.mxu0 %v2779_v42  ;;  %v2959_v42 = vmul.f32 %v4115_v40, %v5688_v6  ;;  %v2962_v6 = vmul.f32 %v4115_v40, %v5700_v25  ;;  %v2847_v25 = vld [vmem:[%s6172_s8 + $0x8] sm:$0xff] }
 0xcdf   :  { %2787 = vmatpush.msrb.mxu0 %v2778_v45  ;;  %v5950_v45 = vadd.f32 %v4116_v43, %v2959_v42  ;;  %v3070_v42 = vld [vmem:[#allocation35 + $0xd0] sm:$0xff] }
 0xce1   :  { %2788 = vmatpush.msrb.mxu0 %v2777_v49  ;;  %v5954_v49 = vadd.f32 %v4116_v43, %v2960_v48  ;;  %v3069_v48 = vld [vmem:[#allocation35 + $0xc8] sm:$0xff] }
 0xce3   :  { %2789 = vmatpush.msrb.mxu0 %v2776_v54 }
 0xce5   :  { %2790 = vmatpush.msrb.mxu0 %v2775_v50  ;;  %v5962_v50 = vadd.f32 %v4116_v43, %v2962_v6  ;;  %v3068_v6 = vld [vmem:[#allocation35 + $0xc0] sm:$0xff] }
 0xce7   :  { %2791 = vmatpush.msrb.mxu0 %v2774_v51 }
 0xce9   :  { %2792 = vmatpush.msrb.mxu0 %v2773_v38 }
 0xceb   :  { %2793 = vmatpush.msrb.mxu0 %v2772_v30  ;;  %v2846_v30 = vld [vmem:[%s6172_s8] sm:$0xff] }
 0xd33   :  { %v2534_v2 = vpop.f32.mrf.mxu0 }
 0xd34   :  { %v2540_v5 = vadd.f32 %v2534_v2, %v2424_v3  ;;  %v3087_v2 = vld [vmem:[#allocation37 + $0xd0] sm:$0xff] }
 0xd35   :  { %v2808_v3 = vld [vmem:[#allocation47 + $0x88] sm:$0xff] }
 0xd3b   :  { %v2537_v16 = vpop.f32.mrf.mxu0 }
 0xd3c   :  { %v2541_v22 = vadd.f32 %v2537_v16, %v2427_v18  ;;  %v3081_v16 = vld [vmem:[#allocation37 + $0xa0] sm:$0xff]  ;;  %v3080_v18 = vld [vmem:[#allocation37 + $0x98] sm:$0xff] }
 0xd43   :  { %v2568_v8 = vpop.f32.mrf.mxu1 }
 0xd44   :  { %v2574_v9 = vadd.f32 %v2568_v8, %v2540_v5  ;;  %v3086_v5 = vld [vmem:[#allocation37 + $0xc8] sm:$0xff]  ;;  %v3085_v8 = vld [vmem:[#allocation37 + $0xc0] sm:$0xff] }
 0xd46   :  { %v2580_v12 = vadd.f32 %v4134_v7, %v2574_v9  ;;  %v3084_v9 = vld [vmem:[#allocation37 + $0xb8] sm:$0xff] }
 0xd48   :  { %v2582_v17 = vmax.f32 %v2580_v12, 0.0  ;;  %v3083_v12 = vld [vmem:[#allocation37 + $0xb0] sm:$0xff] }
 0xd4a   :  { %v2586_v23 = vmul.f32 %v4135_v15, %v2582_v17 }
 0xd4b   :  { %v2571_v27 = vpop.f32.mrf.mxu1 }
 0xd4c   :  { %v2590_v28 = vadd.f32 %v4136_v24, %v2586_v23  ;;  %v2575_v29 = vadd.f32 %v2571_v27, %v2541_v22  ;;  %v3078_v22 = vld [vmem:[#allocation37 + $0x88] sm:$0xff]  ;;  %v3077_v23 = vld [vmem:[#allocation37 + $0x80] sm:$0xff] }
 0xd4e   :  { %v2581_v11 = vadd.f32 %v4134_v7, %v2575_v29  ;;  %2624 = vmatmul.f32.vlgmr.msra.gmra.mxu0 %v2590_v28  ;;  %2681 = vmatmul.f32.vlgmr.msra.gmra.mxu3 %v2590_v28  ;;  %v2807_v7 = vld [vmem:[#allocation47 + $0x80] sm:$0xff] }
 0xd4f   :  { %2727 = vmatmul.f32.vlgmr.msra.gmra.mxu2 %v2590_v28 }
 0xd50   :  { %v2583_v31 = vmax.f32 %v2581_v11, 0.0  ;;  %v4137_v11 = vld [vmem:[%s6170_s21] ss:$0 sm:$0xff] }
 0xd52   :  { %v2587_v32 = vmul.f32 %v4135_v15, %v2583_v31  ;;  %v3082_v15 = vld [vmem:[#allocation37 + $0xa8] sm:$0xff] }
 0xd54   :  { %v2591_v33 = vadd.f32 %v4136_v24, %v2587_v32  ;;  %v3079_v24 = vld [vmem:[#allocation37 + $0x90] sm:$0xff] }
 0xd56   :  { %2627 = vmatmul.f32.gmra.mxu0 %v2591_v33  ;;  %2684 = vmatmul.f32.gmra.mxu3 %v2591_v33 }
 0xd57   :  { %2730 = vmatmul.f32.gmra.mxu2 %v2591_v33 }
 0xdcb   :  { %v2625_v26 = vpop.f32.mrf.mxu0 }
 0xdd1   :  { %v2682_v36 = vpop.f32.mrf.mxu3 }
 0xdd2   :  { %v2728_v28 = vpop.f32.mrf.mxu2 }
 0xdd3   :  { %v2628_v53 = vpop.f32.mrf.mxu0 }
 0xdd4   :  { %2702 = vmatpush.msrb.mxu1 %v2628_v53 }
 0xdd6   :  { %2703 = vmatpush.msrb.mxu1 %v2625_v26 }
 0xdd7   :  { %3987 = vmatmul.msk.f32.vlgmr.msrb.gmra.mxu1 %vm1389_vm2, %v5919_v4  ;;  %v2771_v4 = vld [vmem:[#allocation47 + $0x20] sm:$0xff] }
 0xdd8   :  { %2794 = vmatpush.msrb.mxu0 %v2771_v4  ;;  %v3991_v4 = vld [vmem:[%s6172_s8 + $0x20] sm:$0xff] }
 0xdd9   :  { %v2685_v46 = vpop.f32.mrf.mxu3 }
 0xdda   :  { %2748 = vmatpush.msra.mxu1 %v2685_v46  ;;  %2795 = vmatpush.msrb.mxu0 %v2770_v52  ;;  %v2731_v34 = vpop.f32.mrf.mxu2  ;;  %v2961_v46 = vmul.f32 %v4115_v40, %v5696_v19  ;;  %v2999_v52 = vld [vmem:[#allocation37 + $0x70] sm:$0xff]  ;;  %v3071_v40 = vld [vmem:[#allocation35 + $0xd8] sm:$0xff] }
 0xddc   :  { %2749 = vmatpush.msra.mxu1 %v2682_v36  ;;  %2796 = vmatpush.msrb.mxu0 %v2769_v35  ;;  %v5958_v54 = vadd.f32 %v4116_v43, %v2961_v46  ;;  %v2997_v35 = vld [vmem:[#allocation37 + $0x60] sm:$0xff]  ;;  %v2978_v43 = vld [vmem:[#allocation35 + $0x48] sm:$0xff] }
 0xddd   :  { %v2977_v46 = vld [vmem:[#allocation35 + $0x40] sm:$0xff] }
 0xdde   :  { %2797 = vmatpush.msrb.mxu0 %v2768_v39  ;;  %v2996_v39 = vld [vmem:[#allocation37 + $0x58] sm:$0xff] }
 0xddf   :  { %3988 = vmatmul.msk.f32.gmra.mxu1 %vm1389_vm2, %v5923_v10  ;;  %v2816_v10 = vld [vmem:[#allocation47 + $0xc8] sm:$0xff] }
 0xde0   :  { %2829 = vmatpush.msrb.mxu3 %v2816_v10  ;;  %2798 = vmatpush.msrb.mxu0 %v2767_v58  ;;  %v3992_v10 = vld [vmem:[%s6172_s8 + $0x28] sm:$0xff] }
 0xde1   :  { %v2995_v58 = vld [vmem:[#allocation37 + $0x50] sm:$0xff] }
 0xde2   :  { %2830 = vmatpush.msrb.mxu3 %v2815_v47  ;;  %3093 = vmatpush.msra.mxu0 %v3092_v59  ;;  %v2848_v47 = vld [vmem:[%s6172_s8 + $0x10] sm:$0xff]  ;;  %v2993_v59 = vld [vmem:[#allocation37 + $0x40] sm:$0xff] }
 0xde7   :  { %3989 = vmatmul.msk.f32.vlgmr.msra.gmra.mxu1 %vm1389_vm2, %v5927_v20  ;;  %v2814_v20 = vld [vmem:[#allocation47 + $0xb8] sm:$0xff] }
 0xde8   :  { %2831 = vmatpush.msrb.mxu3 %v2814_v20  ;;  %v2994_v20 = vld [vmem:[#allocation37 + $0x48] sm:$0xff] }
 0xdea   :  { %2832 = vmatpush.msrb.mxu3 %v2813_v60  ;;  %v3993_v60 = vld [vmem:[%s6172_s8 + $0x30] sm:$0xff] }
 0xdec   :  { %2833 = vmatpush.msrb.mxu3 %v2812_v44  ;;  %v2849_v44 = vld [vmem:[%s6172_s8 + $0x18] sm:$0xff] }
 0xdee   :  { %2834 = vmatpush.msrb.mxu3 %v2811_v61  ;;  %v2990_v61 = vld [vmem:[#allocation37 + $0x28] sm:$0xff] }
 0xdef   :  { %3990 = vmatmul.msk.f32.gmra.mxu1 %vm1389_vm2, %v5931_v21  ;;  %v3091_v21 = vld [vmem:[#allocation37 + $0xf0] sm:$0xff] }
 0xdf0   :  { %3094 = vmatpush.msra.mxu0 %v3091_v21  ;;  %2835 = vmatpush.msrb.mxu3 %v2810_v63  ;;  %v2992_v21 = vld [vmem:[#allocation37 + $0x38] sm:$0xff] }
 0xdf1   :  { %v3994_v63 = vld [vmem:[%s6172_s8 + $0x38] sm:$0xff] }
 0xdf2   :  { %3095 = vmatpush.msra.mxu0 %v3090_v56  ;;  %2836 = vmatpush.msrb.mxu3 %v2809_v1  ;;  %v2991_v56 = vld [vmem:[#allocation37 + $0x30] sm:$0xff] }
 0xdf3   :  { %v2987_v1 = vld [vmem:[#allocation37 + $0x10] sm:$0xff] }
 0xdf4   :  { %3096 = vmatpush.msra.mxu0 %v3089_v62  ;;  %2837 = vmatpush.msrb.mxu3 %v2808_v3  ;;  %v2989_v62 = vld [vmem:[#allocation37 + $0x20] sm:$0xff] }
 0xdf5   :  { %v2985_v3 = vld [vmem:[#allocation37] sm:$0xff] }
 0xdf6   :  { %3097 = vmatpush.msra.mxu0 %v3088_v0  ;;  %2838 = vmatpush.msrb.mxu3 %v2807_v7  ;;  %v2988_v0 = vld [vmem:[#allocation37 + $0x18] sm:$0xff]  ;;  %v3183_v7 = vld [vmem:[#allocation37 + $0x170] sm:$0xff] }
 0xdf8   :  { %3098 = vmatpush.msra.mxu0 %v3087_v2  ;;  %v2986_v2 = vld [vmem:[#allocation37 + $0x8] sm:$0xff] }
 0xdfa   :  { %3099 = vmatpush.msra.mxu0 %v3086_v5  ;;  %v3184_v5 = vld [vmem:[#allocation37 + $0x178] sm:$0xff] }
 0xdfc   :  { %3100 = vmatpush.msra.mxu0 %v3085_v8  ;;  %v3182_v8 = vld [vmem:[#allocation37 + $0x168] sm:$0xff] }
 0xdfe   :  { %3101 = vmatpush.msra.mxu0 %v3084_v9  ;;  %v3181_v9 = vld [vmem:[#allocation37 + $0x160] sm:$0xff] }
 0xe00   :  { %3102 = vmatpush.msra.mxu0 %v3083_v12  ;;  %v3180_v12 = vld [vmem:[#allocation37 + $0x158] sm:$0xff] }
 0xe02   :  { %3103 = vmatpush.msra.mxu0 %v3082_v15  ;;  %v3179_v15 = vld [vmem:[#allocation37 + $0x150] sm:$0xff] }
 0xe04   :  { %3104 = vmatpush.msra.mxu0 %v3081_v16  ;;  %v3178_v16 = vld [vmem:[#allocation37 + $0x148] sm:$0xff] }
 0xe06   :  { %3105 = vmatpush.msra.mxu0 %v3080_v18  ;;  %v3177_v18 = vld [vmem:[#allocation37 + $0x140] sm:$0xff] }
 0xe08   :  { %3106 = vmatpush.msra.mxu0 %v3079_v24  ;;  %v3175_v24 = vld [vmem:[#allocation37 + $0x130] sm:$0xff] }
 0xe0a   :  { %3107 = vmatpush.msra.mxu0 %v3078_v22  ;;  %v3174_v22 = vld [vmem:[#allocation37 + $0x128] sm:$0xff] }
 0xe0c   :  { %3108 = vmatpush.msra.mxu0 %v3077_v23  ;;  %v3173_v23 = vld [vmem:[#allocation37 + $0x120] sm:$0xff] }
 0xe54   :  { %v2705_v17 = vpop.f32.mrf.mxu1 }
 0xe55   :  { %v2729_v29 = vadd.f32 %v2728_v28, %v2705_v17  ;;  %v3176_v17 = vld [vmem:[#allocation37 + $0x138] sm:$0xff]  ;;  %v3171_v28 = vld [vmem:[#allocation37 + $0x110] sm:$0xff] }
 0xe5c   :  { %v2708_v27 = vpop.f32.mrf.mxu1 }
 0xe5d   :  { %v2732_v14 = vadd.f32 %v2731_v34, %v2708_v27  ;;  %v3172_v27 = vld [vmem:[#allocation37 + $0x118] sm:$0xff]  ;;  %v3073_v34 = vld [vmem:[#allocation35 + $0xe8] sm:$0xff] }
 0xe64   :  { %v2751_v31 = vpop.f32.mrf.mxu1 }
 0xe65   :  { %v2757_v32 = vadd.f32 %v2751_v31, %v2729_v29  ;;  %v2984_v29 = vld [vmem:[#allocation35 + $0x78] sm:$0xff]  ;;  %v2983_v31 = vld [vmem:[#allocation35 + $0x70] sm:$0xff] }
 0xe67   :  { %v2763_v33 = vadd.f32 %v4137_v11, %v2757_v32  ;;  %v3074_v32 = vld [vmem:[#allocation35 + $0xf0] sm:$0xff] }
 0xe69   :  { %v2765_v26 = vmax.f32 %v2763_v33, 0.0  ;;  %v3170_v33 = vld [vmem:[#allocation37 + $0x108] sm:$0xff] }
 0xe6b   :  { %2799 = vmatmul.f32.vlgmr.msrb.gmra.mxu0 %v2765_v26  ;;  %2839 = vmatmul.f32.vlgmr.msrb.gmra.mxu3 %v2765_v26  ;;  %v2982_v26 = vld [vmem:[#allocation35 + $0x68] sm:$0xff] }
 0xe6c   :  { %v2754_v36 = vpop.f32.mrf.mxu1 }
 0xe6d   :  { %v2758_v37 = vadd.f32 %v2754_v36, %v2732_v14  ;;  %v3169_v14 = vld [vmem:[#allocation37 + $0x100] sm:$0xff] }
 0xe6e   :  { %v2981_v36 = vld [vmem:[#allocation35 + $0x60] sm:$0xff] }
 0xe6f   :  { %v2764_v41 = vadd.f32 %v4137_v11, %v2758_v37  ;;  %v3075_v11 = vld [vmem:[#allocation35 + $0xf8] sm:$0xff]  ;;  %v3072_v37 = vld [vmem:[#allocation35 + $0xe0] sm:$0xff] }
 0xe70   :  { %3122 = vmatpush.msra.mxu3 %v3075_v11 }
 0xe71   :  { %v2766_v53 = vmax.f32 %v2764_v41, 0.0  ;;  %v2980_v41 = vld [vmem:[#allocation35 + $0x58] sm:$0xff] }
 0xe72   :  { %3123 = vmatpush.msra.mxu3 %v3074_v32 }
 0xe73   :  { %2802 = vmatmul.f32.gmra.mxu0 %v2766_v53  ;;  %2842 = vmatmul.f32.gmra.mxu3 %v2766_v53  ;;  %v2979_v53 = vld [vmem:[#allocation35 + $0x50] sm:$0xff] }
 0xe74   :  { %3124 = vmatpush.msra.mxu3 %v3073_v34 }
 0xe76   :  { %3125 = vmatpush.msra.mxu3 %v3072_v37 }
 0xe78   :  { %3126 = vmatpush.msra.mxu3 %v3071_v40 }
 0xe7a   :  { %3127 = vmatpush.msra.mxu3 %v3070_v42 }
 0xe7b   :  { %3109 = vmatmul.f32.vlgmr.msra.gmra.mxu0 %v5950_v45 }
 0xe7c   :  { %3128 = vmatpush.msra.mxu3 %v3069_v48 }
 0xe7e   :  { %3129 = vmatpush.msra.mxu3 %v3068_v6 }
 0xe83   :  { %3112 = vmatmul.f32.gmra.mxu0 %v5954_v49 }
 0xe8b   :  { %3115 = vmatmul.f32.gmra.mxu0 %v5958_v54 }
 0xe93   :  { %3118 = vmatmul.f32.gmra.mxu0 %v5962_v50 }
 0xee8   :  { %v2800_v51 = vpop.f32.mrf.mxu0 }
 0xeee   :  { %v2840_v13 = vpop.f32.mrf.mxu3 }
 0xef0   :  { %v2803_v38 = vpop.f32.mrf.mxu0 }
 0xef1   :  { %2922 = vmatpush.msrb.mxu2 %v2803_v38  ;;  %v3066_v38 = vld [vmem:[#allocation35 + $0xb0] sm:$0xff] }
 0xef3   :  { %2923 = vmatpush.msrb.mxu2 %v2800_v51  ;;  %v2976_v51 = vld [vmem:[#allocation35 + $0x38] sm:$0xff] }
 0xef4   :  { %3999 = vmatmul.msk.f32.vlgmr.msrb.gmra.mxu2 %vm1389_vm2, %v2846_v30  ;;  %v2974_v30 = vld [vmem:[#allocation35 + $0x28] sm:$0xff] }
 0xef5   :  { %3030 = vmatpush.msra.mxu2 %v2984_v29 }
 0xef6   :  { %v2843_v19 = vpop.f32.mrf.mxu3 }
 0xef7   :  { %2881 = vmatpush.msrb.mxu1 %v2843_v19  ;;  %3031 = vmatpush.msra.mxu2 %v2983_v31  ;;  %v3065_v19 = vld [vmem:[#allocation35 + $0xa8] sm:$0xff] }
 0xef9   :  { %2882 = vmatpush.msrb.mxu1 %v2840_v13  ;;  %3032 = vmatpush.msra.mxu2 %v2982_v26  ;;  %v3067_v13 = vld [vmem:[#allocation35 + $0xb8] sm:$0xff] }
 0xefa   :  { %3995 = vmatmul.msk.f32.vlgmr.msrb.gmra.mxu1 %vm1389_vm2, %v3991_v4  ;;  %3130 = vmatpush.msra.mxu3 %v3067_v13  ;;  %v2973_v4 = vld [vmem:[#allocation35 + $0x20] sm:$0xff] }
 0xefb   :  { %3001 = vmatpush.msra.mxu1 %v3000_v55  ;;  %3033 = vmatpush.msra.mxu2 %v2981_v36  ;;  %v3064_v55 = vld [vmem:[#allocation35 + $0xa0] sm:$0xff] }
 0xefc   :  { %4000 = vmatmul.msk.f32.gmra.mxu2 %vm1389_vm2, %v2847_v25  ;;  %3131 = vmatpush.msra.mxu3 %v3066_v38  ;;  %v3063_v25 = vld [vmem:[#allocation35 + $0x98] sm:$0xff] }
 0xefd   :  { %3002 = vmatpush.msra.mxu1 %v2999_v52  ;;  %3034 = vmatpush.msra.mxu2 %v2980_v41  ;;  %v2971_v52 = vld [vmem:[#allocation35 + $0x10] sm:$0xff] }
 0xefe   :  { %3132 = vmatpush.msra.mxu3 %v3065_v19 }
 0xeff   :  { %3003 = vmatpush.msra.mxu1 %v2998_v57  ;;  %3035 = vmatpush.msra.mxu2 %v2979_v53  ;;  %v3062_v57 = vld [vmem:[#allocation35 + $0x90] sm:$0xff] }
 0xf00   :  { %3133 = vmatpush.msra.mxu3 %v3064_v55 }
 0xf01   :  { %3004 = vmatpush.msra.mxu1 %v2997_v35  ;;  %3036 = vmatpush.msra.mxu2 %v2978_v43  ;;  %v2970_v35 = vld [vmem:[#allocation35 + $0x8] sm:$0xff] }
 0xf02   :  { %3996 = vmatmul.msk.f32.gmra.mxu1 %vm1389_vm2, %v3992_v10  ;;  %3134 = vmatpush.msra.mxu3 %v3063_v25  ;;  %v3061_v10 = vld [vmem:[#allocation35 + $0x88] sm:$0xff] }
 0xf03   :  { %3005 = vmatpush.msra.mxu1 %v2996_v39  ;;  %3037 = vmatpush.msra.mxu2 %v2977_v46  ;;  %v2969_v39 = vld [vmem:[#allocation35] sm:$0xff] }
 0xf04   :  { %4001 = vmatmul.msk.f32.gmra.mxu2 %vm1389_vm2, %v2848_v47  ;;  %3135 = vmatpush.msra.mxu3 %v3062_v57  ;;  %v3166_v47 = vld [vmem:[#allocation35 + $0x170] sm:$0xff]  ;;  %v5996_v57 = vld [vmem:[#allocation40 + $0x8] sm:$0xff] }
 0xf05   :  { %3006 = vmatpush.msra.mxu1 %v2995_v58  ;;  %3038 = vmatpush.msra.mxu2 %v2976_v51  ;;  %v3165_v58 = vld [vmem:[#allocation35 + $0x168] sm:$0xff] }
 0xf06   :  { %3136 = vmatpush.msra.mxu3 %v3061_v10 }
 0xf07   :  { %3007 = vmatpush.msra.mxu1 %v2994_v20  ;;  %v3164_v20 = vld [vmem:[#allocation35 + $0x160] sm:$0xff] }
 0xf09   :  { %3008 = vmatpush.msra.mxu1 %v2993_v59  ;;  %v3163_v59 = vld [vmem:[#allocation35 + $0x158] sm:$0xff] }
 0xf0a   :  { %3997 = vmatmul.msk.f32.gmra.mxu1 %vm1389_vm2, %v3993_v60  ;;  %v3162_v60 = vld [vmem:[#allocation35 + $0x150] sm:$0xff] }
 0xf0b   :  { %3009 = vmatpush.msra.mxu1 %v2992_v21  ;;  %v3161_v21 = vld [vmem:[#allocation35 + $0x148] sm:$0xff] }
 0xf0c   :  { %4002 = vmatmul.msk.f32.gmra.mxu2 %vm1389_vm2, %v2849_v44  ;;  %v3160_v44 = vld [vmem:[#allocation35 + $0x140] sm:$0xff] }
 0xf0d   :  { %3010 = vmatpush.msra.mxu1 %v2991_v56  ;;  %v3159_v56 = vld [vmem:[#allocation35 + $0x138] sm:$0xff] }
 0xf0f   :  { %3011 = vmatpush.msra.mxu1 %v2990_v61  ;;  %v3158_v61 = vld [vmem:[#allocation35 + $0x130] sm:$0xff] }
 0xf11   :  { %3012 = vmatpush.msra.mxu1 %v2989_v62  ;;  %v3157_v62 = vld [vmem:[#allocation35 + $0x128] sm:$0xff] }
 0xf12   :  { %3998 = vmatmul.msk.f32.gmra.mxu1 %vm1389_vm2, %v3994_v63  ;;  %v4138_v63 = vld [vmem:[%s5313_s3] ss:$0 sm:$0xff]  ;;  %s6174_s3 = sld [smem:[#allocation94_spill]] }
 0xf13   :  { %3013 = vmatpush.msra.mxu1 %v2988_v0 }
 0xf15   :  { %3014 = vmatpush.msra.mxu1 %v2987_v1 }
 0xf17   :  { %3015 = vmatpush.msra.mxu1 %v2986_v2  ;;  %v3156_v2 = vld [vmem:[#allocation35 + $0x120] sm:$0xff] }
 0xf19   :  { %3016 = vmatpush.msra.mxu1 %v2985_v3 }
 0xf1a   :  { %3017 = vmatmul.f32.vlgmr.msra.gmra.mxu1 %v5950_v45 }
 0xf1b   :  { %3185 = vmatpush.msrb.mxu1 %v3184_v5  ;;  %v4139_v5 = vld [vmem:[%s6173_s7] ss:$0 sm:$0xff] }
 0xf1d   :  { %3186 = vmatpush.msrb.mxu1 %v3183_v7  ;;  %v3155_v7 = vld [vmem:[#allocation35 + $0x118] sm:$0xff] }
 0xf1f   :  { %3187 = vmatpush.msrb.mxu1 %v3182_v8 }
 0xf21   :  { %3188 = vmatpush.msrb.mxu1 %v3181_v9  ;;  %v4140_v9 = vld [vmem:[%s6173_s7 + $0x1] ss:$0 sm:$0xff] }
 0xf22   :  { %3020 = vmatmul.f32.gmra.mxu1 %v5954_v49 }
 0xf23   :  { %3189 = vmatpush.msrb.mxu1 %v3180_v12  ;;  %v3154_v12 = vld [vmem:[#allocation35 + $0x110] sm:$0xff] }
 0xf25   :  { %3190 = vmatpush.msrb.mxu1 %v3179_v15 }
 0xf27   :  { %3191 = vmatpush.msrb.mxu1 %v3178_v16  ;;  %v3153_v16 = vld [vmem:[#allocation35 + $0x108] sm:$0xff] }
 0xf29   :  { %3192 = vmatpush.msrb.mxu1 %v3177_v18 }
 0xf2a   :  { %3023 = vmatmul.f32.gmra.mxu1 %v5958_v54 }
 0xf2b   :  { %3193 = vmatpush.msrb.mxu1 %v3176_v17 }
 0xf2d   :  { %3194 = vmatpush.msrb.mxu1 %v3175_v24 }
 0xf2f   :  { %3195 = vmatpush.msrb.mxu1 %v3174_v22  ;;  %v3152_v22 = vld [vmem:[#allocation35 + $0x100] sm:$0xff] }
 0xf31   :  { %3196 = vmatpush.msrb.mxu1 %v3173_v23 }
 0xf32   :  { %3026 = vmatmul.f32.gmra.mxu1 %v5962_v50 }
 0xf33   :  { %3197 = vmatpush.msrb.mxu1 %v3172_v27 }
 0xf35   :  { %3198 = vmatpush.msrb.mxu1 %v3171_v28 }
 0xf37   :  { %3199 = vmatpush.msrb.mxu1 %v3170_v33 }
 0xf39   :  { %3200 = vmatpush.msrb.mxu1 %v3169_v14 }
 0xf3a   :  { %3201 = vmatmul.f32.vlgmr.msrb.gmra.mxu1 %v5950_v45  ;;  %v2975_v45 = vld [vmem:[#allocation35 + $0x30] sm:$0xff] }
 0xf3b   :  { %3039 = vmatpush.msra.mxu2 %v2975_v45 }
 0xf3d   :  { %3040 = vmatpush.msra.mxu2 %v2974_v30 }
 0xf3f   :  { %3041 = vmatpush.msra.mxu2 %v2973_v4 }
 0xf42   :  { %3204 = vmatmul.f32.gmra.mxu1 %v5954_v49  ;;  %v2972_v49 = vld [vmem:[#allocation35 + $0x18] sm:$0xff] }
 0xf43   :  { %3042 = vmatpush.msra.mxu2 %v2972_v49  ;;  %v5992_v49 = vld [vmem:[#allocation40] sm:$0xff] }
 0xf45   :  { %3043 = vmatpush.msra.mxu2 %v2971_v52 }
 0xf47   :  { %3044 = vmatpush.msra.mxu2 %v2970_v35 }
 0xf49   :  { %3045 = vmatpush.msra.mxu2 %v2969_v39  ;;  %v6000_v39 = vld [vmem:[#allocation40 + $0x10] sm:$0xff] }
 0xf4a   :  { %3207 = vmatmul.f32.gmra.mxu1 %v5958_v54  ;;  %v3060_v54 = vld [vmem:[#allocation35 + $0x80] sm:$0xff] }
 0xf4b   :  { %3137 = vmatpush.msra.mxu3 %v3060_v54 }
 0xf52   :  { %3210 = vmatmul.f32.gmra.mxu1 %v5962_v50  ;;  %v3167_v50 = vld [vmem:[#allocation35 + $0x178] sm:$0xff] }
 0xf53   :  { %3214 = vmatpush.msrb.mxu2 %v3167_v50  ;;  %v6004_v50 = vld [vmem:[#allocation40 + $0x18] sm:$0xff] }
 0xf55   :  { %3215 = vmatpush.msrb.mxu2 %v3166_v47 }
 0xf57   :  { %3216 = vmatpush.msrb.mxu2 %v3165_v58 }
 0xf59   :  { %3217 = vmatpush.msrb.mxu2 %v3164_v20 }
 0xf5b   :  { %3218 = vmatpush.msrb.mxu2 %v3163_v59 }
 0xf5d   :  { %3219 = vmatpush.msrb.mxu2 %v3162_v60 }
 0xf5f   :  { %3220 = vmatpush.msrb.mxu2 %v3161_v21 }
 0xf61   :  { %3221 = vmatpush.msrb.mxu2 %v3160_v44  ;;  %v6008_v44 = vld [vmem:[#allocation40 + $0x20] sm:$0xff] }
 0xf63   :  { %3222 = vmatpush.msrb.mxu2 %v3159_v56  ;;  %v6012_v56 = vld [vmem:[#allocation40 + $0x28] sm:$0xff] }
 0xf65   :  { %3223 = vmatpush.msrb.mxu2 %v3158_v61  ;;  %v6016_v61 = vld [vmem:[#allocation40 + $0x30] sm:$0xff] }
 0xf67   :  { %3224 = vmatpush.msrb.mxu2 %v3157_v62  ;;  %v6020_v62 = vld [vmem:[#allocation40 + $0x38] sm:$0xff] }
 0xf69   :  { %3225 = vmatpush.msrb.mxu2 %v3156_v2  ;;  %v3380_v2 = vld [vmem:[#allocation38 + $0x70] sm:$0xff] }
 0xf6b   :  { %3226 = vmatpush.msrb.mxu2 %v3155_v7  ;;  %v3379_v7 = vld [vmem:[#allocation38 + $0x68] sm:$0xff] }
 0xf6d   :  { %3227 = vmatpush.msrb.mxu2 %v3154_v12  ;;  %v6024_v12 = vpop.f32.mrf.mxu0 }
 0xf6f   :  { %3228 = vmatpush.msrb.mxu2 %v3153_v16  ;;  %v3441_v16 = vld [vmem:[#allocation38 + $0x160] sm:$0xff] }
 0xf71   :  { %3229 = vmatpush.msrb.mxu2 %v3152_v22  ;;  %v3423_v22 = vld [vmem:[#allocation38 + $0xd8] sm:$0xff] }
 0xf77   :  { %v2884_v0 = vpop.f32.mrf.mxu1  ;;  %v2925_v1 = vpop.f32.mrf.mxu2 }
 0xf78   :  { %v2926_v3 = vadd.f32 %v2925_v1, %v2884_v0  ;;  %v3444_v0 = vld [vmem:[#allocation38 + $0x178] sm:$0xff] }
 0xf79   :  { %v3427_v1 = vld [vmem:[#allocation38 + $0xf8] sm:$0xff] }
 0xf7a   :  { %v2941_v8 = vadd.f32 %v4138_v63, %v2926_v3  ;;  %v3443_v3 = vld [vmem:[#allocation38 + $0x170] sm:$0xff] }
 0xf7c   :  { %v2947_v15 = vmul.f32 %v4139_v5, %v2941_v8  ;;  %v3442_v8 = vld [vmem:[#allocation38 + $0x168] sm:$0xff] }
 0xf7e   :  { %v2953_v18 = vadd.f32 %v4140_v9, %v2947_v15  ;;  %v3378_v15 = vld [vmem:[#allocation38 + $0x60] sm:$0xff] }
 0xf7f   :  { %v2887_v17 = vpop.f32.mrf.mxu1  ;;  %v2928_v24 = vpop.f32.mrf.mxu2 }
 0xf80   :  { %v2929_v23 = vadd.f32 %v2928_v24, %v2887_v17  ;;  %3046 = vmatmul.f32.vlgmr.msra.gmra.mxu2 %v2953_v18  ;;  %3138 = vmatmul.f32.vlgmr.msra.gmra.mxu3 %v2953_v18  ;;  %v3377_v17 = vld [vmem:[#allocation38 + $0x58] sm:$0xff] }
 0xf81   :  { %3445 = vmatpush.msra.mxu2 %v3444_v0  ;;  %v3440_v24 = vld [vmem:[#allocation38 + $0x158] sm:$0xff] }
 0xf82   :  { %v2942_v27 = vadd.f32 %v4138_v63, %v2929_v23  ;;  %v3376_v23 = vld [vmem:[#allocation38 + $0x50] sm:$0xff] }
 0xf83   :  { %3446 = vmatpush.msra.mxu2 %v3443_v3 }
 0xf84   :  { %v2948_v28 = vmul.f32 %v4139_v5, %v2942_v27  ;;  %v3439_v27 = vld [vmem:[#allocation38 + $0x150] sm:$0xff] }
 0xf85   :  { %3447 = vmatpush.msra.mxu2 %v3442_v8 }
 0xf86   :  { %v2954_v29 = vadd.f32 %v4140_v9, %v2948_v28  ;;  %v3422_v28 = vld [vmem:[#allocation38 + $0xd0] sm:$0xff] }
 0xf87   :  { %v2890_v11 = vpop.f32.mrf.mxu1  ;;  %v2931_v31 = vpop.f32.mrf.mxu2  ;;  %3448 = vmatpush.msra.mxu2 %v3441_v16 }
 0xf88   :  { %v2932_v32 = vadd.f32 %v2931_v31, %v2890_v11  ;;  %3049 = vmatmul.f32.gmra.mxu2 %v2954_v29  ;;  %3141 = vmatmul.f32.gmra.mxu3 %v2954_v29  ;;  %v3438_v11 = vld [vmem:[#allocation38 + $0x148] sm:$0xff] }
 0xf89   :  { %3449 = vmatpush.msra.mxu2 %v3440_v24  ;;  %v3421_v31 = vld [vmem:[#allocation38 + $0xc8] sm:$0xff] }
 0xf8a   :  { %v2943_v33 = vadd.f32 %v4138_v63, %v2932_v32  ;;  %v3374_v32 = vld [vmem:[#allocation38 + $0x40] sm:$0xff] }
 0xf8b   :  { %3450 = vmatpush.msra.mxu2 %v3439_v27 }
 0xf8c   :  { %v2949_v26 = vmul.f32 %v4139_v5, %v2943_v33  ;;  %v3437_v33 = vld [vmem:[#allocation38 + $0x140] sm:$0xff] }
 0xf8d   :  { %3451 = vmatpush.msra.mxu2 %v3438_v11 }
 0xf8e   :  { %v2955_v34 = vadd.f32 %v4140_v9, %v2949_v26  ;;  %v6026_v26 = vpop.f32.mrf.mxu0 }
 0xf8f   :  { %v2893_v14 = vpop.f32.mrf.mxu1  ;;  %v2934_v36 = vpop.f32.mrf.mxu2  ;;  %3452 = vmatpush.msra.mxu2 %v3437_v33 }
 0xf90   :  { %v2935_v37 = vadd.f32 %v2934_v36, %v2893_v14  ;;  %3052 = vmatmul.f32.gmra.mxu2 %v2955_v34  ;;  %3144 = vmatmul.f32.gmra.mxu3 %v2955_v34  ;;  %v3420_v14 = vld [vmem:[#allocation38 + $0xc0] sm:$0xff]  ;;  %v3373_v36 = vld [vmem:[#allocation38 + $0x38] sm:$0xff] }
 0xf92   :  { %v2944_v41 = vadd.f32 %v4138_v63, %v2935_v37  ;;  %v3381_v63 = vld [vmem:[#allocation38 + $0x78] sm:$0xff] }
 0xf93   :  { %3382 = vmatpush.msra.mxu1 %v3381_v63  ;;  %v3436_v37 = vld [vmem:[#allocation38 + $0x138] sm:$0xff] }
 0xf94   :  { %v2950_v40 = vmul.f32 %v4139_v5, %v2944_v41  ;;  %v3426_v5 = vld [vmem:[#allocation38 + $0xf0] sm:$0xff]  ;;  %v3419_v41 = vld [vmem:[#allocation38 + $0xb8] sm:$0xff]  ;;  %3453 = vmatpush.msra.mxu2 %v3436_v37 }
 0xf95   :  { %3383 = vmatpush.msra.mxu1 %v3380_v2  ;;  %v4141_v2 = vld [vmem:[#allocation41] ss:$0 sm:$0xff] }
 0xf96   :  { %v2956_v53 = vadd.f32 %v4140_v9, %v2950_v40  ;;  %v3425_v9 = vld [vmem:[#allocation38 + $0xe8] sm:$0xff]  ;;  %v3372_v40 = vld [vmem:[#allocation38 + $0x30] sm:$0xff] }
 0xf97   :  { %v3018_v42 = vpop.f32.mrf.mxu1  ;;  %3384 = vmatpush.msra.mxu1 %v3379_v7 }
 0xf98   :  { %3055 = vmatmul.f32.gmra.mxu2 %v2956_v53  ;;  %3147 = vmatmul.f32.gmra.mxu3 %v2956_v53 }
 0xf99   :  { %3385 = vmatpush.msra.mxu1 %v3378_v15 }
 0xf9b   :  { %3386 = vmatpush.msra.mxu1 %v3377_v17 }
 0xf9d   :  { %3387 = vmatpush.msra.mxu1 %v3376_v23 }
 0xf9f   :  { %v3021_v43 = vpop.f32.mrf.mxu1 }
 0xfa0   :  { %3230 = vmatmul.f32.vlgmr.msrb.gmra.mxu2 %v2953_v18  ;;  %v3424_v18 = vld [vmem:[#allocation38 + $0xe0] sm:$0xff] }
 0xfa7   :  { %v3024_v46 = vpop.f32.mrf.mxu1 }
 0xfa8   :  { %3233 = vmatmul.f32.gmra.mxu2 %v2954_v29  ;;  %v3375_v29 = vld [vmem:[#allocation38 + $0x48] sm:$0xff] }
 0xfa9   :  { %3388 = vmatpush.msra.mxu1 %v3375_v29 }
 0xfab   :  { %3389 = vmatpush.msra.mxu1 %v3374_v32 }
 0xfad   :  { %3390 = vmatpush.msra.mxu1 %v3373_v36 }
 0xfaf   :  { %v3027_v51 = vpop.f32.mrf.mxu1  ;;  %3391 = vmatpush.msra.mxu1 %v3372_v40 }
 0xfb0   :  { %3236 = vmatmul.f32.gmra.mxu2 %v2955_v34 }
 0xfb7   :  { %v3202_v30 = vpop.f32.mrf.mxu1 }
 0xfb8   :  { %3239 = vmatmul.f32.gmra.mxu2 %v2956_v53  ;;  %v3435_v53 = vld [vmem:[#allocation38 + $0x130] sm:$0xff] }
 0xfb9   :  { %3454 = vmatpush.msra.mxu2 %v3435_v53 }
 0xfbf   :  { %v3205_v52 = vpop.f32.mrf.mxu1 }
 0xfc7   :  { %v3208_v10 = vpop.f32.mrf.mxu1 }
 0xfcf   :  { %v3211_v47 = vpop.f32.mrf.mxu1 }
0x1003   :  { %v3047_v48 = vpop.f32.mrf.mxu2  ;;  %v3139_v34 = vpop.f32.mrf.mxu3 }
0x1004   :  { %v3048_v55 = vadd.f32 %v3047_v48, %v3018_v42  ;;  %v3418_v42 = vld [vmem:[#allocation38 + $0xb0] sm:$0xff]  ;;  %v3434_v48 = vld [vmem:[#allocation38 + $0x128] sm:$0xff]  ;;  %v3140_v0 = vadd.f32 %v3139_v34, %v6024_v12 }
0x1005   :  { %3455 = vmatpush.msra.mxu2 %v3434_v48 }
0x100b   :  { %v3050_v6 = vpop.f32.mrf.mxu2 }
0x100c   :  { %v3051_v4 = vadd.f32 %v3050_v6, %v3021_v43  ;;  %v3371_v43 = vld [vmem:[#allocation38 + $0x28] sm:$0xff]  ;;  %v3370_v6 = vld [vmem:[#allocation38 + $0x20] sm:$0xff] }
0x100d   :  { %3392 = vmatpush.msra.mxu1 %v3371_v43 }
0x100f   :  { %3393 = vmatpush.msra.mxu1 %v3370_v6 }
0x1013   :  { %v3053_v13 = vpop.f32.mrf.mxu2 }
0x1014   :  { %v3054_v19 = vadd.f32 %v3053_v13, %v3024_v46  ;;  %v3417_v46 = vld [vmem:[#allocation38 + $0xa8] sm:$0xff]  ;;  %v3416_v13 = vld [vmem:[#allocation38 + $0xa0] sm:$0xff] }
0x101b   :  { %v3056_v45 = vpop.f32.mrf.mxu2 }
0x101c   :  { %v3057_v38 = vadd.f32 %v3056_v45, %v3027_v51  ;;  %v3433_v51 = vld [vmem:[#allocation38 + $0x120] sm:$0xff]  ;;  %v3116_v45 = vpop.f32.mrf.mxu0 }
0x101d   :  { %3456 = vmatpush.msra.mxu2 %v3433_v51 }
0x101e   :  { %3271 = vmatpush.msrb.mxu0 %v3057_v38  ;;  %v3142_v38 = vpop.f32.mrf.mxu3 }
0x101f   :  { %v3143_v15 = vadd.f32 %v3142_v38, %v6026_v26 }
0x1020   :  { %3272 = vmatpush.msrb.mxu0 %v3054_v19  ;;  %v3432_v19 = vld [vmem:[#allocation38 + $0x118] sm:$0xff] }
0x1021   :  { %3457 = vmatpush.msra.mxu2 %v3432_v19 }
0x1022   :  { %3273 = vmatpush.msrb.mxu0 %v3051_v4  ;;  %v3415_v4 = vld [vmem:[#allocation38 + $0x98] sm:$0xff] }
0x1023   :  { %v3231_v25 = vpop.f32.mrf.mxu2 }
0x1024   :  { %3274 = vmatpush.msrb.mxu0 %v3048_v55  ;;  %v3232_v21 = vadd.f32 %v3231_v25, %v3202_v30  ;;  %v3369_v30 = vld [vmem:[#allocation38 + $0x18] sm:$0xff]  ;;  %v3368_v55 = vld [vmem:[#allocation38 + $0x10] sm:$0xff] }
0x1025   :  { %4003 = vmatmul.msk.f32.vlgmr.msrb.gmra.mxu0 %vm785_vm1, %v5992_v49  ;;  %3394 = vmatpush.msra.mxu1 %v3369_v30  ;;  %v3431_v25 = vld [vmem:[#allocation38 + $0x110] sm:$0xff] }
0x1026   :  { %3458 = vmatpush.msra.mxu2 %v3431_v25 }
0x1027   :  { %3395 = vmatpush.msra.mxu1 %v3368_v55 }
0x102b   :  { %v3234_v35 = vpop.f32.mrf.mxu2 }
0x102c   :  { %v3235_v60 = vadd.f32 %v3234_v35, %v3205_v52  ;;  %v3414_v52 = vld [vmem:[#allocation38 + $0x90] sm:$0xff]  ;;  %v3367_v35 = vld [vmem:[#allocation38 + $0x8] sm:$0xff] }
0x102d   :  { %4004 = vmatmul.msk.f32.gmra.mxu0 %vm785_vm1, %v5996_v57  ;;  %3396 = vmatpush.msra.mxu1 %v3367_v35  ;;  %v3592_v35 = vld [vmem:[%s6175_s14 + $0x78] sm:$0xff] }
0x1033   :  { %v3237_v54 = vpop.f32.mrf.mxu2 }
0x1034   :  { %v3238_v59 = vadd.f32 %v3237_v54, %v3208_v10  ;;  %v3430_v10 = vld [vmem:[#allocation38 + $0x108] sm:$0xff] }
0x1035   :  { %4005 = vmatmul.msk.f32.gmra.mxu0 %vm785_vm1, %v6000_v39  ;;  %v3413_v54 = vld [vmem:[#allocation38 + $0x88] sm:$0xff]  ;;  %3459 = vmatpush.msra.mxu2 %v3430_v10  ;;  %v3591_v10 = vld [vmem:[%s6175_s14 + $0x70] sm:$0xff] }
0x103b   :  { %v3240_v58 = vpop.f32.mrf.mxu2 }
0x103c   :  { %v3241_v20 = vadd.f32 %v3240_v58, %v3211_v47  ;;  %v3366_v47 = vld [vmem:[#allocation38] sm:$0xff] }
0x103d   :  { %4006 = vmatmul.msk.f32.gmra.mxu0 %vm785_vm1, %v6004_v50  ;;  %v3429_v58 = vld [vmem:[#allocation38 + $0x100] sm:$0xff]  ;;  %3397 = vmatpush.msra.mxu1 %v3366_v47 }
0x103e   :  { %3321 = vmatpush.msrb.mxu3 %v3241_v20  ;;  %v3412_v20 = vld [vmem:[#allocation38 + $0x80] sm:$0xff]  ;;  %3460 = vmatpush.msra.mxu2 %v3429_v58 }
0x103f   :  { %v3589_v47 = vld [vmem:[%s6175_s14 + $0x60] sm:$0xff]  ;;  %v3588_v58 = vld [vmem:[%s6175_s14 + $0x58] sm:$0xff] }
0x1040   :  { %3322 = vmatpush.msrb.mxu3 %v3238_v59  ;;  %v3119_v59 = vpop.f32.mrf.mxu0  ;;  %3597 = vmatpush.msrb.mxu2 %v3592_v35 }
0x1042   :  { %3323 = vmatpush.msrb.mxu3 %v3235_v60  ;;  %v3145_v60 = vpop.f32.mrf.mxu3  ;;  %3598 = vmatpush.msrb.mxu2 %v3591_v10 }
0x1043   :  { %v3146_v12 = vadd.f32 %v3145_v60, %v3116_v45  ;;  %v3584_v60 = vld [vmem:[%s6175_s14 + $0x38] sm:$0xff] }
0x1044   :  { %3324 = vmatpush.msrb.mxu3 %v3232_v21 }
0x1045   :  { %4007 = vmatmul.msk.f32.vlgmr.msrb.gmra.mxu3 %vm785_vm1, %v6008_v44 }
0x1046   :  { %3503 = vmatpush.msra.mxu3 %v3427_v1 }
0x1048   :  { %3504 = vmatpush.msra.mxu3 %v3426_v5 }
0x104a   :  { %3505 = vmatpush.msra.mxu3 %v3425_v9  ;;  %v3148_v63 = vpop.f32.mrf.mxu3  ;;  %v4142_v9 = vld [vmem:[%s6174_s3] ss:$0 sm:$0xff] }
0x104b   :  { %v3149_v37 = vadd.f32 %v3148_v63, %v3119_v59  ;;  %v3585_v59 = vld [vmem:[%s6175_s14 + $0x40] sm:$0xff]  ;;  %v3578_v63 = vld [vmem:[%s6175_s14 + $0x8] sm:$0xff] }
0x104c   :  { %3506 = vmatpush.msra.mxu3 %v3424_v18  ;;  %v4143_v18 = vld [vmem:[%s6174_s3 + $0x1] ss:$0 sm:$0xff] }
0x104d   :  { %4008 = vmatmul.msk.f32.gmra.mxu3 %vm785_vm1, %v6012_v56 }
0x104e   :  { %3507 = vmatpush.msra.mxu3 %v3423_v22 }
0x1050   :  { %3508 = vmatpush.msra.mxu3 %v3422_v28 }
0x1052   :  { %3509 = vmatpush.msra.mxu3 %v3421_v31 }
0x1054   :  { %3510 = vmatpush.msra.mxu3 %v3420_v14 }
0x1055   :  { %4009 = vmatmul.msk.f32.gmra.mxu3 %vm785_vm1, %v6016_v61 }
0x1056   :  { %3511 = vmatpush.msra.mxu3 %v3419_v41 }
0x1058   :  { %3512 = vmatpush.msra.mxu3 %v3418_v42 }
0x105a   :  { %3513 = vmatpush.msra.mxu3 %v3417_v46 }
0x105c   :  { %3514 = vmatpush.msra.mxu3 %v3416_v13 }
0x105d   :  { %4010 = vmatmul.msk.f32.gmra.mxu3 %vm785_vm1, %v6020_v62 }
0x105e   :  { %3515 = vmatpush.msra.mxu3 %v3415_v4 }
0x1060   :  { %3516 = vmatpush.msra.mxu3 %v3414_v52 }
0x1062   :  { %3517 = vmatpush.msra.mxu3 %v3413_v54  ;;  %v3590_v54 = vld [vmem:[%s6175_s14 + $0x68] sm:$0xff] }
0x1063   :  { %3599 = vmatpush.msrb.mxu2 %v3590_v54 }
0x1064   :  { %3518 = vmatpush.msra.mxu3 %v3412_v20  ;;  %v3587_v20 = vld [vmem:[%s6175_s14 + $0x50] sm:$0xff] }
0x1065   :  { %3600 = vmatpush.msrb.mxu2 %v3589_v47 }
0x1067   :  { %3601 = vmatpush.msrb.mxu2 %v3588_v58 }
0x1069   :  { %3602 = vmatpush.msrb.mxu2 %v3587_v20 }
0x10a2   :  { %v3276_v21 = vpop.f32.mrf.mxu0 }
0x10a3   :  { %v3288_v1 = vadd.f32 %v3276_v21, %v3140_v0  ;;  %v3580_v21 = vld [vmem:[%s6175_s14 + $0x18] sm:$0xff]  ;;  %v3577_v0 = vld [vmem:[%s6175_s14] sm:$0xff] }
0x10aa   :  { %v3279_v3 = vpop.f32.mrf.mxu0 }
0x10ab   :  { %v3289_v17 = vadd.f32 %v3279_v3, %v3143_v15 }
0x10b2   :  { %v3282_v28 = vpop.f32.mrf.mxu0 }
0x10b3   :  { %v3290_v31 = vadd.f32 %v3282_v28, %v3146_v12 }
0x10ba   :  { %v3285_v36 = vpop.f32.mrf.mxu0 }
0x10bb   :  { %v3291_v40 = vadd.f32 %v3285_v36, %v3149_v37  ;;  %v4145_v37 = vld [vmem:[%s6177_s10] ss:$0 sm:$0xff] }
0x10c8   :  { %v3326_v5 = vpop.f32.mrf.mxu3 }
0x10c9   :  { %v3338_v7 = vadd.f32 %v3326_v5, %v3288_v1 }
0x10cb   :  { %v3346_v8 = vadd.f32 %v4141_v2, %v3338_v7 }
0x10cd   :  { %v3350_v16 = vmax.f32 %v3346_v8, 0.0 }
0x10cf   :  { %v3356_v24 = vmul.f32 %v4142_v9, %v3350_v16 }
0x10d0   :  { %v3329_v22 = vpop.f32.mrf.mxu3 }
0x10d1   :  { %v3362_v23 = vadd.f32 %v4143_v18, %v3356_v24  ;;  %v3339_v27 = vadd.f32 %v3329_v22, %v3289_v17 }
0x10d3   :  { %v3347_v29 = vadd.f32 %v4141_v2, %v3339_v27  ;;  %3398 = vmatmul.f32.vlgmr.msra.gmra.mxu1 %v3362_v23  ;;  %3461 = vmatmul.f32.vlgmr.msra.gmra.mxu2 %v3362_v23 }
0x10d4   :  { %3519 = vmatmul.f32.vlgmr.msra.gmra.mxu3 %v3362_v23 }
0x10d5   :  { %v3351_v11 = vmax.f32 %v3347_v29, 0.0 }
0x10d7   :  { %v3357_v32 = vmul.f32 %v4142_v9, %v3351_v11 }
0x10d8   :  { %v3332_v33 = vpop.f32.mrf.mxu3 }
0x10d9   :  { %v3340_v34 = vadd.f32 %v3332_v33, %v3290_v31  ;;  %v3363_v14 = vadd.f32 %v4143_v18, %v3357_v32 }
0x10db   :  { %v3348_v26 = vadd.f32 %v4141_v2, %v3340_v34  ;;  %3401 = vmatmul.f32.gmra.mxu1 %v3363_v14  ;;  %3464 = vmatmul.f32.gmra.mxu2 %v3363_v14 }
0x10dc   :  { %3522 = vmatmul.f32.gmra.mxu3 %v3363_v14 }
0x10dd   :  { %v3352_v41 = vmax.f32 %v3348_v26, 0.0 }
0x10df   :  { %v3358_v53 = vmul.f32 %v4142_v9, %v3352_v41 }
0x10e0   :  { %v3335_v42 = vpop.f32.mrf.mxu3 }
0x10e1   :  { %v3341_v43 = vadd.f32 %v3335_v42, %v3291_v40  ;;  %v3364_v48 = vadd.f32 %v4143_v18, %v3358_v53 }
0x10e3   :  { %v3349_v46 = vadd.f32 %v4141_v2, %v3341_v43  ;;  %3404 = vmatmul.f32.gmra.mxu1 %v3364_v48  ;;  %3467 = vmatmul.f32.gmra.mxu2 %v3364_v48  ;;  %v4144_v2 = vld [vmem:[%s6176_s5] ss:$0 sm:$0xff] }
0x10e4   :  { %3525 = vmatmul.f32.gmra.mxu3 %v3364_v48 }
0x10e5   :  { %v3353_v6 = vmax.f32 %v3349_v46, 0.0 }
0x10e7   :  { %v3359_v51 = vmul.f32 %v4142_v9, %v3353_v6 }
0x10e9   :  { %v3365_v13 = vadd.f32 %v4143_v18, %v3359_v51 }
0x10eb   :  { %3407 = vmatmul.f32.gmra.mxu1 %v3365_v13  ;;  %3470 = vmatmul.f32.gmra.mxu2 %v3365_v13 }
0x10ec   :  { %3528 = vmatmul.f32.gmra.mxu3 %v3365_v13 }
0x1150   :  { %v3399_v45 = vpop.f32.mrf.mxu1 }
0x1156   :  { %v3462_v38 = vpop.f32.mrf.mxu2 }
0x1158   :  { %v3402_v30 = vpop.f32.mrf.mxu1 }
0x115e   :  { %v3465_v19 = vpop.f32.mrf.mxu2 }
0x1160   :  { %v3405_v4 = vpop.f32.mrf.mxu1 }
0x1166   :  { %v3468_v55 = vpop.f32.mrf.mxu2 }
0x1168   :  { %v3408_v25 = vpop.f32.mrf.mxu1 }
0x1169   :  { %3486 = vmatpush.msra.mxu0 %v3408_v25 }
0x116b   :  { %3487 = vmatpush.msra.mxu0 %v3405_v4 }
0x116d   :  { %3488 = vmatpush.msra.mxu0 %v3402_v30 }
0x116e   :  { %v3471_v52 = vpop.f32.mrf.mxu2 }
0x116f   :  { %3489 = vmatpush.msra.mxu0 %v3399_v45  ;;  %3544 = vmatpush.msrb.mxu1 %v3471_v52 }
0x1170   :  { %4011 = vmatmul.msk.f32.vlgmr.msra.gmra.mxu0 %vm785_vm1, %v5992_v49  ;;  %v3586_v49 = vld [vmem:[%s6175_s14 + $0x48] sm:$0xff] }
0x1171   :  { %3545 = vmatpush.msrb.mxu1 %v3468_v55  ;;  %3603 = vmatpush.msrb.mxu2 %v3586_v49 }
0x1173   :  { %3546 = vmatpush.msrb.mxu1 %v3465_v19  ;;  %3604 = vmatpush.msrb.mxu2 %v3585_v59 }
0x1175   :  { %3547 = vmatpush.msrb.mxu1 %v3462_v38  ;;  %3605 = vmatpush.msrb.mxu2 %v3584_v60 }
0x1176   :  { %4015 = vmatmul.msk.f32.vlgmr.msrb.gmra.mxu1 %vm785_vm1, %v6008_v44  ;;  %v3582_v44 = vld [vmem:[%s6175_s14 + $0x28] sm:$0xff] }
0x1178   :  { %4012 = vmatmul.msk.f32.gmra.mxu0 %vm785_vm1, %v5996_v57  ;;  %v3583_v57 = vld [vmem:[%s6175_s14 + $0x30] sm:$0xff] }
0x1179   :  { %3606 = vmatpush.msrb.mxu2 %v3583_v57 }
0x117b   :  { %3607 = vmatpush.msrb.mxu2 %v3582_v44 }
0x117e   :  { %4016 = vmatmul.msk.f32.gmra.mxu1 %vm785_vm1, %v6012_v56  ;;  %v3581_v56 = vld [vmem:[%s6175_s14 + $0x20] sm:$0xff] }
0x117f   :  { %3608 = vmatpush.msrb.mxu2 %v3581_v56 }
0x1180   :  { %4013 = vmatmul.msk.f32.gmra.mxu0 %vm785_vm1, %v6000_v39  ;;  %v3579_v39 = vld [vmem:[%s6175_s14 + $0x10] sm:$0xff] }
0x1181   :  { %3609 = vmatpush.msrb.mxu2 %v3580_v21 }
0x1183   :  { %3610 = vmatpush.msrb.mxu2 %v3579_v39 }
0x1185   :  { %3611 = vmatpush.msrb.mxu2 %v3578_v63 }
0x1186   :  { %4017 = vmatmul.msk.f32.gmra.mxu1 %vm785_vm1, %v6016_v61  ;;  %v3520_v61 = vpop.f32.mrf.mxu3 }
0x1187   :  { %3612 = vmatpush.msrb.mxu2 %v3577_v0 }
0x1188   :  { %4014 = vmatmul.msk.f32.gmra.mxu0 %vm785_vm1, %v6004_v50 }
0x118e   :  { %4018 = vmatmul.msk.f32.gmra.mxu1 %vm785_vm1, %v6020_v62  ;;  %v3523_v5 = vpop.f32.mrf.mxu3 }
0x1196   :  { %v3526_v22 = vpop.f32.mrf.mxu3 }
0x119e   :  { %v3529_v32 = vpop.f32.mrf.mxu3 }
0x11ed   :  { %v3491_v50 = vpop.f32.mrf.mxu0 }
0x11ee   :  { %v3521_v1 = vadd.f32 %v3520_v61, %v3491_v50 }
0x11f3   :  { %v3549_v62 = vpop.f32.mrf.mxu1 }
0x11f4   :  { %v3561_v3 = vadd.f32 %v3549_v62, %v3521_v1 }
0x11f5   :  { %v3494_v7 = vpop.f32.mrf.mxu0 }
0x11f6   :  { %v3569_v8 = vadd.f32 %v4144_v2, %v3561_v3  ;;  %v3524_v15 = vadd.f32 %v3523_v5, %v3494_v7 }
0x11f8   :  { %v3573_v9 = vmax.f32 %v3569_v8, 0.0 }
0x11fa   :  { %3613 = vmatmul.f32.vlgmr.msrb.gmra.mxu2 %v3573_v9 }
0x11fb   :  { %v3552_v16 = vpop.f32.mrf.mxu1 }
0x11fc   :  { %v3562_v18 = vadd.f32 %v3552_v16, %v3524_v15 }
0x11fd   :  { %v3497_v17 = vpop.f32.mrf.mxu0 }
0x11fe   :  { %v3570_v24 = vadd.f32 %v4144_v2, %v3562_v18  ;;  %v3527_v27 = vadd.f32 %v3526_v22, %v3497_v17 }
0x1200   :  { %v3574_v23 = vmax.f32 %v3570_v24, 0.0 }
0x1202   :  { %3616 = vmatmul.f32.gmra.mxu2 %v3574_v23 }
0x1203   :  { %v3555_v28 = vpop.f32.mrf.mxu1 }
0x1204   :  { %v3563_v29 = vadd.f32 %v3555_v28, %v3527_v27 }
0x1205   :  { %v3500_v11 = vpop.f32.mrf.mxu0 }
0x1206   :  { %v3571_v12 = vadd.f32 %v4144_v2, %v3563_v29  ;;  %v3530_v33 = vadd.f32 %v3529_v32, %v3500_v11 }
0x1208   :  { %v3575_v31 = vmax.f32 %v3571_v12, 0.0 }
0x120a   :  { %3619 = vmatmul.f32.gmra.mxu2 %v3575_v31 }
0x120b   :  { %v3558_v34 = vpop.f32.mrf.mxu1 }
0x120c   :  { %v3564_v14 = vadd.f32 %v3558_v34, %v3530_v33 }
0x120e   :  { %v3572_v26 = vadd.f32 %v4144_v2, %v3564_v14 }
0x1210   :  { %v3576_v36 = vmax.f32 %v3572_v26, 0.0 }
0x1212   :  { %3622 = vmatmul.f32.gmra.mxu2 %v3576_v36 }
0x127d   :  { %v3614_v41 = vpop.f32.mrf.mxu2 }
0x127e   :  { %v3615_v40 = vadd.f32 %v4145_v37, %v3614_v41 }
0x1280   :  { %v3626_v53 = vsub.f32 0.0, %v3615_v40 }
0x1282   :  { %v3630_v42 = vmul.f32 1.442695, %v3626_v53 }
0x1284   :  { %4146 = vpow2.f32 %v3630_v42 }
0x1285   :  { %v3617_v43 = vpop.f32.mrf.mxu2 }
0x1286   :  { %v3618_v48 = vadd.f32 %v4145_v37, %v3617_v43 }
0x1288   :  { %v3627_v46 = vsub.f32 0.0, %v3618_v48 }
0x128a   :  { %v4147_v6 = vpop.eup %4146  ;;  %v3632_v51 = vmul.f32 1.442695, %v3627_v46 }
0x128b   :  { %v3638_v13 = vadd.f32 1.0, %v4147_v6 }
0x128c   :  { %4148 = vpow2.f32 %v3632_v51 }
0x128d   :  { %4150 = vrcp.f32 %v3638_v13  ;;  %v3620_v45 = vpop.f32.mrf.mxu2  ;;  %v3653_v58 = vand.u32 2147483648, %v3638_v13  ;;  %v3651_v49 = vand.u32 2147483647, %v3638_v13  ;;  %vm3647_vm5 = vweird.f32 %v3638_v13 }
0x128e   :  { %v3621_v38 = vadd.f32 %v4145_v37, %v3620_v45 }
0x128f   :  { %v3654_v21 = vor.u32 1.1754944e-38, %v3653_v58  ;;  %vm3652_vm7 = vcmp.eq.f32.partialorder %v3651_v49, 8.507059e+37 }
0x1290   :  { %v3628_v30 = vsub.f32 0.0, %v3621_v38 }
0x1292   :  { %v4149_v19 = vpop.eup %4148  ;;  %v3634_v4 = vmul.f32 1.442695, %v3628_v30 }
0x1293   :  { %v4151_v55 = vpop.eup %4150  ;;  %v3639_v25 = vadd.f32 1.0, %v4149_v19 }
0x1294   :  { %v3643_v52 = vmul.f32 %v4151_v55, %v3638_v13  ;;  %4152 = vpow2.f32 %v3634_v4  ;;  %vm3648_vm4 = vweird.f32 %v4151_v55 }
0x1295   :  { %4154 = vrcp.f32 %v3639_v25  ;;  %v3623_v35 = vpop.f32.mrf.mxu2  ;;  %vm3649_vm6 = vmor %vm3647_vm5, %vm3648_vm4  ;;  %v3668_v1 = vand.u32 2147483648, %v3639_v25  ;;  %v3666_v2 = vand.u32 2147483647, %v3639_v25  ;;  %vm3662_vm9 = vweird.f32 %v3639_v25 }
0x1296   :  { %v3644_v10 = vsub.f32 1.0, %v3643_v52  ;;  %v3624_v54 = vadd.f32 %v4145_v37, %v3623_v35 }
0x1297   :  { %v3669_v8 = vor.u32 1.1754944e-38, %v3668_v1  ;;  %vm3667_vm11 = vcmp.eq.f32.partialorder %v3666_v2, 8.507059e+37 }
0x1298   :  { %v3645_v47 = vmul.f32 %v4151_v55, %v3644_v10  ;;  %v3629_v20 = vsub.f32 0.0, %v3624_v54 }
0x129a   :  { %v4153_v59 = vpop.eup %4152  ;;  %v3636_v60 = vmul.f32 1.442695, %v3629_v20  ;;  %v3646_v57 = vadd.f32 %v4151_v55, %v3645_v47 }
0x129b   :  { %v4155_v44 = vpop.eup %4154  ;;  %v3640_v56 = vadd.f32 1.0, %v4153_v59 }
0x129c   :  { %v3658_v39 = vmul.f32 %v4155_v44, %v3639_v25  ;;  %4156 = vpow2.f32 %v3636_v60  ;;  %v3650_v63 = vsel %vm3649_vm6, %v4151_v55, %v3646_v57  ;;  %vm3663_vm8 = vweird.f32 %v4155_v44 }
0x129d   :  { %4158 = vrcp.f32 %v3640_v56  ;;  %v3655_v61 = vsel %vm3652_vm7, %v3654_v21, %v3650_v63  ;;  %vm3664_vm10 = vmor %vm3662_vm9, %vm3663_vm8  ;;  %v3683_v17 = vand.u32 2147483648, %v3640_v56  ;;  %v3681_v22 = vand.u32 2147483647, %v3640_v56 }
0x129e   :  { %v3659_v0 = vsub.f32 1.0, %v3658_v39  ;;  %3702 = vst.msk [vmem:[#allocation50] sm:$0xff] %vm1389_vm2, %v3655_v61  ;;  %vm3677_vm13 = vweird.f32 %v3640_v56 }
0x129f   :  { %v3684_v28 = vor.u32 1.1754944e-38, %v3683_v17  ;;  %vm3682_vm15 = vcmp.eq.f32.partialorder %v3681_v22, 8.507059e+37 }
0x12a0   :  { %v3660_v50 = vmul.f32 %v4155_v44, %v3659_v0 }
0x12a2   :  { %v4157_v62 = vpop.eup %4156  ;;  %v3661_v3 = vadd.f32 %v4155_v44, %v3660_v50 }
0x12a3   :  { %v4159_v5 = vpop.eup %4158  ;;  %v3641_v7 = vadd.f32 1.0, %v4157_v62 }
0x12a4   :  { %v3673_v9 = vmul.f32 %v4159_v5, %v3640_v56  ;;  %v3665_v15 = vsel %vm3664_vm10, %v4155_v44, %v3661_v3  ;;  %vm3678_vm12 = vweird.f32 %v4159_v5 }
0x12a5   :  { %4160 = vrcp.f32 %v3641_v7  ;;  %v3670_v18 = vsel %vm3667_vm11, %v3669_v8, %v3665_v15  ;;  %vm3679_vm14 = vmor %vm3677_vm13, %vm3678_vm12  ;;  %v3698_v32 = vand.u32 2147483648, %v3641_v7  ;;  %v3696_v34 = vand.u32 2147483647, %v3641_v7 }
0x12a6   :  { %v3674_v16 = vsub.f32 1.0, %v3673_v9  ;;  %3703 = vst.msk [vmem:[#allocation50 + $0x8] sm:$0xff] %vm1389_vm2, %v3670_v18  ;;  %vm3692_vm1 = vweird.f32 %v3641_v7 }
0x12a7   :  { %v3699_v26 = vor.u32 1.1754944e-38, %v3698_v32  ;;  %vm3697_vm4 = vcmp.eq.f32.partialorder %v3696_v34, 8.507059e+37 }
0x12a8   :  { %v3675_v24 = vmul.f32 %v4159_v5, %v3674_v16 }
0x12aa   :  { %v3676_v23 = vadd.f32 %v4159_v5, %v3675_v24 }
0x12ab   :  { %v4161_v27 = vpop.eup %4160 }
0x12ac   :  { %v3688_v29 = vmul.f32 %v4161_v27, %v3641_v7  ;;  %v3680_v12 = vsel %vm3679_vm14, %v4159_v5, %v3676_v23  ;;  %vm3693_vm0 = vweird.f32 %v4161_v27 }
0x12ad   :  { %v3685_v11 = vsel %vm3682_vm15, %v3684_v28, %v3680_v12  ;;  %vm3694_vm3 = vmor %vm3692_vm1, %vm3693_vm0 }
0x12ae   :  { %v3689_v31 = vsub.f32 1.0, %v3688_v29  ;;  %3704 = vst.msk [vmem:[#allocation50 + $0x10] sm:$0xff] %vm1389_vm2, %v3685_v11 }
0x12b0   :  { %v3690_v33 = vmul.f32 %v4161_v27, %v3689_v31 }
0x12b2   :  { %v3691_v14 = vadd.f32 %v4161_v27, %v3690_v33 }
0x12b4   :  { %v3695_v36 = vsel %vm3694_vm3, %v4161_v27, %v3691_v14 }
0x12b5   :  { %v3700_v37 = vsel %vm3697_vm4, %v3699_v26, %v3695_v36 }
0x12b6   :  { %3705 = vst.msk [vmem:[#allocation50 + $0x18] sm:$0xff] %vm1389_vm2, %v3700_v37 }
0x12b7   :  { %4929 = shalt.err (!%p4926_p5)
}
0x12b8   :  { %3718 = dma.vmem_to_hbm [thread:$0]  %s3711_s19, 512, %s3713_s13, [#allocation4], %s5017_s15, %s5017_s15, %s5018_s16  }
0x12b9   :  { %4962 = dma.done.wait [#allocation4], 512  }
0x12ba   :  { %4963 = vsyncadd [#allocation4], 4294966784 }
0x12bb   :  { %3723 = vsyncpa [#allocation3], 1 }
0x12bc   :  { %3724 = vsyncpa [#allocation6], 1 }
0x12bd   :  { %3725 = vsyncpa [#allocation9], 1 }
0x12be   :  { %3726 = vsyncpa [#allocation12], 1 }
0x12bf   :  { %3727 = vsyncpa [#allocation15], 1 }
0x12c0   :  { %3728 = vsyncpa [#allocation18], 1 }
0x12c1   :  { %3729 = vsyncpa [#allocation21], 1 }
0x12c2   :  { %3730 = vsyncpa [#allocation24], 1 }
0x12c3   :  { %3731 = vsyncpa [#allocation27], 1 }
0x12c4   :  { %3732 = vsyncpa [#allocation30], 1 }
0x12c5   :  { %3733 = vsyncpa [#allocation33], 1 }
0x12c6   :  { %3734 = vsyncpa [#allocation36], 1 }
0x12c7   :  { %3735 = vsyncpa [#allocation39], 1 }
0x12c8   :  { %3736 = vsyncpa [#allocation42], 1 }
0x12c9   :  { %3737 = vsyncpa [#allocation45], 1 }
0x12ca   :  { %3738 = vsyncpa [#allocation48], 1 }
0x12cb   :  { %3739 = vsyncpa [#allocation4], 1 }

</bundles_post_ra>
